<compile_context>
chip_gen: v6e
topology: v6e:2x2x1
jax: 0.10.0
libtpu: 0.0.40
codegen_flags: <defaults>
</compile_context>

<pallas_src>
import math
from functools import partial

import numpy as np
import jax
import jax.numpy as jnp
from jax.experimental import pallas as pl
from jax.experimental.pallas import tpu as pltpu


# ---------------------------------------------------------------------------
# Helpers
# ---------------------------------------------------------------------------

def _round_up(x, m):
    return (x + m - 1) // m * m


def _bytes(shape, dtype):
    return int(np.prod(shape)) * np.dtype(dtype).itemsize


def _phys_vmem_bytes():
    # v5e/v6e: 128 MiB, v7x: 64 MiB. Query when possible, fall back to the
    # smallest (v7x) so the limit is always physically realizable.
    try:
        return int(pltpu.get_tpu_info().vmem_capacity_bytes)
    except Exception:
        return 64 << 20


def _cparams(pipelined, scratch=(), *, parallel=True):
    """CompilerParams with an explicit scoped-VMEM budget.

    pipelined: (shape, dtype) per BlockSpec'd block (counted 2x: double buffer).
    scratch:   (shape, dtype) of fused in-kernel intermediates (counted 1x).
    """
    est = 8 << 20
    for shape, dtype in pipelined:
        est += 2 * _bytes(shape, dtype)
    for shape, dtype in scratch:
        est += _bytes(shape, dtype)
    phys = _phys_vmem_bytes()
    limit = int(min(phys - (4 << 20), max(32 << 20, est)))
    return pltpu.CompilerParams(
        dimension_semantics=("parallel",) if parallel else ("arbitrary",),
        vmem_limit_bytes=limit)


def _prep_rows(x3d, row_tile=512):
    """(B, L, D) -> zero-padded (Mp, D), Mp a multiple of the chosen row tile."""
    B, L, D = x3d.shape
    M = B * L
    tm = row_tile if M >= row_tile else max(8, _round_up(M, 8))
    Mp = _round_up(M, tm)
    x2d = x3d.reshape(M, D)
    if Mp != M:
        x2d = jnp.pad(x2d, ((0, Mp - M), (0, 0)))
    return x2d, (B, L, M, Mp, tm)


# ---------------------------------------------------------------------------
# Fused Pallas kernels (hot path)
# ---------------------------------------------------------------------------

def _patch_embed_kernel(p_ref, w_ref, b_ref, o_ref):
    # rows of patches @ W (bf16 MXU, f32 acc) + bias
    x = jnp.dot(p_ref[...].astype(jnp.bfloat16), w_ref[...],
                preferred_element_type=jnp.float32)
    o_ref[...] = (x + b_ref[...]).astype(o_ref.dtype)


def _ln_linear_kernel(x_ref, g_ref, b_ref, w_ref, bias_ref, o_ref, *, eps):
    # LayerNorm fused into the matmul that consumes it (row-tiled).
    x = x_ref[...].astype(jnp.float32)
    mu = jnp.mean(x, axis=-1, keepdims=True)
    var = jnp.mean(jnp.square(x - mu), axis=-1, keepdims=True)
    y = ((x - mu) * jax.lax.rsqrt(var + eps) * g_ref[...]
         + b_ref[...]).astype(jnp.bfloat16)
    o_ref[...] = (jnp.dot(y, w_ref[...], preferred_element_type=jnp.float32)
                  + bias_ref[...]).astype(o_ref.dtype)


def _mlp_block_kernel(x_ref, g_ref, b_ref, w1_ref, b1_ref, w2_ref, b2_ref,
                      o_ref, *, eps):
    # Fused: LN2 -> FC1 + GELU -> FC2 -> residual add (row-tiled).
    x = x_ref[...].astype(jnp.float32)
    mu = jnp.mean(x, axis=-1, keepdims=True)
    var = jnp.mean(jnp.square(x - mu), axis=-1, keepdims=True)
    y = ((x - mu) * jax.lax.rsqrt(var + eps) * g_ref[...]
         + b_ref[...]).astype(jnp.bfloat16)
    h = jnp.dot(y, w1_ref[...], preferred_element_type=jnp.float32) + b1_ref[...]
    # TODO(synk): torch nn.GELU defaults to exact erf GELU; tanh approximation
    # used for a Mosaic-safe EUP lowering.
    h = jax.nn.gelu(h, approximate=True).astype(jnp.bfloat16)
    out = jnp.dot(h, w2_ref[...], preferred_element_type=jnp.float32) + b2_ref[...]
    o_ref[...] = (x + out).astype(o_ref.dtype)


def _attn_block_kernel(x_ref, g_ref, b_ref, wqkv_ref, bqkv_ref,
                       wproj_ref, bproj_ref, o_ref, *,
                       num_heads, valid_len, eps):
    # Fused: LN1 -> QKV matmul -> heads-batched softmax attention ->
    #        single full-K output projection -> residual add.
    x = x_ref[...].astype(jnp.float32)                       # (L, D)
    L, D = x.shape
    dh = D // num_heads
    scale = 1.0 / math.sqrt(dh)

    # --- LayerNorm (f32 vector math) ---
    mu = jnp.mean(x, axis=-1, keepdims=True)
    var = jnp.mean(jnp.square(x - mu), axis=-1, keepdims=True)
    y = ((x - mu) * jax.lax.rsqrt(var + eps) * g_ref[...]
         + b_ref[...]).astype(jnp.bfloat16)

    # --- single fused QKV projection; cast to bf16 once after bias add ---
    qkv = (jnp.dot(y, wqkv_ref[...], preferred_element_type=jnp.float32)
           + bqkv_ref[...]).astype(jnp.bfloat16)             # (L, 3D)

    # --- heads-batched attention (rank-3 einsums, single batch dim = heads) ---
    q = jnp.stack([qkv[:, h * dh:(h + 1) * dh]
                   for h in range(num_heads)], axis=0)       # (H, L, dh)
    k = jnp.stack([qkv[:, D + h * dh:D + (h + 1) * dh]
                   for h in range(num_heads)], axis=0)
    v = jnp.stack([qkv[:, 2 * D + h * dh:2 * D + (h + 1) * dh]
                   for h in range(num_heads)], axis=0)

    s = jnp.einsum('hqd,hkd->hqk', q, k,
                   preferred_element_type=jnp.float32) * scale          # (H, L, L)
    if valid_len < L:  # static: mask padded key tokens
        kidx = jax.lax.broadcasted_iota(jnp.int32, (1, L), 1)
        s = jnp.where(kidx < valid_len, s, -1e30)
    m = jnp.max(s, axis=-1, keepdims=True)
    p = jnp.exp(s - m)
    p = p * pl.reciprocal(jnp.sum(p, axis=-1, keepdims=True), approx=True)
    o = jnp.einsum('hqk,hkd->hqd', p.astype(jnp.bfloat16), v,
                   preferred_element_type=jnp.float32).astype(jnp.bfloat16)

    # --- concatenate heads, ONE (L,D)@(D,D) projection (full MXU K depth) ---
    o_cat = jnp.concatenate([o[h] for h in range(num_heads)], axis=-1)   # (L, D)
    out = (jnp.dot(o_cat, wproj_ref[...], preferred_element_type=jnp.float32)
           + bproj_ref[...])
    # residual add fused into the final store
    o_ref[...] = (x + out).astype(o_ref.dtype)


def _mae_loss_kernel(pred_ref, tgt_ref, mask_ref, sums_ref):
    # Batch-blocked; num/den accumulated into resident SMEM output.
    b = pl.program_id(0)

    @pl.when(b == 0)
    def _():
        sums_ref[0, 0] = 0.0
        sums_ref[0, 1] = 0.0

    d = pred_ref[...].astype(jnp.float32) - tgt_ref[...].astype(jnp.float32)
    per_patch = jnp.mean(d * d, axis=-1)                     # (TB, L)
    m = mask_ref[...].astype(jnp.float32)                    # (TB, L)
    sums_ref[0, 0] = sums_ref[0, 0] + jnp.sum(per_patch * m)
    sums_ref[0, 1] = sums_ref[0, 1] + jnp.sum(m)


# ---------------------------------------------------------------------------
# Pallas wrappers
# ---------------------------------------------------------------------------

def pallas_patch_embed(patches, w, b):
    x2d, (B, L, M, Mp, tm) = _prep_rows(patches)
    P = x2d.shape[1]
    D = w.shape[1]
    out = pl.pallas_call(
        _patch_embed_kernel,
        out_shape=jax.ShapeDtypeStruct((Mp, D), jnp.bfloat16),
        grid=(Mp // tm,),
        in_specs=[
            pl.BlockSpec((tm, P), lambda i: (i, 0)),
            pl.BlockSpec((P, D), lambda i: (0, 0)),
            pl.BlockSpec((1, D), lambda i: (0, 0)),
        ],
        out_specs=pl.BlockSpec((tm, D), lambda i: (i, 0)),
        compiler_params=_cparams(
            [((tm, P), patches.dtype), ((P, D), jnp.bfloat16),
             ((1, D), jnp.float32), ((tm, D), jnp.bfloat16)],
            scratch=[((tm, D), jnp.float32)]),
    )(x2d, w, b)
    return out[:M].reshape(B, L, D)


def pallas_ln_linear(x, g, b, w, bias, *, eps=1e-6, out_dtype=jnp.bfloat16):
    x2d, (B, L, M, Mp, tm) = _prep_rows(x)
    Din = x2d.shape[1]
    Dout = w.shape[1]
    out = pl.pallas_call(
        partial(_ln_linear_kernel, eps=eps),
        out_shape=jax.ShapeDtypeStruct((Mp, Dout), out_dtype),
        grid=(Mp // tm,),
        in_specs=[
            pl.BlockSpec((tm, Din), lambda i: (i, 0)),
            pl.BlockSpec((1, Din), lambda i: (0, 0)),
            pl.BlockSpec((1, Din), lambda i: (0, 0)),
            pl.BlockSpec((Din, Dout), lambda i: (0, 0)),
            pl.BlockSpec((1, Dout), lambda i: (0, 0)),
        ],
        out_specs=pl.BlockSpec((tm, Dout), lambda i: (i, 0)),
        compiler_params=_cparams(
            [((tm, Din), x.dtype), ((Din, Dout), jnp.bfloat16),
             ((tm, Dout), out_dtype)],
            scratch=[((tm, Din), jnp.float32), ((tm, Dout), jnp.float32)]),
    )(x2d, g, b, w, bias)
    return out[:M].reshape(B, L, Dout)


def pallas_mlp_block(x, bp, *, eps=1e-6):
    x2d, (B, L, M, Mp, tm) = _prep_rows(x)
    D = x2d.shape[1]
    Hid = bp['fc1_w'].shape[1]
    out = pl.pallas_call(
        partial(_mlp_block_kernel, eps=eps),
        out_shape=jax.ShapeDtypeStruct((Mp, D), x.dtype),
        grid=(Mp // tm,),
        in_specs=[
            pl.BlockSpec((tm, D), lambda i: (i, 0)),
            pl.BlockSpec((1, D), lambda i: (0, 0)),
            pl.BlockSpec((1, D), lambda i: (0, 0)),
            pl.BlockSpec((D, Hid), lambda i: (0, 0)),
            pl.BlockSpec((1, Hid), lambda i: (0, 0)),
            pl.BlockSpec((Hid, D), lambda i: (0, 0)),
            pl.BlockSpec((1, D), lambda i: (0, 0)),
        ],
        out_specs=pl.BlockSpec((tm, D), lambda i: (i, 0)),
        compiler_params=_cparams(
            [((tm, D), x.dtype), ((D, Hid), jnp.bfloat16),
             ((Hid, D), jnp.bfloat16), ((tm, D), x.dtype)],
            scratch=[((tm, Hid), jnp.float32), ((tm, D), jnp.float32)]),
    )(x2d, bp['n2_g'], bp['n2_b'], bp['fc1_w'], bp['fc1_b'],
      bp['fc2_w'], bp['fc2_b'])
    return out[:M].reshape(B, L, D)


def pallas_attn_block(x, bp, num_heads, valid_len, *, eps=1e-6):
    B, L, D = x.shape
    return pl.pallas_call(
        partial(_attn_block_kernel, num_heads=num_heads,
                valid_len=valid_len, eps=eps),
        out_shape=jax.ShapeDtypeStruct((B, L, D), x.dtype),
        grid=(B,),
        in_specs=[
            pl.BlockSpec((None, L, D), lambda i: (i, 0, 0)),   # x (residual)
            pl.BlockSpec((1, D), lambda i: (0, 0)),            # ln1 gamma
            pl.BlockSpec((1, D), lambda i: (0, 0)),            # ln1 beta
            pl.BlockSpec((D, 3 * D), lambda i: (0, 0)),        # qkv weight bf16
            pl.BlockSpec((1, 3 * D), lambda i: (0, 0)),        # qkv bias
            pl.BlockSpec((D, D), lambda i: (0, 0)),            # proj weight bf16
            pl.BlockSpec((1, D), lambda i: (0, 0)),            # proj bias
        ],
        out_specs=pl.BlockSpec((None, L, D), lambda i: (i, 0, 0)),
        compiler_params=_cparams(
            [((L, D), x.dtype), ((D, 3 * D), jnp.bfloat16),
             ((D, D), jnp.bfloat16), ((L, D), x.dtype)],
            scratch=[((L, 3 * D), jnp.float32), ((L, 3 * D), jnp.bfloat16),
                     ((num_heads, L, L), jnp.float32),
                     ((L, D), jnp.float32)]),
    )(x, bp['n1_g'], bp['n1_b'], bp['qkv_w'], bp['qkv_b'],
      bp['proj_w'], bp['proj_b'])


def pallas_mae_loss(pred, target, mask):
    B, L, P = pred.shape
    TB = B if B <= 8 else 8           # whole batch in one step when small
    Bp = _round_up(B, TB)
    if Bp != B:
        pred = jnp.pad(pred, ((0, Bp - B), (0, 0), (0, 0)))
        target = jnp.pad(target, ((0, Bp - B), (0, 0), (0, 0)))
        mask = jnp.pad(mask, ((0, Bp - B), (0, 0)))
    sums = pl.pallas_call(
        _mae_loss_kernel,
        out_shape=jax.ShapeDtypeStruct((1, 2), jnp.float32),
        grid=(Bp // TB,),
        in_specs=[
            pl.BlockSpec((TB, L, P), lambda b: (b, 0, 0)),
            pl.BlockSpec((TB, L, P), lambda b: (b, 0, 0)),
            pl.BlockSpec((TB, L), lambda b: (b, 0)),
        ],
        out_specs=pl.BlockSpec(memory_space=pltpu.MemorySpace.SMEM),
        compiler_params=_cparams(
            [((TB, L, P), pred.dtype), ((TB, L, P), target.dtype),
             ((TB, L), jnp.float32)],
            parallel=False),  # sequential accumulation
    )(pred, target, mask)
    return sums[0, 0] / sums[0, 1]


# ---------------------------------------------------------------------------
# Model pieces (glue in plain JAX, compute in fused kernels above)
# ---------------------------------------------------------------------------

def _sincos_1d(embed_dim, pos):
    omega = np.arange(embed_dim // 2, dtype=np.float64) / (embed_dim / 2.0)
    omega = 1.0 / (10000.0 ** omega)
    out = np.einsum('m,d->md', pos.reshape(-1).astype(np.float64), omega)
    return np.concatenate([np.sin(out), np.cos(out)], axis=1)


def get_2d_sincos_pos_embed(embed_dim, grid_size, cls_token=False):
    grid_h = np.arange(grid_size, dtype=np.float32)
    grid_w = np.arange(grid_size, dtype=np.float32)
    grid = np.meshgrid(grid_w, grid_h)
    grid = np.stack(grid, axis=0).reshape([2, 1, grid_size, grid_size])
    emb_h = _sincos_1d(embed_dim // 2, grid[0])
    emb_w = _sincos_1d(embed_dim // 2, grid[1])
    emb = np.concatenate([emb_h, emb_w], axis=1)
    if cls_token:
        emb = np.concatenate([np.zeros([1, embed_dim]), emb], axis=0)
    return emb.astype(np.float32)


def extract_patches(imgs, p):
    # Matches Conv2d(kernel=stride=p) im2col ordering: (c, ph, pw) per patch.
    B, C, H, W = imgs.shape
    h, w = H // p, W // p
    x = imgs.reshape(B, C, h, p, w, p)
    x = jnp.transpose(x, (0, 2, 4, 1, 3, 5))      # (B, h, w, C, p, p)
    return x.reshape(B, h * w, C * p * p)


def patchify(imgs, p):
    # Matches reference patchify(): per-patch flatten in (ph, pw, c) order.
    B, C, H, W = imgs.shape
    h, w = H // p, W // p
    x = imgs.reshape(B, C, h, p, w, p)
    x = jnp.einsum('nchpwq->nhwpqc', x)
    return x.reshape(B, h * w, p * p * C)


def random_masking(x, mask_ratio, key):
    N, L, D = x.shape
    len_keep = int(L * (1 - mask_ratio))
    noise = jax.random.uniform(key, (N, L))
    ids_shuffle = jnp.argsort(noise, axis=1)
    ids_restore = jnp.argsort(ids_shuffle, axis=1)
    ids_keep = ids_shuffle[:, :len_keep]
    x_masked = jnp.take_along_axis(x, ids_keep[:, :, None], axis=1)
    mask = jnp.ones((N, L), jnp.float32)
    mask = mask.at[:, :len_keep].set(0.0)
    mask = jnp.take_along_axis(mask, ids_restore, axis=1)
    return x_masked, mask, ids_restore


def mae_forward(params, imgs, mask_key, cfg):
    p = cfg['patch_size']
    D = cfg['embed_dim']
    Dd = cfg['decoder_embed_dim']
    B = imgs.shape[0]

    # resample_abs_pos_embed() is an identity here: input grid == pos_embed grid.
    pos_embed = params['pos_embed']
    dec_pos_embed = params['decoder_pos_embed']

    # ------------------- encoder -------------------
    patches = extract_patches(imgs, p)                          # (B, L, C*p*p)
    x = pallas_patch_embed(patches, params['patch_w'], params['patch_b'])
    x = x.astype(jnp.float32) + pos_embed[:, 1:, :]
    x, mask, ids_restore = random_masking(x, cfg['mask_ratio'], mask_key)
    cls_tok = jnp.broadcast_to(params['cls_token'] + pos_embed[:, :1, :],
                               (B, 1, D))
    x = jnp.concatenate([cls_tok, x], axis=1)
    L_enc = x.shape[1]
    L_enc_p = _round_up(L_enc, 8)                               # sublane align
    x = jnp.pad(x, ((0, 0), (0, L_enc_p - L_enc), (0, 0))).astype(jnp.bfloat16)
    for bp in params['blocks']:
        x = pallas_attn_block(x, bp, cfg['num_heads'], valid_len=L_enc)
        x = pallas_mlp_block(x, bp)

    # ------------------- decoder -------------------
    # final encoder LayerNorm fused into the decoder_embed linear
    x = pallas_ln_linear(x, params['norm_g'], params['norm_b'],
                         params['dec_embed_w'], params['dec_embed_b'])
    x = x[:, :L_enc, :]                                         # drop padding

    Lp = ids_restore.shape[1]
    n_mask = Lp + 1 - L_enc
    mask_tokens = jnp.broadcast_to(params['mask_token'].astype(x.dtype),
                                   (B, n_mask, Dd))
    x_ = jnp.concatenate([x[:, 1:, :], mask_tokens], axis=1)
    x_ = jnp.take_along_axis(x_, ids_restore[:, :, None], axis=1)
    x = jnp.concatenate([x[:, :1, :], x_], axis=1)
    x = x.astype(jnp.float32) + dec_pos_embed
    L_dec = x.shape[1]
    L_dec_p = _round_up(L_dec, 8)
    x = jnp.pad(x, ((0, 0), (0, L_dec_p - L_dec), (0, 0))).astype(jnp.bfloat16)
    for bp in params['dec_blocks']:
        x = pallas_attn_block(x, bp, cfg['decoder_num_heads'], valid_len=L_dec)
        x = pallas_mlp_block(x, bp)
    # decoder LayerNorm fused into the decoder_pred linear (f32 output)
    x = pallas_ln_linear(x, params['dec_norm_g'], params['dec_norm_b'],
                         params['dec_pred_w'], params['dec_pred_b'],
                         out_dtype=jnp.float32)
    pred = x[:, 1:L_dec, :]

    # ------------------- loss -------------------
    # TODO(synk): build_target() is an external factory; standard MAE masked
    # per-patch pixel MSE is implemented here.
    target = patchify(imgs, p)
    loss = pallas_mae_loss(pred, target, mask)
    return loss, pred, mask


# ---------------------------------------------------------------------------
# Deterministic parameter init (weights stored bf16, cast once)
# ---------------------------------------------------------------------------

def xavier_uniform(key, shape, dtype=jnp.float32):
    fan_in, fan_out = shape
    lim = math.sqrt(6.0 / (fan_in + fan_out))
    return jax.random.uniform(key, shape, jnp.float32, -lim, lim).astype(dtype)


def init_block_params(key, dim, mlp_ratio):
    hidden = int(dim * mlp_ratio)
    k = jax.random.split(key, 4)
    return dict(
        n1_g=jnp.ones((1, dim), jnp.float32),
        n1_b=jnp.zeros((1, dim), jnp.float32),
        qkv_w=xavier_uniform(k[0], (dim, 3 * dim), jnp.bfloat16),
        qkv_b=jnp.zeros((1, 3 * dim), jnp.float32),
        proj_w=xavier_uniform(k[1], (dim, dim), jnp.bfloat16),
        proj_b=jnp.zeros((1, dim), jnp.float32),
        n2_g=jnp.ones((1, dim), jnp.float32),
        n2_b=jnp.zeros((1, dim), jnp.float32),
        fc1_w=xavier_uniform(k[2], (dim, hidden), jnp.bfloat16),
        fc1_b=jnp.zeros((1, hidden), jnp.float32),
        fc2_w=xavier_uniform(k[3], (hidden, dim), jnp.bfloat16),
        fc2_b=jnp.zeros((1, dim), jnp.float32),
    )


def init_params(key, cfg):
    p, C = cfg['patch_size'], cfg['in_chans']
    D, Dd = cfg['embed_dim'], cfg['decoder_embed_dim']
    gs = cfg['img_size'] // p
    P = p * p * C

    keys = iter(jax.random.split(key, 16 + cfg['depth'] + cfg['decoder_depth']))
    return dict(
        patch_w=xavier_uniform(next(keys), (P, D), jnp.bfloat16),  # conv as matmul
        patch_b=jnp.zeros((1, D), jnp.float32),
        cls_token=0.02 * jax.random.normal(next(keys), (1, 1, D), jnp.float32),
        pos_embed=jnp.asarray(
            get_2d_sincos_pos_embed(D, gs, cls_token=True))[None],
        blocks=[init_block_params(next(keys), D, cfg['mlp_ratio'])
                for _ in range(cfg['depth'])],
        norm_g=jnp.ones((1, D), jnp.float32),
        norm_b=jnp.zeros((1, D), jnp.float32),
        dec_embed_w=xavier_uniform(next(keys), (D, Dd), jnp.bfloat16),
        dec_embed_b=jnp.zeros((1, Dd), jnp.float32),
        mask_token=0.02 * jax.random.normal(next(keys), (1, 1, Dd), jnp.float32),
        decoder_pos_embed=jnp.asarray(
            get_2d_sincos_pos_embed(Dd, gs, cls_token=True))[None],
        dec_blocks=[init_block_params(next(keys), Dd, cfg['mlp_ratio'])
                    for _ in range(cfg['decoder_depth'])],
        dec_norm_g=jnp.ones((1, Dd), jnp.float32),
        dec_norm_b=jnp.zeros((1, Dd), jnp.float32),
        dec_pred_w=xavier_uniform(next(keys), (Dd, P), jnp.bfloat16),
        dec_pred_b=jnp.zeros((1, P), jnp.float32),
    )


# ---------------------------------------------------------------------------
# Main
# ---------------------------------------------------------------------------

if __name__ == "__main__":
    cfg = dict(
        img_size=16, patch_size=4, in_chans=3, mask_ratio=0.75,
        embed_dim=128, depth=2, num_heads=4,
        decoder_embed_dim=128, decoder_depth=2, decoder_num_heads=4,
        mlp_ratio=4.0,
    )
    key = jax.random.PRNGKey(0)
    k_param, k_img, k_mask = jax.random.split(key, 3)

    params = init_params(k_param, cfg)
    imgs = jax.random.normal(k_img, (2, cfg['in_chans'],
                                     cfg['img_size'], cfg['img_size']),
                             jnp.float32)

    fwd = jax.jit(partial(mae_forward, cfg=cfg))
    loss, pred, mask = fwd(params, imgs, k_mask)
    jax.block_until_ready((loss, pred, mask))
    assert pred.shape == (2, 16, cfg['patch_size'] ** 2 * cfg['in_chans'])
    assert mask.shape == (2, 16)
    assert bool(jnp.isfinite(loss))
    print("KERNEL_OK")
</pallas_src>

<mosaic_0001>
module attributes {stable_mosaic.version = 11 : i64} {
  func.func @_patch_embed_kernel(%arg0: i32, %arg1: memref<32x48xf32, #tpu.memory_space<vmem>>, %arg2: memref<48x128xbf16, #tpu.memory_space<vmem>>, %arg3: memref<1x128xf32, #tpu.memory_space<vmem>>, %arg4: memref<32x128xbf16, #tpu.memory_space<vmem>>) attributes {dimension_semantics = [#tpu.dimension_semantics<parallel>], iteration_bounds = array<i64: 1>, scalar_prefetch = 0 : i64, scratch_operands = 0 : i64, tpu.core_type = #tpu.core_type<tc>, window_params = [{transform_indices = @transform_0, window_bounds = array<i64: 32, 48>}, {pipeline_mode = #tpu.pipeline_mode<synchronous>, transform_indices = @transform_1, window_bounds = array<i64: 48, 128>}, {pipeline_mode = #tpu.pipeline_mode<synchronous>, transform_indices = @transform_2, window_bounds = array<i64: 1, 128>}, {transform_indices = @transform_3, window_bounds = array<i64: 32, 128>}]} {
    %c0 = arith.constant 0 : index
    %c0_0 = arith.constant 0 : index
    %0 = vector.load %arg1[%c0, %c0_0] : memref<32x48xf32, #tpu.memory_space<vmem>>, vector<32x48xf32>
    %1 = arith.truncf %0 : vector<32x48xf32> to vector<32x48xbf16>
    %c0_1 = arith.constant 0 : index
    %c0_2 = arith.constant 0 : index
    %2 = vector.load %arg2[%c0_1, %c0_2] : memref<48x128xbf16, #tpu.memory_space<vmem>>, vector<48x128xbf16>
    %cst = arith.constant dense<0.000000e+00> : vector<32x128xf32>
    %3 = tpu.matmul %1, %2, %cst {dimension_numbers = #tpu.dot_dimension_numbers<[1], [0], [0], [1], [0, 0, 1, 1], [], []>} : vector<32x48xbf16>, vector<48x128xbf16>, vector<32x128xf32> -> vector<32x128xf32>
    %c0_3 = arith.constant 0 : index
    %c0_4 = arith.constant 0 : index
    %4 = vector.load %arg3[%c0_3, %c0_4] : memref<1x128xf32, #tpu.memory_space<vmem>>, vector<1x128xf32>
    %5 = vector.broadcast %4 : vector<1x128xf32> to vector<32x128xf32>
    %6 = arith.addf %3, %5 : vector<32x128xf32>
    %7 = arith.truncf %6 : vector<32x128xf32> to vector<32x128xbf16>
    %c0_5 = arith.constant 0 : index
    %c0_6 = arith.constant 0 : index
    %8 = vector.load %arg4[%c0_5, %c0_6] : memref<32x128xbf16, #tpu.memory_space<vmem>>, vector<32x128xbf16>
    tpu.vector_store %arg4[%c0_5, %c0_6], %7 {strides = array<i32>} : memref<32x128xbf16, #tpu.memory_space<vmem>>, vector<32x128xbf16>,
    return
  }
  func.func @transform_0(%arg0: i32) -> (i32, i32) {
    %c0_i32 = arith.constant 0 : i32
    %c0_i32_0 = arith.constant 0 : i32
    return %arg0, %c0_i32 : i32, i32
  }
  func.func @transform_1(%arg0: i32) -> (i32, i32) {
    %c0_i32 = arith.constant 0 : i32
    %c0_i32_0 = arith.constant 0 : i32
    %c0_i32_1 = arith.constant 0 : i32
    return %c0_i32, %c0_i32_0 : i32, i32
  }
  func.func @transform_2(%arg0: i32) -> (i32, i32) {
    %c0_i32 = arith.constant 0 : i32
    %c0_i32_0 = arith.constant 0 : i32
    %c0_i32_1 = arith.constant 0 : i32
    return %c0_i32, %c0_i32_0 : i32, i32
  }
  func.func @transform_3(%arg0: i32) -> (i32, i32) {
    %c0_i32 = arith.constant 0 : i32
    %c0_i32_0 = arith.constant 0 : i32
    return %arg0, %c0_i32 : i32, i32
  }
}

module attributes {stable_mosaic.version = 11 : i64} {
  func.func @_mlp_block_kernel(%arg0: i32, %arg1: memref<16x128xbf16, #tpu.memory_space<vmem>>, %arg2: memref<1x128xf32, #tpu.memory_space<vmem>>, %arg3: memref<1x128xf32, #tpu.memory_space<vmem>>, %arg4: memref<128x512xbf16, #tpu.memory_space<vmem>>, %arg5: memref<1x512xf32, #tpu.memory_space<vmem>>, %arg6: memref<512x128xbf16, #tpu.memory_space<vmem>>, %arg7: memref<1x128xf32, #tpu.memory_space<vmem>>, %arg8: memref<16x128xbf16, #tpu.memory_space<vmem>>) attributes {dimension_semantics = [#tpu.dimension_semantics<parallel>], iteration_bounds = array<i64: 1>, scalar_prefetch = 0 : i64, scratch_operands = 0 : i64, tpu.core_type = #tpu.core_type<tc>, window_params = [{transform_indices = @transform_0, window_bounds = array<i64: 16, 128>}, {pipeline_mode = #tpu.pipeline_mode<synchronous>, transform_indices = @transform_1, window_bounds = array<i64: 1, 128>}, {pipeline_mode = #tpu.pipeline_mode<synchronous>, transform_indices = @transform_2, window_bounds = array<i64: 1, 128>}, {pipeline_mode = #tpu.pipeline_mode<synchronous>, transform_indices = @transform_3, window_bounds = array<i64: 128, 512>}, {pipeline_mode = #tpu.pipeline_mode<synchronous>, transform_indices = @transform_4, window_bounds = array<i64: 1, 512>}, {pipeline_mode = #tpu.pipeline_mode<synchronous>, transform_indices = @transform_5, window_bounds = array<i64: 512, 128>}, {pipeline_mode = #tpu.pipeline_mode<synchronous>, transform_indices = @transform_6, window_bounds = array<i64: 1, 128>}, {transform_indices = @transform_7, window_bounds = array<i64: 16, 128>}]} {
    %c0 = arith.constant 0 : index
    %c0_0 = arith.constant 0 : index
    %0 = vector.load %arg1[%c0, %c0_0] : memref<16x128xbf16, #tpu.memory_space<vmem>>, vector<16x128xbf16>
    %1 = arith.extf %0 : vector<16x128xbf16> to vector<16x128xf32>
    %cst = arith.constant dense<0.000000e+00> : vector<16xf32>
    %2 = vector.multi_reduction <add>, %1, %cst [1] : vector<16x128xf32> to vector<16xf32>
    %3 = vector.shape_cast %2 : vector<16xf32> to vector<16x1xf32>
    %cst_1 = arith.constant 1.280000e+02 : f32
    %4 = vector.broadcast %cst_1 : f32 to vector<16x1xf32>
    %5 = arith.divf %3, %4 : vector<16x1xf32>
    %6 = vector.broadcast %5 : vector<16x1xf32> to vector<16x128xf32>
    %7 = arith.subf %1, %6 : vector<16x128xf32>
    %8 = arith.mulf %7, %7 : vector<16x128xf32>
    %cst_2 = arith.constant dense<0.000000e+00> : vector<16xf32>
    %9 = vector.multi_reduction <add>, %8, %cst_2 [1] : vector<16x128xf32> to vector<16xf32>
    %10 = vector.shape_cast %9 : vector<16xf32> to vector<16x1xf32>
    %cst_3 = arith.constant 1.280000e+02 : f32
    %11 = vector.broadcast %cst_3 : f32 to vector<16x1xf32>
    %12 = arith.divf %10, %11 : vector<16x1xf32>
    %13 = vector.broadcast %5 : vector<16x1xf32> to vector<16x128xf32>
    %14 = arith.subf %1, %13 : vector<16x128xf32>
    %cst_4 = arith.constant 9.99999997E-7 : f32
    %15 = vector.broadcast %cst_4 : f32 to vector<16x1xf32>
    %16 = arith.addf %12, %15 : vector<16x1xf32>
    %17 = math.rsqrt %16 : vector<16x1xf32>
    %18 = vector.broadcast %17 : vector<16x1xf32> to vector<16x128xf32>
    %19 = arith.mulf %14, %18 : vector<16x128xf32>
    %c0_5 = arith.constant 0 : index
    %c0_6 = arith.constant 0 : index
    %20 = vector.load %arg2[%c0_5, %c0_6] : memref<1x128xf32, #tpu.memory_space<vmem>>, vector<1x128xf32>
    %21 = vector.broadcast %20 : vector<1x128xf32> to vector<16x128xf32>
    %22 = arith.mulf %19, %21 : vector<16x128xf32>
    %c0_7 = arith.constant 0 : index
    %c0_8 = arith.constant 0 : index
    %23 = vector.load %arg3[%c0_7, %c0_8] : memref<1x128xf32, #tpu.memory_space<vmem>>, vector<1x128xf32>
    %24 = vector.broadcast %23 : vector<1x128xf32> to vector<16x128xf32>
    %25 = arith.addf %22, %24 : vector<16x128xf32>
    %26 = arith.truncf %25 : vector<16x128xf32> to vector<16x128xbf16>
    %c0_9 = arith.constant 0 : index
    %c0_10 = arith.constant 0 : index
    %27 = vector.load %arg4[%c0_9, %c0_10] : memref<128x512xbf16, #tpu.memory_space<vmem>>, vector<128x512xbf16>
    %cst_11 = arith.constant dense<0.000000e+00> : vector<16x512xf32>
    %28 = tpu.matmul %26, %27, %cst_11 {dimension_numbers = #tpu.dot_dimension_numbers<[1], [0], [0], [1], [0, 0, 1, 1], [], []>} : vector<16x128xbf16>, vector<128x512xbf16>, vector<16x512xf32> -> vector<16x512xf32>
    %c0_12 = arith.constant 0 : index
    %c0_13 = arith.constant 0 : index
    %29 = vector.load %arg5[%c0_12, %c0_13] : memref<1x512xf32, #tpu.memory_space<vmem>>, vector<1x512xf32>
    %30 = vector.broadcast %29 : vector<1x512xf32> to vector<16x512xf32>
    %31 = arith.addf %28, %30 : vector<16x512xf32>
    %32 = arith.mulf %31, %31 : vector<16x512xf32>
    %33 = arith.mulf %31, %32 : vector<16x512xf32>
    %cst_14 = arith.constant 4.471500e-02 : f32
    %34 = vector.broadcast %cst_14 : f32 to vector<16x512xf32>
    %35 = arith.mulf %34, %33 : vector<16x512xf32>
    %36 = arith.addf %31, %35 : vector<16x512xf32>
    %cst_15 = arith.constant 0.797884583 : f32
    %37 = vector.broadcast %cst_15 : f32 to vector<16x512xf32>
    %38 = arith.mulf %37, %36 : vector<16x512xf32>
    %39 = math.tanh %38 : vector<16x512xf32>
    %cst_16 = arith.constant 1.000000e+00 : f32
    %40 = vector.broadcast %cst_16 : f32 to vector<16x512xf32>
    %41 = arith.addf %40, %39 : vector<16x512xf32>
    %cst_17 = arith.constant 5.000000e-01 : f32
    %42 = vector.broadcast %cst_17 : f32 to vector<16x512xf32>
    %43 = arith.mulf %42, %41 : vector<16x512xf32>
    %44 = arith.mulf %31, %43 : vector<16x512xf32>
    %45 = arith.truncf %44 : vector<16x512xf32> to vector<16x512xbf16>
    %c0_18 = arith.constant 0 : index
    %c0_19 = arith.constant 0 : index
    %46 = vector.load %arg6[%c0_18, %c0_19] : memref<512x128xbf16, #tpu.memory_space<vmem>>, vector<512x128xbf16>
    %cst_20 = arith.constant dense<0.000000e+00> : vector<16x128xf32>
    %47 = tpu.matmul %45, %46, %cst_20 {dimension_numbers = #tpu.dot_dimension_numbers<[1], [0], [0], [1], [0, 0, 1, 1], [], []>} : vector<16x512xbf16>, vector<512x128xbf16>, vector<16x128xf32> -> vector<16x128xf32>
    %c0_21 = arith.constant 0 : index
    %c0_22 = arith.constant 0 : index
    %48 = vector.load %arg7[%c0_21, %c0_22] : memref<1x128xf32, #tpu.memory_space<vmem>>, vector<1x128xf32>
    %49 = vector.broadcast %48 : vector<1x128xf32> to vector<16x128xf32>
    %50 = arith.addf %47, %49 : vector<16x128xf32>
    %51 = arith.addf %1, %50 : vector<16x128xf32>
    %52 = arith.truncf %51 : vector<16x128xf32> to vector<16x128xbf16>
    %c0_23 = arith.constant 0 : index
    %c0_24 = arith.constant 0 : index
    %53 = vector.load %arg8[%c0_23, %c0_24] : memref<16x128xbf16, #tpu.memory_space<vmem>>, vector<16x128xbf16>
    tpu.vector_store %arg8[%c0_23, %c0_24], %52 {strides = array<i32>} : memref<16x128xbf16, #tpu.memory_space<vmem>>, vector<16x128xbf16>,
    return
  }
  func.func @transform_0(%arg0: i32) -> (i32, i32) {
    %c0_i32 = arith.constant 0 : i32
    %c0_i32_0 = arith.constant 0 : i32
    return %arg0, %c0_i32 : i32, i32
  }
  func.func @transform_1(%arg0: i32) -> (i32, i32) {
    %c0_i32 = arith.constant 0 : i32
    %c0_i32_0 = arith.constant 0 : i32
    %c0_i32_1 = arith.constant 0 : i32
    return %c0_i32, %c0_i32_0 : i32, i32
  }
  func.func @transform_2(%arg0: i32) -> (i32, i32) {
    %c0_i32 = arith.constant 0 : i32
    %c0_i32_0 = arith.constant 0 : i32
    %c0_i32_1 = arith.constant 0 : i32
    return %c0_i32, %c0_i32_0 : i32, i32
  }
  func.func @transform_3(%arg0: i32) -> (i32, i32) {
    %c0_i32 = arith.constant 0 : i32
    %c0_i32_0 = arith.constant 0 : i32
    %c0_i32_1 = arith.constant 0 : i32
    return %c0_i32, %c0_i32_0 : i32, i32
  }
  func.func @transform_4(%arg0: i32) -> (i32, i32) {
    %c0_i32 = arith.constant 0 : i32
    %c0_i32_0 = arith.constant 0 : i32
    %c0_i32_1 = arith.constant 0 : i32
    return %c0_i32, %c0_i32_0 : i32, i32
  }
  func.func @transform_5(%arg0: i32) -> (i32, i32) {
    %c0_i32 = arith.constant 0 : i32
    %c0_i32_0 = arith.constant 0 : i32
    %c0_i32_1 = arith.constant 0 : i32
    return %c0_i32, %c0_i32_0 : i32, i32
  }
  func.func @transform_6(%arg0: i32) -> (i32, i32) {
    %c0_i32 = arith.constant 0 : i32
    %c0_i32_0 = arith.constant 0 : i32
    %c0_i32_1 = arith.constant 0 : i32
    return %c0_i32, %c0_i32_0 : i32, i32
  }
  func.func @transform_7(%arg0: i32) -> (i32, i32) {
    %c0_i32 = arith.constant 0 : i32
    %c0_i32_0 = arith.constant 0 : i32
    return %arg0, %c0_i32 : i32, i32
  }
}

module attributes {stable_mosaic.version = 11 : i64} {
  func.func @_attn_block_kernel(%arg0: i32, %arg1: memref<1x8x128xbf16, #tpu.memory_space<vmem>>, %arg2: memref<1x128xf32, #tpu.memory_space<vmem>>, %arg3: memref<1x128xf32, #tpu.memory_space<vmem>>, %arg4: memref<128x384xbf16, #tpu.memory_space<vmem>>, %arg5: memref<1x384xf32, #tpu.memory_space<vmem>>, %arg6: memref<128x128xbf16, #tpu.memory_space<vmem>>, %arg7: memref<1x128xf32, #tpu.memory_space<vmem>>, %arg8: memref<1x8x128xbf16, #tpu.memory_space<vmem>>) attributes {dimension_semantics = [#tpu.dimension_semantics<parallel>], iteration_bounds = array<i64: 2>, scalar_prefetch = 0 : i64, scratch_operands = 0 : i64, tpu.core_type = #tpu.core_type<tc>, window_params = [{transform_indices = @transform_0, window_bounds = array<i64: 1, 8, 128>}, {pipeline_mode = #tpu.pipeline_mode<synchronous>, transform_indices = @transform_1, window_bounds = array<i64: 1, 128>}, {pipeline_mode = #tpu.pipeline_mode<synchronous>, transform_indices = @transform_2, window_bounds = array<i64: 1, 128>}, {pipeline_mode = #tpu.pipeline_mode<synchronous>, transform_indices = @transform_3, window_bounds = array<i64: 128, 384>}, {pipeline_mode = #tpu.pipeline_mode<synchronous>, transform_indices = @transform_4, window_bounds = array<i64: 1, 384>}, {pipeline_mode = #tpu.pipeline_mode<synchronous>, transform_indices = @transform_5, window_bounds = array<i64: 128, 128>}, {pipeline_mode = #tpu.pipeline_mode<synchronous>, transform_indices = @transform_6, window_bounds = array<i64: 1, 128>}, {transform_indices = @transform_7, window_bounds = array<i64: 1, 8, 128>}]} {
    %c0 = arith.constant 0 : index
    %c0_0 = arith.constant 0 : index
    %c0_1 = arith.constant 0 : index
    %0 = vector.load %arg1[%c0, %c0_0, %c0_1] : memref<1x8x128xbf16, #tpu.memory_space<vmem>>, vector<1x8x128xbf16>
    %1 = vector.shape_cast %0 : vector<1x8x128xbf16> to vector<8x128xbf16>
    %2 = arith.extf %1 : vector<8x128xbf16> to vector<8x128xf32>
    %cst = arith.constant dense<0.000000e+00> : vector<8xf32>
    %3 = vector.multi_reduction <add>, %2, %cst [1] : vector<8x128xf32> to vector<8xf32>
    %4 = vector.shape_cast %3 : vector<8xf32> to vector<8x1xf32>
    %cst_2 = arith.constant 1.280000e+02 : f32
    %5 = vector.broadcast %cst_2 : f32 to vector<8x1xf32>
    %6 = arith.divf %4, %5 : vector<8x1xf32>
    %7 = vector.broadcast %6 : vector<8x1xf32> to vector<8x128xf32>
    %8 = arith.subf %2, %7 : vector<8x128xf32>
    %9 = arith.mulf %8, %8 : vector<8x128xf32>
    %cst_3 = arith.constant dense<0.000000e+00> : vector<8xf32>
    %10 = vector.multi_reduction <add>, %9, %cst_3 [1] : vector<8x128xf32> to vector<8xf32>
    %11 = vector.shape_cast %10 : vector<8xf32> to vector<8x1xf32>
    %cst_4 = arith.constant 1.280000e+02 : f32
    %12 = vector.broadcast %cst_4 : f32 to vector<8x1xf32>
    %13 = arith.divf %11, %12 : vector<8x1xf32>
    %14 = vector.broadcast %6 : vector<8x1xf32> to vector<8x128xf32>
    %15 = arith.subf %2, %14 : vector<8x128xf32>
    %cst_5 = arith.constant 9.99999997E-7 : f32
    %16 = vector.broadcast %cst_5 : f32 to vector<8x1xf32>
    %17 = arith.addf %13, %16 : vector<8x1xf32>
    %18 = math.rsqrt %17 : vector<8x1xf32>
    %19 = vector.broadcast %18 : vector<8x1xf32> to vector<8x128xf32>
    %20 = arith.mulf %15, %19 : vector<8x128xf32>
    %c0_6 = arith.constant 0 : index
    %c0_7 = arith.constant 0 : index
    %21 = vector.load %arg2[%c0_6, %c0_7] : memref<1x128xf32, #tpu.memory_space<vmem>>, vector<1x128xf32>
    %22 = vector.broadcast %21 : vector<1x128xf32> to vector<8x128xf32>
    %23 = arith.mulf %20, %22 : vector<8x128xf32>
    %c0_8 = arith.constant 0 : index
    %c0_9 = arith.constant 0 : index
    %24 = vector.load %arg3[%c0_8, %c0_9] : memref<1x128xf32, #tpu.memory_space<vmem>>, vector<1x128xf32>
    %25 = vector.broadcast %24 : vector<1x128xf32> to vector<8x128xf32>
    %26 = arith.addf %23, %25 : vector<8x128xf32>
    %27 = arith.truncf %26 : vector<8x128xf32> to vector<8x128xbf16>
    %c0_10 = arith.constant 0 : index
    %c0_11 = arith.constant 0 : index
    %28 = vector.load %arg4[%c0_10, %c0_11] : memref<128x384xbf16, #tpu.memory_space<vmem>>, vector<128x384xbf16>
    %cst_12 = arith.constant dense<0.000000e+00> : vector<8x384xf32>
    %29 = tpu.matmul %27, %28, %cst_12 {dimension_numbers = #tpu.dot_dimension_numbers<[1], [0], [0], [1], [0, 0, 1, 1], [], []>} : vector<8x128xbf16>, vector<128x384xbf16>, vector<8x384xf32> -> vector<8x384xf32>
    %c0_13 = arith.constant 0 : index
    %c0_14 = arith.constant 0 : index
    %30 = vector.load %arg5[%c0_13, %c0_14] : memref<1x384xf32, #tpu.memory_space<vmem>>, vector<1x384xf32>
    %31 = vector.broadcast %30 : vector<1x384xf32> to vector<8x384xf32>
    %32 = arith.addf %29, %31 : vector<8x384xf32>
    %33 = arith.truncf %32 : vector<8x384xf32> to vector<8x384xbf16>
    %34 = vector.extract_strided_slice %33 {offsets = [0, 0], sizes = [8, 32], strides = [1, 1]} : vector<8x384xbf16> to vector<8x32xbf16>
    %35 = vector.extract_strided_slice %33 {offsets = [0, 32], sizes = [8, 32], strides = [1, 1]} : vector<8x384xbf16> to vector<8x32xbf16>
    %36 = vector.extract_strided_slice %33 {offsets = [0, 64], sizes = [8, 32], strides = [1, 1]} : vector<8x384xbf16> to vector<8x32xbf16>
    %37 = vector.extract_strided_slice %33 {offsets = [0, 96], sizes = [8, 32], strides = [1, 1]} : vector<8x384xbf16> to vector<8x32xbf16>
    %38 = vector.shape_cast %34 : vector<8x32xbf16> to vector<1x8x32xbf16>
    %39 = vector.shape_cast %35 : vector<8x32xbf16> to vector<1x8x32xbf16>
    %40 = vector.shape_cast %36 : vector<8x32xbf16> to vector<1x8x32xbf16>
    %41 = vector.shape_cast %37 : vector<8x32xbf16> to vector<1x8x32xbf16>
    %42 = tpu.concatenate %38, %39, %40, %41 in 0 : vector<1x8x32xbf16>, vector<1x8x32xbf16>, vector<1x8x32xbf16>, vector<1x8x32xbf16> -> vector<4x8x32xbf16>
    %43 = vector.extract_strided_slice %33 {offsets = [0, 128], sizes = [8, 32], strides = [1, 1]} : vector<8x384xbf16> to vector<8x32xbf16>
    %44 = vector.extract_strided_slice %33 {offsets = [0, 160], sizes = [8, 32], strides = [1, 1]} : vector<8x384xbf16> to vector<8x32xbf16>
    %45 = vector.extract_strided_slice %33 {offsets = [0, 192], sizes = [8, 32], strides = [1, 1]} : vector<8x384xbf16> to vector<8x32xbf16>
    %46 = vector.extract_strided_slice %33 {offsets = [0, 224], sizes = [8, 32], strides = [1, 1]} : vector<8x384xbf16> to vector<8x32xbf16>
    %47 = vector.shape_cast %43 : vector<8x32xbf16> to vector<1x8x32xbf16>
    %48 = vector.shape_cast %44 : vector<8x32xbf16> to vector<1x8x32xbf16>
    %49 = vector.shape_cast %45 : vector<8x32xbf16> to vector<1x8x32xbf16>
    %50 = vector.shape_cast %46 : vector<8x32xbf16> to vector<1x8x32xbf16>
    %51 = tpu.concatenate %47, %48, %49, %50 in 0 : vector<1x8x32xbf16>, vector<1x8x32xbf16>, vector<1x8x32xbf16>, vector<1x8x32xbf16> -> vector<4x8x32xbf16>
    %52 = vector.extract_strided_slice %33 {offsets = [0, 256], sizes = [8, 32], strides = [1, 1]} : vector<8x384xbf16> to vector<8x32xbf16>
    %53 = vector.extract_strided_slice %33 {offsets = [0, 288], sizes = [8, 32], strides = [1, 1]} : vector<8x384xbf16> to vector<8x32xbf16>
    %54 = vector.extract_strided_slice %33 {offsets = [0, 320], sizes = [8, 32], strides = [1, 1]} : vector<8x384xbf16> to vector<8x32xbf16>
    %55 = vector.extract_strided_slice %33 {offsets = [0, 352], sizes = [8, 32], strides = [1, 1]} : vector<8x384xbf16> to vector<8x32xbf16>
    %56 = vector.shape_cast %52 : vector<8x32xbf16> to vector<1x8x32xbf16>
    %57 = vector.shape_cast %53 : vector<8x32xbf16> to vector<1x8x32xbf16>
    %58 = vector.shape_cast %54 : vector<8x32xbf16> to vector<1x8x32xbf16>
    %59 = vector.shape_cast %55 : vector<8x32xbf16> to vector<1x8x32xbf16>
    %60 = tpu.concatenate %56, %57, %58, %59 in 0 : vector<1x8x32xbf16>, vector<1x8x32xbf16>, vector<1x8x32xbf16>, vector<1x8x32xbf16> -> vector<4x8x32xbf16>
    "tpu.trace_start"() <{level = 10 : i32, message = "hqd,hkd->hqk"}> : () -> ()
    %cst_15 = arith.constant dense<0.000000e+00> : vector<4x8x8xf32>
    %61 = tpu.matmul %42, %51, %cst_15 {dimension_numbers = #tpu.dot_dimension_numbers<[2], [2], [1], [1], [0, 0, 0, 1, 1, 1], [0], [0]>} : vector<4x8x32xbf16>, vector<4x8x32xbf16>, vector<4x8x8xf32> -> vector<4x8x8xf32>
    "tpu.trace_stop"() : () -> ()
    %cst_16 = arith.constant 0.176776692 : f32
    %62 = vector.broadcast %cst_16 : f32 to vector<4x8x8xf32>
    %63 = arith.mulf %61, %62 : vector<4x8x8xf32>
    %64 = tpu.iota {dimensions = array<i32: 1>} : vector<1x8xi32>
    %c5_i32 = arith.constant 5 : i32
    %65 = vector.broadcast %c5_i32 : i32 to vector<1x8xi32>
    %66 = arith.cmpi slt, %64, %65 : vector<1x8xi32>
    %cst_17 = arith.constant -1.000000e+30 : f32
    %67 = vector.shape_cast %66 : vector<1x8xi1> to vector<1x1x8xi1>
    %68 = vector.broadcast %67 : vector<1x1x8xi1> to vector<4x8x8xi1>
    %69 = vector.broadcast %cst_17 : f32 to vector<4x8x8xf32>
    %70 = arith.select %68, %63, %69 : vector<4x8x8xi1>, vector<4x8x8xf32>
    %cst_18 = arith.constant dense<0xFF800000> : vector<4x8xf32>
    %71 = vector.multi_reduction <maximumf>, %70, %cst_18 [2] : vector<4x8x8xf32> to vector<4x8xf32>
    %72 = vector.shape_cast %71 : vector<4x8xf32> to vector<4x8x1xf32>
    %73 = vector.broadcast %72 : vector<4x8x1xf32> to vector<4x8x8xf32>
    %74 = arith.subf %70, %73 : vector<4x8x8xf32>
    %75 = math.exp %74 : vector<4x8x8xf32>
    %cst_19 = arith.constant dense<0.000000e+00> : vector<4x8xf32>
    %76 = vector.multi_reduction <add>, %75, %cst_19 [2] : vector<4x8x8xf32> to vector<4x8xf32>
    %77 = vector.shape_cast %76 : vector<4x8xf32> to vector<4x8x1xf32>
    %78 = tpu.reciprocal %77 {approx = true} : vector<4x8x1xf32> -> vector<4x8x1xf32>
    %79 = vector.broadcast %78 : vector<4x8x1xf32> to vector<4x8x8xf32>
    %80 = arith.mulf %75, %79 : vector<4x8x8xf32>
    %81 = arith.truncf %80 : vector<4x8x8xf32> to vector<4x8x8xbf16>
    "tpu.trace_start"() <{level = 10 : i32, message = "hqk,hkd->hqd"}> : () -> ()
    %cst_20 = arith.constant dense<0.000000e+00> : vector<4x8x32xf32>
    %82 = tpu.matmul %81, %60, %cst_20 {dimension_numbers = #tpu.dot_dimension_numbers<[2], [1], [1], [2], [0, 0, 0, 1, 1, 2], [0], [0]>} : vector<4x8x8xbf16>, vector<4x8x32xbf16>, vector<4x8x32xf32> -> vector<4x8x32xf32>
    "tpu.trace_stop"() : () -> ()
    %83 = arith.truncf %82 : vector<4x8x32xf32> to vector<4x8x32xbf16>
    %84 = vector.extract_strided_slice %83 {offsets = [0, 0, 0], sizes = [1, 8, 32], strides = [1, 1, 1]} : vector<4x8x32xbf16> to vector<1x8x32xbf16>
    %85 = vector.shape_cast %84 : vector<1x8x32xbf16> to vector<8x32xbf16>
    %86 = vector.extract_strided_slice %83 {offsets = [1, 0, 0], sizes = [1, 8, 32], strides = [1, 1, 1]} : vector<4x8x32xbf16> to vector<1x8x32xbf16>
    %87 = vector.shape_cast %86 : vector<1x8x32xbf16> to vector<8x32xbf16>
    %88 = vector.extract_strided_slice %83 {offsets = [2, 0, 0], sizes = [1, 8, 32], strides = [1, 1, 1]} : vector<4x8x32xbf16> to vector<1x8x32xbf16>
    %89 = vector.shape_cast %88 : vector<1x8x32xbf16> to vector<8x32xbf16>
    %90 = vector.extract_strided_slice %83 {offsets = [3, 0, 0], sizes = [1, 8, 32], strides = [1, 1, 1]} : vector<4x8x32xbf16> to vector<1x8x32xbf16>
    %91 = vector.shape_cast %90 : vector<1x8x32xbf16> to vector<8x32xbf16>
    %92 = tpu.concatenate %85, %87, %89, %91 in 1 : vector<8x32xbf16>, vector<8x32xbf16>, vector<8x32xbf16>, vector<8x32xbf16> -> vector<8x128xbf16>
    %c0_21 = arith.constant 0 : index
    %c0_22 = arith.constant 0 : index
    %93 = vector.load %arg6[%c0_21, %c0_22] : memref<128x128xbf16, #tpu.memory_space<vmem>>, vector<128x128xbf16>
    %cst_23 = arith.constant dense<0.000000e+00> : vector<8x128xf32>
    %94 = tpu.matmul %92, %93, %cst_23 {dimension_numbers = #tpu.dot_dimension_numbers<[1], [0], [0], [1], [0, 0, 1, 1], [], []>} : vector<8x128xbf16>, vector<128x128xbf16>, vector<8x128xf32> -> vector<8x128xf32>
    %c0_24 = arith.constant 0 : index
    %c0_25 = arith.constant 0 : index
    %95 = vector.load %arg7[%c0_24, %c0_25] : memref<1x128xf32, #tpu.memory_space<vmem>>, vector<1x128xf32>
    %96 = vector.broadcast %95 : vector<1x128xf32> to vector<8x128xf32>
    %97 = arith.addf %94, %96 : vector<8x128xf32>
    %98 = arith.addf %2, %97 : vector<8x128xf32>
    %99 = arith.truncf %98 : vector<8x128xf32> to vector<8x128xbf16>
    %c0_26 = arith.constant 0 : index
    %c0_27 = arith.constant 0 : index
    %c0_28 = arith.constant 0 : index
    %100 = vector.load %arg8[%c0_26, %c0_27, %c0_28] : memref<1x8x128xbf16, #tpu.memory_space<vmem>>, vector<1x8x128xbf16>
    %101 = vector.shape_cast %100 : vector<1x8x128xbf16> to vector<8x128xbf16>
    %102 = vector.shape_cast %99 : vector<8x128xbf16> to vector<1x8x128xbf16>
    tpu.vector_store %arg8[%c0_26, %c0_27, %c0_28], %102 {strides = array<i32>} : memref<1x8x128xbf16, #tpu.memory_space<vmem>>, vector<1x8x128xbf16>,
    return
  }
  func.func @transform_0(%arg0: i32) -> (i32, i32, i32) {
    %c0_i32 = arith.constant 0 : i32
    %c0_i32_0 = arith.constant 0 : i32
    %c0_i32_1 = arith.constant 0 : i32
    return %arg0, %c0_i32, %c0_i32_0 : i32, i32, i32
  }
  func.func @transform_1(%arg0: i32) -> (i32, i32) {
    %c0_i32 = arith.constant 0 : i32
    %c0_i32_0 = arith.constant 0 : i32
    %c0_i32_1 = arith.constant 0 : i32
    return %c0_i32, %c0_i32_0 : i32, i32
  }
  func.func @transform_2(%arg0: i32) -> (i32, i32) {
    %c0_i32 = arith.constant 0 : i32
    %c0_i32_0 = arith.constant 0 : i32
    %c0_i32_1 = arith.constant 0 : i32
    return %c0_i32, %c0_i32_0 : i32, i32
  }
  func.func @transform_3(%arg0: i32) -> (i32, i32) {
    %c0_i32 = arith.constant 0 : i32
    %c0_i32_0 = arith.constant 0 : i32
    %c0_i32_1 = arith.constant 0 : i32
    return %c0_i32, %c0_i32_0 : i32, i32
  }
  func.func @transform_4(%arg0: i32) -> (i32, i32) {
    %c0_i32 = arith.constant 0 : i32
    %c0_i32_0 = arith.constant 0 : i32
    %c0_i32_1 = arith.constant 0 : i32
    return %c0_i32, %c0_i32_0 : i32, i32
  }
  func.func @transform_5(%arg0: i32) -> (i32, i32) {
    %c0_i32 = arith.constant 0 : i32
    %c0_i32_0 = arith.constant 0 : i32
    %c0_i32_1 = arith.constant 0 : i32
    return %c0_i32, %c0_i32_0 : i32, i32
  }
  func.func @transform_6(%arg0: i32) -> (i32, i32) {
    %c0_i32 = arith.constant 0 : i32
    %c0_i32_0 = arith.constant 0 : i32
    %c0_i32_1 = arith.constant 0 : i32
    return %c0_i32, %c0_i32_0 : i32, i32
  }
  func.func @transform_7(%arg0: i32) -> (i32, i32, i32) {
    %c0_i32 = arith.constant 0 : i32
    %c0_i32_0 = arith.constant 0 : i32
    %c0_i32_1 = arith.constant 0 : i32
    return %arg0, %c0_i32, %c0_i32_0 : i32, i32, i32
  }
}

module attributes {stable_mosaic.version = 11 : i64} {
  func.func @_ln_linear_kernel(%arg0: i32, %arg1: memref<16x128xbf16, #tpu.memory_space<vmem>>, %arg2: memref<1x128xf32, #tpu.memory_space<vmem>>, %arg3: memref<1x128xf32, #tpu.memory_space<vmem>>, %arg4: memref<128x128xbf16, #tpu.memory_space<vmem>>, %arg5: memref<1x128xf32, #tpu.memory_space<vmem>>, %arg6: memref<16x128xbf16, #tpu.memory_space<vmem>>) attributes {dimension_semantics = [#tpu.dimension_semantics<parallel>], iteration_bounds = array<i64: 1>, scalar_prefetch = 0 : i64, scratch_operands = 0 : i64, tpu.core_type = #tpu.core_type<tc>, window_params = [{transform_indices = @transform_0, window_bounds = array<i64: 16, 128>}, {pipeline_mode = #tpu.pipeline_mode<synchronous>, transform_indices = @transform_1, window_bounds = array<i64: 1, 128>}, {pipeline_mode = #tpu.pipeline_mode<synchronous>, transform_indices = @transform_2, window_bounds = array<i64: 1, 128>}, {pipeline_mode = #tpu.pipeline_mode<synchronous>, transform_indices = @transform_3, window_bounds = array<i64: 128, 128>}, {pipeline_mode = #tpu.pipeline_mode<synchronous>, transform_indices = @transform_4, window_bounds = array<i64: 1, 128>}, {transform_indices = @transform_5, window_bounds = array<i64: 16, 128>}]} {
    %c0 = arith.constant 0 : index
    %c0_0 = arith.constant 0 : index
    %0 = vector.load %arg1[%c0, %c0_0] : memref<16x128xbf16, #tpu.memory_space<vmem>>, vector<16x128xbf16>
    %1 = arith.extf %0 : vector<16x128xbf16> to vector<16x128xf32>
    %cst = arith.constant dense<0.000000e+00> : vector<16xf32>
    %2 = vector.multi_reduction <add>, %1, %cst [1] : vector<16x128xf32> to vector<16xf32>
    %3 = vector.shape_cast %2 : vector<16xf32> to vector<16x1xf32>
    %cst_1 = arith.constant 1.280000e+02 : f32
    %4 = vector.broadcast %cst_1 : f32 to vector<16x1xf32>
    %5 = arith.divf %3, %4 : vector<16x1xf32>
    %6 = vector.broadcast %5 : vector<16x1xf32> to vector<16x128xf32>
    %7 = arith.subf %1, %6 : vector<16x128xf32>
    %8 = arith.mulf %7, %7 : vector<16x128xf32>
    %cst_2 = arith.constant dense<0.000000e+00> : vector<16xf32>
    %9 = vector.multi_reduction <add>, %8, %cst_2 [1] : vector<16x128xf32> to vector<16xf32>
    %10 = vector.shape_cast %9 : vector<16xf32> to vector<16x1xf32>
    %cst_3 = arith.constant 1.280000e+02 : f32
    %11 = vector.broadcast %cst_3 : f32 to vector<16x1xf32>
    %12 = arith.divf %10, %11 : vector<16x1xf32>
    %13 = vector.broadcast %5 : vector<16x1xf32> to vector<16x128xf32>
    %14 = arith.subf %1, %13 : vector<16x128xf32>
    %cst_4 = arith.constant 9.99999997E-7 : f32
    %15 = vector.broadcast %cst_4 : f32 to vector<16x1xf32>
    %16 = arith.addf %12, %15 : vector<16x1xf32>
    %17 = math.rsqrt %16 : vector<16x1xf32>
    %18 = vector.broadcast %17 : vector<16x1xf32> to vector<16x128xf32>
    %19 = arith.mulf %14, %18 : vector<16x128xf32>
    %c0_5 = arith.constant 0 : index
    %c0_6 = arith.constant 0 : index
    %20 = vector.load %arg2[%c0_5, %c0_6] : memref<1x128xf32, #tpu.memory_space<vmem>>, vector<1x128xf32>
    %21 = vector.broadcast %20 : vector<1x128xf32> to vector<16x128xf32>
    %22 = arith.mulf %19, %21 : vector<16x128xf32>
    %c0_7 = arith.constant 0 : index
    %c0_8 = arith.constant 0 : index
    %23 = vector.load %arg3[%c0_7, %c0_8] : memref<1x128xf32, #tpu.memory_space<vmem>>, vector<1x128xf32>
    %24 = vector.broadcast %23 : vector<1x128xf32> to vector<16x128xf32>
    %25 = arith.addf %22, %24 : vector<16x128xf32>
    %26 = arith.truncf %25 : vector<16x128xf32> to vector<16x128xbf16>
    %c0_9 = arith.constant 0 : index
    %c0_10 = arith.constant 0 : index
    %27 = vector.load %arg4[%c0_9, %c0_10] : memref<128x128xbf16, #tpu.memory_space<vmem>>, vector<128x128xbf16>
    %cst_11 = arith.constant dense<0.000000e+00> : vector<16x128xf32>
    %28 = tpu.matmul %26, %27, %cst_11 {dimension_numbers = #tpu.dot_dimension_numbers<[1], [0], [0], [1], [0, 0, 1, 1], [], []>} : vector<16x128xbf16>, vector<128x128xbf16>, vector<16x128xf32> -> vector<16x128xf32>
    %c0_12 = arith.constant 0 : index
    %c0_13 = arith.constant 0 : index
    %29 = vector.load %arg5[%c0_12, %c0_13] : memref<1x128xf32, #tpu.memory_space<vmem>>, vector<1x128xf32>
    %30 = vector.broadcast %29 : vector<1x128xf32> to vector<16x128xf32>
    %31 = arith.addf %28, %30 : vector<16x128xf32>
    %32 = arith.truncf %31 : vector<16x128xf32> to vector<16x128xbf16>
    %c0_14 = arith.constant 0 : index
    %c0_15 = arith.constant 0 : index
    %33 = vector.load %arg6[%c0_14, %c0_15] : memref<16x128xbf16, #tpu.memory_space<vmem>>, vector<16x128xbf16>
    tpu.vector_store %arg6[%c0_14, %c0_15], %32 {strides = array<i32>} : memref<16x128xbf16, #tpu.memory_space<vmem>>, vector<16x128xbf16>,
    return
  }
  func.func @transform_0(%arg0: i32) -> (i32, i32) {
    %c0_i32 = arith.constant 0 : i32
    %c0_i32_0 = arith.constant 0 : i32
    return %arg0, %c0_i32 : i32, i32
  }
  func.func @transform_1(%arg0: i32) -> (i32, i32) {
    %c0_i32 = arith.constant 0 : i32
    %c0_i32_0 = arith.constant 0 : i32
    %c0_i32_1 = arith.constant 0 : i32
    return %c0_i32, %c0_i32_0 : i32, i32
  }
  func.func @transform_2(%arg0: i32) -> (i32, i32) {
    %c0_i32 = arith.constant 0 : i32
    %c0_i32_0 = arith.constant 0 : i32
    %c0_i32_1 = arith.constant 0 : i32
    return %c0_i32, %c0_i32_0 : i32, i32
  }
  func.func @transform_3(%arg0: i32) -> (i32, i32) {
    %c0_i32 = arith.constant 0 : i32
    %c0_i32_0 = arith.constant 0 : i32
    %c0_i32_1 = arith.constant 0 : i32
    return %c0_i32, %c0_i32_0 : i32, i32
  }
  func.func @transform_4(%arg0: i32) -> (i32, i32) {
    %c0_i32 = arith.constant 0 : i32
    %c0_i32_0 = arith.constant 0 : i32
    %c0_i32_1 = arith.constant 0 : i32
    return %c0_i32, %c0_i32_0 : i32, i32
  }
  func.func @transform_5(%arg0: i32) -> (i32, i32) {
    %c0_i32 = arith.constant 0 : i32
    %c0_i32_0 = arith.constant 0 : i32
    return %arg0, %c0_i32 : i32, i32
  }
}

module attributes {stable_mosaic.version = 11 : i64} {
  func.func @_mlp_block_kernel(%arg0: i32, %arg1: memref<48x128xbf16, #tpu.memory_space<vmem>>, %arg2: memref<1x128xf32, #tpu.memory_space<vmem>>, %arg3: memref<1x128xf32, #tpu.memory_space<vmem>>, %arg4: memref<128x512xbf16, #tpu.memory_space<vmem>>, %arg5: memref<1x512xf32, #tpu.memory_space<vmem>>, %arg6: memref<512x128xbf16, #tpu.memory_space<vmem>>, %arg7: memref<1x128xf32, #tpu.memory_space<vmem>>, %arg8: memref<48x128xbf16, #tpu.memory_space<vmem>>) attributes {dimension_semantics = [#tpu.dimension_semantics<parallel>], iteration_bounds = array<i64: 1>, scalar_prefetch = 0 : i64, scratch_operands = 0 : i64, tpu.core_type = #tpu.core_type<tc>, window_params = [{transform_indices = @transform_0, window_bounds = array<i64: 48, 128>}, {pipeline_mode = #tpu.pipeline_mode<synchronous>, transform_indices = @transform_1, window_bounds = array<i64: 1, 128>}, {pipeline_mode = #tpu.pipeline_mode<synchronous>, transform_indices = @transform_2, window_bounds = array<i64: 1, 128>}, {pipeline_mode = #tpu.pipeline_mode<synchronous>, transform_indices = @transform_3, window_bounds = array<i64: 128, 512>}, {pipeline_mode = #tpu.pipeline_mode<synchronous>, transform_indices = @transform_4, window_bounds = array<i64: 1, 512>}, {pipeline_mode = #tpu.pipeline_mode<synchronous>, transform_indices = @transform_5, window_bounds = array<i64: 512, 128>}, {pipeline_mode = #tpu.pipeline_mode<synchronous>, transform_indices = @transform_6, window_bounds = array<i64: 1, 128>}, {transform_indices = @transform_7, window_bounds = array<i64: 48, 128>}]} {
    %c0 = arith.constant 0 : index
    %c0_0 = arith.constant 0 : index
    %0 = vector.load %arg1[%c0, %c0_0] : memref<48x128xbf16, #tpu.memory_space<vmem>>, vector<48x128xbf16>
    %1 = arith.extf %0 : vector<48x128xbf16> to vector<48x128xf32>
    %cst = arith.constant dense<0.000000e+00> : vector<48xf32>
    %2 = vector.multi_reduction <add>, %1, %cst [1] : vector<48x128xf32> to vector<48xf32>
    %3 = vector.shape_cast %2 : vector<48xf32> to vector<48x1xf32>
    %cst_1 = arith.constant 1.280000e+02 : f32
    %4 = vector.broadcast %cst_1 : f32 to vector<48x1xf32>
    %5 = arith.divf %3, %4 : vector<48x1xf32>
    %6 = vector.broadcast %5 : vector<48x1xf32> to vector<48x128xf32>
    %7 = arith.subf %1, %6 : vector<48x128xf32>
    %8 = arith.mulf %7, %7 : vector<48x128xf32>
    %cst_2 = arith.constant dense<0.000000e+00> : vector<48xf32>
    %9 = vector.multi_reduction <add>, %8, %cst_2 [1] : vector<48x128xf32> to vector<48xf32>
    %10 = vector.shape_cast %9 : vector<48xf32> to vector<48x1xf32>
    %cst_3 = arith.constant 1.280000e+02 : f32
    %11 = vector.broadcast %cst_3 : f32 to vector<48x1xf32>
    %12 = arith.divf %10, %11 : vector<48x1xf32>
    %13 = vector.broadcast %5 : vector<48x1xf32> to vector<48x128xf32>
    %14 = arith.subf %1, %13 : vector<48x128xf32>
    %cst_4 = arith.constant 9.99999997E-7 : f32
    %15 = vector.broadcast %cst_4 : f32 to vector<48x1xf32>
    %16 = arith.addf %12, %15 : vector<48x1xf32>
    %17 = math.rsqrt %16 : vector<48x1xf32>
    %18 = vector.broadcast %17 : vector<48x1xf32> to vector<48x128xf32>
    %19 = arith.mulf %14, %18 : vector<48x128xf32>
    %c0_5 = arith.constant 0 : index
    %c0_6 = arith.constant 0 : index
    %20 = vector.load %arg2[%c0_5, %c0_6] : memref<1x128xf32, #tpu.memory_space<vmem>>, vector<1x128xf32>
    %21 = vector.broadcast %20 : vector<1x128xf32> to vector<48x128xf32>
    %22 = arith.mulf %19, %21 : vector<48x128xf32>
    %c0_7 = arith.constant 0 : index
    %c0_8 = arith.constant 0 : index
    %23 = vector.load %arg3[%c0_7, %c0_8] : memref<1x128xf32, #tpu.memory_space<vmem>>, vector<1x128xf32>
    %24 = vector.broadcast %23 : vector<1x128xf32> to vector<48x128xf32>
    %25 = arith.addf %22, %24 : vector<48x128xf32>
    %26 = arith.truncf %25 : vector<48x128xf32> to vector<48x128xbf16>
    %c0_9 = arith.constant 0 : index
    %c0_10 = arith.constant 0 : index
    %27 = vector.load %arg4[%c0_9, %c0_10] : memref<128x512xbf16, #tpu.memory_space<vmem>>, vector<128x512xbf16>
    %cst_11 = arith.constant dense<0.000000e+00> : vector<48x512xf32>
    %28 = tpu.matmul %26, %27, %cst_11 {dimension_numbers = #tpu.dot_dimension_numbers<[1], [0], [0], [1], [0, 0, 1, 1], [], []>} : vector<48x128xbf16>, vector<128x512xbf16>, vector<48x512xf32> -> vector<48x512xf32>
    %c0_12 = arith.constant 0 : index
    %c0_13 = arith.constant 0 : index
    %29 = vector.load %arg5[%c0_12, %c0_13] : memref<1x512xf32, #tpu.memory_space<vmem>>, vector<1x512xf32>
    %30 = vector.broadcast %29 : vector<1x512xf32> to vector<48x512xf32>
    %31 = arith.addf %28, %30 : vector<48x512xf32>
    %32 = arith.mulf %31, %31 : vector<48x512xf32>
    %33 = arith.mulf %31, %32 : vector<48x512xf32>
    %cst_14 = arith.constant 4.471500e-02 : f32
    %34 = vector.broadcast %cst_14 : f32 to vector<48x512xf32>
    %35 = arith.mulf %34, %33 : vector<48x512xf32>
    %36 = arith.addf %31, %35 : vector<48x512xf32>
    %cst_15 = arith.constant 0.797884583 : f32
    %37 = vector.broadcast %cst_15 : f32 to vector<48x512xf32>
    %38 = arith.mulf %37, %36 : vector<48x512xf32>
    %39 = math.tanh %38 : vector<48x512xf32>
    %cst_16 = arith.constant 1.000000e+00 : f32
    %40 = vector.broadcast %cst_16 : f32 to vector<48x512xf32>
    %41 = arith.addf %40, %39 : vector<48x512xf32>
    %cst_17 = arith.constant 5.000000e-01 : f32
    %42 = vector.broadcast %cst_17 : f32 to vector<48x512xf32>
    %43 = arith.mulf %42, %41 : vector<48x512xf32>
    %44 = arith.mulf %31, %43 : vector<48x512xf32>
    %45 = arith.truncf %44 : vector<48x512xf32> to vector<48x512xbf16>
    %c0_18 = arith.constant 0 : index
    %c0_19 = arith.constant 0 : index
    %46 = vector.load %arg6[%c0_18, %c0_19] : memref<512x128xbf16, #tpu.memory_space<vmem>>, vector<512x128xbf16>
    %cst_20 = arith.constant dense<0.000000e+00> : vector<48x128xf32>
    %47 = tpu.matmul %45, %46, %cst_20 {dimension_numbers = #tpu.dot_dimension_numbers<[1], [0], [0], [1], [0, 0, 1, 1], [], []>} : vector<48x512xbf16>, vector<512x128xbf16>, vector<48x128xf32> -> vector<48x128xf32>
    %c0_21 = arith.constant 0 : index
    %c0_22 = arith.constant 0 : index
    %48 = vector.load %arg7[%c0_21, %c0_22] : memref<1x128xf32, #tpu.memory_space<vmem>>, vector<1x128xf32>
    %49 = vector.broadcast %48 : vector<1x128xf32> to vector<48x128xf32>
    %50 = arith.addf %47, %49 : vector<48x128xf32>
    %51 = arith.addf %1, %50 : vector<48x128xf32>
    %52 = arith.truncf %51 : vector<48x128xf32> to vector<48x128xbf16>
    %c0_23 = arith.constant 0 : index
    %c0_24 = arith.constant 0 : index
    %53 = vector.load %arg8[%c0_23, %c0_24] : memref<48x128xbf16, #tpu.memory_space<vmem>>, vector<48x128xbf16>
    tpu.vector_store %arg8[%c0_23, %c0_24], %52 {strides = array<i32>} : memref<48x128xbf16, #tpu.memory_space<vmem>>, vector<48x128xbf16>,
    return
  }
  func.func @transform_0(%arg0: i32) -> (i32, i32) {
    %c0_i32 = arith.constant 0 : i32
    %c0_i32_0 = arith.constant 0 : i32
    return %arg0, %c0_i32 : i32, i32
  }
  func.func @transform_1(%arg0: i32) -> (i32, i32) {
    %c0_i32 = arith.constant 0 : i32
    %c0_i32_0 = arith.constant 0 : i32
    %c0_i32_1 = arith.constant 0 : i32
    return %c0_i32, %c0_i32_0 : i32, i32
  }
  func.func @transform_2(%arg0: i32) -> (i32, i32) {
    %c0_i32 = arith.constant 0 : i32
    %c0_i32_0 = arith.constant 0 : i32
    %c0_i32_1 = arith.constant 0 : i32
    return %c0_i32, %c0_i32_0 : i32, i32
  }
  func.func @transform_3(%arg0: i32) -> (i32, i32) {
    %c0_i32 = arith.constant 0 : i32
    %c0_i32_0 = arith.constant 0 : i32
    %c0_i32_1 = arith.constant 0 : i32
    return %c0_i32, %c0_i32_0 : i32, i32
  }
  func.func @transform_4(%arg0: i32) -> (i32, i32) {
    %c0_i32 = arith.constant 0 : i32
    %c0_i32_0 = arith.constant 0 : i32
    %c0_i32_1 = arith.constant 0 : i32
    return %c0_i32, %c0_i32_0 : i32, i32
  }
  func.func @transform_5(%arg0: i32) -> (i32, i32) {
    %c0_i32 = arith.constant 0 : i32
    %c0_i32_0 = arith.constant 0 : i32
    %c0_i32_1 = arith.constant 0 : i32
    return %c0_i32, %c0_i32_0 : i32, i32
  }
  func.func @transform_6(%arg0: i32) -> (i32, i32) {
    %c0_i32 = arith.constant 0 : i32
    %c0_i32_0 = arith.constant 0 : i32
    %c0_i32_1 = arith.constant 0 : i32
    return %c0_i32, %c0_i32_0 : i32, i32
  }
  func.func @transform_7(%arg0: i32) -> (i32, i32) {
    %c0_i32 = arith.constant 0 : i32
    %c0_i32_0 = arith.constant 0 : i32
    return %arg0, %c0_i32 : i32, i32
  }
}

module attributes {stable_mosaic.version = 11 : i64} {
  func.func @_attn_block_kernel(%arg0: i32, %arg1: memref<1x24x128xbf16, #tpu.memory_space<vmem>>, %arg2: memref<1x128xf32, #tpu.memory_space<vmem>>, %arg3: memref<1x128xf32, #tpu.memory_space<vmem>>, %arg4: memref<128x384xbf16, #tpu.memory_space<vmem>>, %arg5: memref<1x384xf32, #tpu.memory_space<vmem>>, %arg6: memref<128x128xbf16, #tpu.memory_space<vmem>>, %arg7: memref<1x128xf32, #tpu.memory_space<vmem>>, %arg8: memref<1x24x128xbf16, #tpu.memory_space<vmem>>) attributes {dimension_semantics = [#tpu.dimension_semantics<parallel>], iteration_bounds = array<i64: 2>, scalar_prefetch = 0 : i64, scratch_operands = 0 : i64, tpu.core_type = #tpu.core_type<tc>, window_params = [{transform_indices = @transform_0, window_bounds = array<i64: 1, 24, 128>}, {pipeline_mode = #tpu.pipeline_mode<synchronous>, transform_indices = @transform_1, window_bounds = array<i64: 1, 128>}, {pipeline_mode = #tpu.pipeline_mode<synchronous>, transform_indices = @transform_2, window_bounds = array<i64: 1, 128>}, {pipeline_mode = #tpu.pipeline_mode<synchronous>, transform_indices = @transform_3, window_bounds = array<i64: 128, 384>}, {pipeline_mode = #tpu.pipeline_mode<synchronous>, transform_indices = @transform_4, window_bounds = array<i64: 1, 384>}, {pipeline_mode = #tpu.pipeline_mode<synchronous>, transform_indices = @transform_5, window_bounds = array<i64: 128, 128>}, {pipeline_mode = #tpu.pipeline_mode<synchronous>, transform_indices = @transform_6, window_bounds = array<i64: 1, 128>}, {transform_indices = @transform_7, window_bounds = array<i64: 1, 24, 128>}]} {
    %c0 = arith.constant 0 : index
    %c0_0 = arith.constant 0 : index
    %c0_1 = arith.constant 0 : index
    %0 = vector.load %arg1[%c0, %c0_0, %c0_1] : memref<1x24x128xbf16, #tpu.memory_space<vmem>>, vector<1x24x128xbf16>
    %1 = vector.shape_cast %0 : vector<1x24x128xbf16> to vector<24x128xbf16>
    %2 = arith.extf %1 : vector<24x128xbf16> to vector<24x128xf32>
    %cst = arith.constant dense<0.000000e+00> : vector<24xf32>
    %3 = vector.multi_reduction <add>, %2, %cst [1] : vector<24x128xf32> to vector<24xf32>
    %4 = vector.shape_cast %3 : vector<24xf32> to vector<24x1xf32>
    %cst_2 = arith.constant 1.280000e+02 : f32
    %5 = vector.broadcast %cst_2 : f32 to vector<24x1xf32>
    %6 = arith.divf %4, %5 : vector<24x1xf32>
    %7 = vector.broadcast %6 : vector<24x1xf32> to vector<24x128xf32>
    %8 = arith.subf %2, %7 : vector<24x128xf32>
    %9 = arith.mulf %8, %8 : vector<24x128xf32>
    %cst_3 = arith.constant dense<0.000000e+00> : vector<24xf32>
    %10 = vector.multi_reduction <add>, %9, %cst_3 [1] : vector<24x128xf32> to vector<24xf32>
    %11 = vector.shape_cast %10 : vector<24xf32> to vector<24x1xf32>
    %cst_4 = arith.constant 1.280000e+02 : f32
    %12 = vector.broadcast %cst_4 : f32 to vector<24x1xf32>
    %13 = arith.divf %11, %12 : vector<24x1xf32>
    %14 = vector.broadcast %6 : vector<24x1xf32> to vector<24x128xf32>
    %15 = arith.subf %2, %14 : vector<24x128xf32>
    %cst_5 = arith.constant 9.99999997E-7 : f32
    %16 = vector.broadcast %cst_5 : f32 to vector<24x1xf32>
    %17 = arith.addf %13, %16 : vector<24x1xf32>
    %18 = math.rsqrt %17 : vector<24x1xf32>
    %19 = vector.broadcast %18 : vector<24x1xf32> to vector<24x128xf32>
    %20 = arith.mulf %15, %19 : vector<24x128xf32>
    %c0_6 = arith.constant 0 : index
    %c0_7 = arith.constant 0 : index
    %21 = vector.load %arg2[%c0_6, %c0_7] : memref<1x128xf32, #tpu.memory_space<vmem>>, vector<1x128xf32>
    %22 = vector.broadcast %21 : vector<1x128xf32> to vector<24x128xf32>
    %23 = arith.mulf %20, %22 : vector<24x128xf32>
    %c0_8 = arith.constant 0 : index
    %c0_9 = arith.constant 0 : index
    %24 = vector.load %arg3[%c0_8, %c0_9] : memref<1x128xf32, #tpu.memory_space<vmem>>, vector<1x128xf32>
    %25 = vector.broadcast %24 : vector<1x128xf32> to vector<24x128xf32>
    %26 = arith.addf %23, %25 : vector<24x128xf32>
    %27 = arith.truncf %26 : vector<24x128xf32> to vector<24x128xbf16>
    %c0_10 = arith.constant 0 : index
    %c0_11 = arith.constant 0 : index
    %28 = vector.load %arg4[%c0_10, %c0_11] : memref<128x384xbf16, #tpu.memory_space<vmem>>, vector<128x384xbf16>
    %cst_12 = arith.constant dense<0.000000e+00> : vector<24x384xf32>
    %29 = tpu.matmul %27, %28, %cst_12 {dimension_numbers = #tpu.dot_dimension_numbers<[1], [0], [0], [1], [0, 0, 1, 1], [], []>} : vector<24x128xbf16>, vector<128x384xbf16>, vector<24x384xf32> -> vector<24x384xf32>
    %c0_13 = arith.constant 0 : index
    %c0_14 = arith.constant 0 : index
    %30 = vector.load %arg5[%c0_13, %c0_14] : memref<1x384xf32, #tpu.memory_space<vmem>>, vector<1x384xf32>
    %31 = vector.broadcast %30 : vector<1x384xf32> to vector<24x384xf32>
    %32 = arith.addf %29, %31 : vector<24x384xf32>
    %33 = arith.truncf %32 : vector<24x384xf32> to vector<24x384xbf16>
    %34 = vector.extract_strided_slice %33 {offsets = [0, 0], sizes = [24, 32], strides = [1, 1]} : vector<24x384xbf16> to vector<24x32xbf16>
    %35 = vector.extract_strided_slice %33 {offsets = [0, 32], sizes = [24, 32], strides = [1, 1]} : vector<24x384xbf16> to vector<24x32xbf16>
    %36 = vector.extract_strided_slice %33 {offsets = [0, 64], sizes = [24, 32], strides = [1, 1]} : vector<24x384xbf16> to vector<24x32xbf16>
    %37 = vector.extract_strided_slice %33 {offsets = [0, 96], sizes = [24, 32], strides = [1, 1]} : vector<24x384xbf16> to vector<24x32xbf16>
    %38 = vector.shape_cast %34 : vector<24x32xbf16> to vector<1x24x32xbf16>
    %39 = vector.shape_cast %35 : vector<24x32xbf16> to vector<1x24x32xbf16>
    %40 = vector.shape_cast %36 : vector<24x32xbf16> to vector<1x24x32xbf16>
    %41 = vector.shape_cast %37 : vector<24x32xbf16> to vector<1x24x32xbf16>
    %42 = tpu.concatenate %38, %39, %40, %41 in 0 : vector<1x24x32xbf16>, vector<1x24x32xbf16>, vector<1x24x32xbf16>, vector<1x24x32xbf16> -> vector<4x24x32xbf16>
    %43 = vector.extract_strided_slice %33 {offsets = [0, 128], sizes = [24, 32], strides = [1, 1]} : vector<24x384xbf16> to vector<24x32xbf16>
    %44 = vector.extract_strided_slice %33 {offsets = [0, 160], sizes = [24, 32], strides = [1, 1]} : vector<24x384xbf16> to vector<24x32xbf16>
    %45 = vector.extract_strided_slice %33 {offsets = [0, 192], sizes = [24, 32], strides = [1, 1]} : vector<24x384xbf16> to vector<24x32xbf16>
    %46 = vector.extract_strided_slice %33 {offsets = [0, 224], sizes = [24, 32], strides = [1, 1]} : vector<24x384xbf16> to vector<24x32xbf16>
    %47 = vector.shape_cast %43 : vector<24x32xbf16> to vector<1x24x32xbf16>
    %48 = vector.shape_cast %44 : vector<24x32xbf16> to vector<1x24x32xbf16>
    %49 = vector.shape_cast %45 : vector<24x32xbf16> to vector<1x24x32xbf16>
    %50 = vector.shape_cast %46 : vector<24x32xbf16> to vector<1x24x32xbf16>
    %51 = tpu.concatenate %47, %48, %49, %50 in 0 : vector<1x24x32xbf16>, vector<1x24x32xbf16>, vector<1x24x32xbf16>, vector<1x24x32xbf16> -> vector<4x24x32xbf16>
    %52 = vector.extract_strided_slice %33 {offsets = [0, 256], sizes = [24, 32], strides = [1, 1]} : vector<24x384xbf16> to vector<24x32xbf16>
    %53 = vector.extract_strided_slice %33 {offsets = [0, 288], sizes = [24, 32], strides = [1, 1]} : vector<24x384xbf16> to vector<24x32xbf16>
    %54 = vector.extract_strided_slice %33 {offsets = [0, 320], sizes = [24, 32], strides = [1, 1]} : vector<24x384xbf16> to vector<24x32xbf16>
    %55 = vector.extract_strided_slice %33 {offsets = [0, 352], sizes = [24, 32], strides = [1, 1]} : vector<24x384xbf16> to vector<24x32xbf16>
    %56 = vector.shape_cast %52 : vector<24x32xbf16> to vector<1x24x32xbf16>
    %57 = vector.shape_cast %53 : vector<24x32xbf16> to vector<1x24x32xbf16>
    %58 = vector.shape_cast %54 : vector<24x32xbf16> to vector<1x24x32xbf16>
    %59 = vector.shape_cast %55 : vector<24x32xbf16> to vector<1x24x32xbf16>
    %60 = tpu.concatenate %56, %57, %58, %59 in 0 : vector<1x24x32xbf16>, vector<1x24x32xbf16>, vector<1x24x32xbf16>, vector<1x24x32xbf16> -> vector<4x24x32xbf16>
    "tpu.trace_start"() <{level = 10 : i32, message = "hqd,hkd->hqk"}> : () -> ()
    %cst_15 = arith.constant dense<0.000000e+00> : vector<4x24x24xf32>
    %61 = tpu.matmul %42, %51, %cst_15 {dimension_numbers = #tpu.dot_dimension_numbers<[2], [2], [1], [1], [0, 0, 0, 1, 1, 1], [0], [0]>} : vector<4x24x32xbf16>, vector<4x24x32xbf16>, vector<4x24x24xf32> -> vector<4x24x24xf32>
    "tpu.trace_stop"() : () -> ()
    %cst_16 = arith.constant 0.176776692 : f32
    %62 = vector.broadcast %cst_16 : f32 to vector<4x24x24xf32>
    %63 = arith.mulf %61, %62 : vector<4x24x24xf32>
    %64 = tpu.iota {dimensions = array<i32: 1>} : vector<1x24xi32>
    %c17_i32 = arith.constant 17 : i32
    %65 = vector.broadcast %c17_i32 : i32 to vector<1x24xi32>
    %66 = arith.cmpi slt, %64, %65 : vector<1x24xi32>
    %cst_17 = arith.constant -1.000000e+30 : f32
    %67 = vector.shape_cast %66 : vector<1x24xi1> to vector<1x1x24xi1>
    %68 = vector.broadcast %67 : vector<1x1x24xi1> to vector<4x24x24xi1>
    %69 = vector.broadcast %cst_17 : f32 to vector<4x24x24xf32>
    %70 = arith.select %68, %63, %69 : vector<4x24x24xi1>, vector<4x24x24xf32>
    %cst_18 = arith.constant dense<0xFF800000> : vector<4x24xf32>
    %71 = vector.multi_reduction <maximumf>, %70, %cst_18 [2] : vector<4x24x24xf32> to vector<4x24xf32>
    %72 = vector.shape_cast %71 : vector<4x24xf32> to vector<4x24x1xf32>
    %73 = vector.broadcast %72 : vector<4x24x1xf32> to vector<4x24x24xf32>
    %74 = arith.subf %70, %73 : vector<4x24x24xf32>
    %75 = math.exp %74 : vector<4x24x24xf32>
    %cst_19 = arith.constant dense<0.000000e+00> : vector<4x24xf32>
    %76 = vector.multi_reduction <add>, %75, %cst_19 [2] : vector<4x24x24xf32> to vector<4x24xf32>
    %77 = vector.shape_cast %76 : vector<4x24xf32> to vector<4x24x1xf32>
    %78 = tpu.reciprocal %77 {approx = true} : vector<4x24x1xf32> -> vector<4x24x1xf32>
    %79 = vector.broadcast %78 : vector<4x24x1xf32> to vector<4x24x24xf32>
    %80 = arith.mulf %75, %79 : vector<4x24x24xf32>
    %81 = arith.truncf %80 : vector<4x24x24xf32> to vector<4x24x24xbf16>
    "tpu.trace_start"() <{level = 10 : i32, message = "hqk,hkd->hqd"}> : () -> ()
    %cst_20 = arith.constant dense<0.000000e+00> : vector<4x24x32xf32>
    %82 = tpu.matmul %81, %60, %cst_20 {dimension_numbers = #tpu.dot_dimension_numbers<[2], [1], [1], [2], [0, 0, 0, 1, 1, 2], [0], [0]>} : vector<4x24x24xbf16>, vector<4x24x32xbf16>, vector<4x24x32xf32> -> vector<4x24x32xf32>
    "tpu.trace_stop"() : () -> ()
    %83 = arith.truncf %82 : vector<4x24x32xf32> to vector<4x24x32xbf16>
    %84 = vector.extract_strided_slice %83 {offsets = [0, 0, 0], sizes = [1, 24, 32], strides = [1, 1, 1]} : vector<4x24x32xbf16> to vector<1x24x32xbf16>
    %85 = vector.shape_cast %84 : vector<1x24x32xbf16> to vector<24x32xbf16>
    %86 = vector.extract_strided_slice %83 {offsets = [1, 0, 0], sizes = [1, 24, 32], strides = [1, 1, 1]} : vector<4x24x32xbf16> to vector<1x24x32xbf16>
    %87 = vector.shape_cast %86 : vector<1x24x32xbf16> to vector<24x32xbf16>
    %88 = vector.extract_strided_slice %83 {offsets = [2, 0, 0], sizes = [1, 24, 32], strides = [1, 1, 1]} : vector<4x24x32xbf16> to vector<1x24x32xbf16>
    %89 = vector.shape_cast %88 : vector<1x24x32xbf16> to vector<24x32xbf16>
    %90 = vector.extract_strided_slice %83 {offsets = [3, 0, 0], sizes = [1, 24, 32], strides = [1, 1, 1]} : vector<4x24x32xbf16> to vector<1x24x32xbf16>
    %91 = vector.shape_cast %90 : vector<1x24x32xbf16> to vector<24x32xbf16>
    %92 = tpu.concatenate %85, %87, %89, %91 in 1 : vector<24x32xbf16>, vector<24x32xbf16>, vector<24x32xbf16>, vector<24x32xbf16> -> vector<24x128xbf16>
    %c0_21 = arith.constant 0 : index
    %c0_22 = arith.constant 0 : index
    %93 = vector.load %arg6[%c0_21, %c0_22] : memref<128x128xbf16, #tpu.memory_space<vmem>>, vector<128x128xbf16>
    %cst_23 = arith.constant dense<0.000000e+00> : vector<24x128xf32>
    %94 = tpu.matmul %92, %93, %cst_23 {dimension_numbers = #tpu.dot_dimension_numbers<[1], [0], [0], [1], [0, 0, 1, 1], [], []>} : vector<24x128xbf16>, vector<128x128xbf16>, vector<24x128xf32> -> vector<24x128xf32>
    %c0_24 = arith.constant 0 : index
    %c0_25 = arith.constant 0 : index
    %95 = vector.load %arg7[%c0_24, %c0_25] : memref<1x128xf32, #tpu.memory_space<vmem>>, vector<1x128xf32>
    %96 = vector.broadcast %95 : vector<1x128xf32> to vector<24x128xf32>
    %97 = arith.addf %94, %96 : vector<24x128xf32>
    %98 = arith.addf %2, %97 : vector<24x128xf32>
    %99 = arith.truncf %98 : vector<24x128xf32> to vector<24x128xbf16>
    %c0_26 = arith.constant 0 : index
    %c0_27 = arith.constant 0 : index
    %c0_28 = arith.constant 0 : index
    %100 = vector.load %arg8[%c0_26, %c0_27, %c0_28] : memref<1x24x128xbf16, #tpu.memory_space<vmem>>, vector<1x24x128xbf16>
    %101 = vector.shape_cast %100 : vector<1x24x128xbf16> to vector<24x128xbf16>
    %102 = vector.shape_cast %99 : vector<24x128xbf16> to vector<1x24x128xbf16>
    tpu.vector_store %arg8[%c0_26, %c0_27, %c0_28], %102 {strides = array<i32>} : memref<1x24x128xbf16, #tpu.memory_space<vmem>>, vector<1x24x128xbf16>,
    return
  }
  func.func @transform_0(%arg0: i32) -> (i32, i32, i32) {
    %c0_i32 = arith.constant 0 : i32
    %c0_i32_0 = arith.constant 0 : i32
    %c0_i32_1 = arith.constant 0 : i32
    return %arg0, %c0_i32, %c0_i32_0 : i32, i32, i32
  }
  func.func @transform_1(%arg0: i32) -> (i32, i32) {
    %c0_i32 = arith.constant 0 : i32
    %c0_i32_0 = arith.constant 0 : i32
    %c0_i32_1 = arith.constant 0 : i32
    return %c0_i32, %c0_i32_0 : i32, i32
  }
  func.func @transform_2(%arg0: i32) -> (i32, i32) {
    %c0_i32 = arith.constant 0 : i32
    %c0_i32_0 = arith.constant 0 : i32
    %c0_i32_1 = arith.constant 0 : i32
    return %c0_i32, %c0_i32_0 : i32, i32
  }
  func.func @transform_3(%arg0: i32) -> (i32, i32) {
    %c0_i32 = arith.constant 0 : i32
    %c0_i32_0 = arith.constant 0 : i32
    %c0_i32_1 = arith.constant 0 : i32
    return %c0_i32, %c0_i32_0 : i32, i32
  }
  func.func @transform_4(%arg0: i32) -> (i32, i32) {
    %c0_i32 = arith.constant 0 : i32
    %c0_i32_0 = arith.constant 0 : i32
    %c0_i32_1 = arith.constant 0 : i32
    return %c0_i32, %c0_i32_0 : i32, i32
  }
  func.func @transform_5(%arg0: i32) -> (i32, i32) {
    %c0_i32 = arith.constant 0 : i32
    %c0_i32_0 = arith.constant 0 : i32
    %c0_i32_1 = arith.constant 0 : i32
    return %c0_i32, %c0_i32_0 : i32, i32
  }
  func.func @transform_6(%arg0: i32) -> (i32, i32) {
    %c0_i32 = arith.constant 0 : i32
    %c0_i32_0 = arith.constant 0 : i32
    %c0_i32_1 = arith.constant 0 : i32
    return %c0_i32, %c0_i32_0 : i32, i32
  }
  func.func @transform_7(%arg0: i32) -> (i32, i32, i32) {
    %c0_i32 = arith.constant 0 : i32
    %c0_i32_0 = arith.constant 0 : i32
    %c0_i32_1 = arith.constant 0 : i32
    return %arg0, %c0_i32, %c0_i32_0 : i32, i32, i32
  }
}

module attributes {stable_mosaic.version = 11 : i64} {
  func.func @_ln_linear_kernel(%arg0: i32, %arg1: memref<48x128xbf16, #tpu.memory_space<vmem>>, %arg2: memref<1x128xf32, #tpu.memory_space<vmem>>, %arg3: memref<1x128xf32, #tpu.memory_space<vmem>>, %arg4: memref<128x48xbf16, #tpu.memory_space<vmem>>, %arg5: memref<1x48xf32, #tpu.memory_space<vmem>>, %arg6: memref<48x48xf32, #tpu.memory_space<vmem>>) attributes {dimension_semantics = [#tpu.dimension_semantics<parallel>], iteration_bounds = array<i64: 1>, scalar_prefetch = 0 : i64, scratch_operands = 0 : i64, tpu.core_type = #tpu.core_type<tc>, window_params = [{transform_indices = @transform_0, window_bounds = array<i64: 48, 128>}, {pipeline_mode = #tpu.pipeline_mode<synchronous>, transform_indices = @transform_1, window_bounds = array<i64: 1, 128>}, {pipeline_mode = #tpu.pipeline_mode<synchronous>, transform_indices = @transform_2, window_bounds = array<i64: 1, 128>}, {pipeline_mode = #tpu.pipeline_mode<synchronous>, transform_indices = @transform_3, window_bounds = array<i64: 128, 48>}, {pipeline_mode = #tpu.pipeline_mode<synchronous>, transform_indices = @transform_4, window_bounds = array<i64: 1, 48>}, {transform_indices = @transform_5, window_bounds = array<i64: 48, 48>}]} {
    %c0 = arith.constant 0 : index
    %c0_0 = arith.constant 0 : index
    %0 = vector.load %arg1[%c0, %c0_0] : memref<48x128xbf16, #tpu.memory_space<vmem>>, vector<48x128xbf16>
    %1 = arith.extf %0 : vector<48x128xbf16> to vector<48x128xf32>
    %cst = arith.constant dense<0.000000e+00> : vector<48xf32>
    %2 = vector.multi_reduction <add>, %1, %cst [1] : vector<48x128xf32> to vector<48xf32>
    %3 = vector.shape_cast %2 : vector<48xf32> to vector<48x1xf32>
    %cst_1 = arith.constant 1.280000e+02 : f32
    %4 = vector.broadcast %cst_1 : f32 to vector<48x1xf32>
    %5 = arith.divf %3, %4 : vector<48x1xf32>
    %6 = vector.broadcast %5 : vector<48x1xf32> to vector<48x128xf32>
    %7 = arith.subf %1, %6 : vector<48x128xf32>
    %8 = arith.mulf %7, %7 : vector<48x128xf32>
    %cst_2 = arith.constant dense<0.000000e+00> : vector<48xf32>
    %9 = vector.multi_reduction <add>, %8, %cst_2 [1] : vector<48x128xf32> to vector<48xf32>
    %10 = vector.shape_cast %9 : vector<48xf32> to vector<48x1xf32>
    %cst_3 = arith.constant 1.280000e+02 : f32
    %11 = vector.broadcast %cst_3 : f32 to vector<48x1xf32>
    %12 = arith.divf %10, %11 : vector<48x1xf32>
    %13 = vector.broadcast %5 : vector<48x1xf32> to vector<48x128xf32>
    %14 = arith.subf %1, %13 : vector<48x128xf32>
    %cst_4 = arith.constant 9.99999997E-7 : f32
    %15 = vector.broadcast %cst_4 : f32 to vector<48x1xf32>
    %16 = arith.addf %12, %15 : vector<48x1xf32>
    %17 = math.rsqrt %16 : vector<48x1xf32>
    %18 = vector.broadcast %17 : vector<48x1xf32> to vector<48x128xf32>
    %19 = arith.mulf %14, %18 : vector<48x128xf32>
    %c0_5 = arith.constant 0 : index
    %c0_6 = arith.constant 0 : index
    %20 = vector.load %arg2[%c0_5, %c0_6] : memref<1x128xf32, #tpu.memory_space<vmem>>, vector<1x128xf32>
    %21 = vector.broadcast %20 : vector<1x128xf32> to vector<48x128xf32>
    %22 = arith.mulf %19, %21 : vector<48x128xf32>
    %c0_7 = arith.constant 0 : index
    %c0_8 = arith.constant 0 : index
    %23 = vector.load %arg3[%c0_7, %c0_8] : memref<1x128xf32, #tpu.memory_space<vmem>>, vector<1x128xf32>
    %24 = vector.broadcast %23 : vector<1x128xf32> to vector<48x128xf32>
    %25 = arith.addf %22, %24 : vector<48x128xf32>
    %26 = arith.truncf %25 : vector<48x128xf32> to vector<48x128xbf16>
    %c0_9 = arith.constant 0 : index
    %c0_10 = arith.constant 0 : index
    %27 = vector.load %arg4[%c0_9, %c0_10] : memref<128x48xbf16, #tpu.memory_space<vmem>>, vector<128x48xbf16>
    %cst_11 = arith.constant dense<0.000000e+00> : vector<48x48xf32>
    %28 = tpu.matmul %26, %27, %cst_11 {dimension_numbers = #tpu.dot_dimension_numbers<[1], [0], [0], [1], [0, 0, 1, 1], [], []>} : vector<48x128xbf16>, vector<128x48xbf16>, vector<48x48xf32> -> vector<48x48xf32>
    %c0_12 = arith.constant 0 : index
    %c0_13 = arith.constant 0 : index
    %29 = vector.load %arg5[%c0_12, %c0_13] : memref<1x48xf32, #tpu.memory_space<vmem>>, vector<1x48xf32>
    %30 = vector.broadcast %29 : vector<1x48xf32> to vector<48x48xf32>
    %31 = arith.addf %28, %30 : vector<48x48xf32>
    %c0_14 = arith.constant 0 : index
    %c0_15 = arith.constant 0 : index
    %32 = vector.load %arg6[%c0_14, %c0_15] : memref<48x48xf32, #tpu.memory_space<vmem>>, vector<48x48xf32>
    tpu.vector_store %arg6[%c0_14, %c0_15], %31 {strides = array<i32>} : memref<48x48xf32, #tpu.memory_space<vmem>>, vector<48x48xf32>,
    return
  }
  func.func @transform_0(%arg0: i32) -> (i32, i32) {
    %c0_i32 = arith.constant 0 : i32
    %c0_i32_0 = arith.constant 0 : i32
    return %arg0, %c0_i32 : i32, i32
  }
  func.func @transform_1(%arg0: i32) -> (i32, i32) {
    %c0_i32 = arith.constant 0 : i32
    %c0_i32_0 = arith.constant 0 : i32
    %c0_i32_1 = arith.constant 0 : i32
    return %c0_i32, %c0_i32_0 : i32, i32
  }
  func.func @transform_2(%arg0: i32) -> (i32, i32) {
    %c0_i32 = arith.constant 0 : i32
    %c0_i32_0 = arith.constant 0 : i32
    %c0_i32_1 = arith.constant 0 : i32
    return %c0_i32, %c0_i32_0 : i32, i32
  }
  func.func @transform_3(%arg0: i32) -> (i32, i32) {
    %c0_i32 = arith.constant 0 : i32
    %c0_i32_0 = arith.constant 0 : i32
    %c0_i32_1 = arith.constant 0 : i32
    return %c0_i32, %c0_i32_0 : i32, i32
  }
  func.func @transform_4(%arg0: i32) -> (i32, i32) {
    %c0_i32 = arith.constant 0 : i32
    %c0_i32_0 = arith.constant 0 : i32
    %c0_i32_1 = arith.constant 0 : i32
    return %c0_i32, %c0_i32_0 : i32, i32
  }
  func.func @transform_5(%arg0: i32) -> (i32, i32) {
    %c0_i32 = arith.constant 0 : i32
    %c0_i32_0 = arith.constant 0 : i32
    return %arg0, %c0_i32 : i32, i32
  }
}

module attributes {stable_mosaic.version = 11 : i64} {
  func.func @_mae_loss_kernel(%arg0: i32, %arg1: memref<2x16x48xf32, #tpu.memory_space<vmem>>, %arg2: memref<2x16x48xf32, #tpu.memory_space<vmem>>, %arg3: memref<2x16xf32, #tpu.memory_space<vmem>>, %arg4: memref<1x2xf32, #tpu.memory_space<smem>>) attributes {dimension_semantics = [#tpu.dimension_semantics<arbitrary>], iteration_bounds = array<i64: 1>, scalar_prefetch = 0 : i64, scratch_operands = 0 : i64, tpu.core_type = #tpu.core_type<tc>, window_params = [{transform_indices = @transform_0, window_bounds = array<i64: 2, 16, 48>}, {transform_indices = @transform_1, window_bounds = array<i64: 2, 16, 48>}, {transform_indices = @transform_2, window_bounds = array<i64: 2, 16>}, {transform_indices = @transform_3, window_bounds = array<i64: 1, 2>}]} {
    %c0_i32 = arith.constant 0 : i32
    %0 = arith.cmpi eq, %arg0, %c0_i32 : i32
    %1 = arith.extui %0 : i1 to i32
    %c0_i32_0 = arith.constant 0 : i32
    %2 = arith.cmpi ne, %1, %c0_i32_0 : i32
    scf.if %2 {
      %cst_18 = arith.constant 0.000000e+00 : f32
      %c0_19 = arith.constant 0 : index
      %c0_20 = arith.constant 0 : index
      %26 = memref.load %arg4[%c0_19, %c0_20] : memref<1x2xf32, #tpu.memory_space<smem>>
      memref.store %cst_18, %arg4[%c0_19, %c0_20] : memref<1x2xf32, #tpu.memory_space<smem>>
      %cst_21 = arith.constant 0.000000e+00 : f32
      %c0_22 = arith.constant 0 : index
      %c1_23 = arith.constant 1 : index
      %27 = memref.load %arg4[%c0_22, %c1_23] : memref<1x2xf32, #tpu.memory_space<smem>>
      memref.store %cst_21, %arg4[%c0_22, %c1_23] : memref<1x2xf32, #tpu.memory_space<smem>>
    } else {
    }
    %c0 = arith.constant 0 : index
    %c0_1 = arith.constant 0 : index
    %c0_2 = arith.constant 0 : index
    %3 = vector.load %arg1[%c0, %c0_1, %c0_2] : memref<2x16x48xf32, #tpu.memory_space<vmem>>, vector<2x16x48xf32>
    %c0_3 = arith.constant 0 : index
    %c0_4 = arith.constant 0 : index
    %c0_5 = arith.constant 0 : index
    %4 = vector.load %arg2[%c0_3, %c0_4, %c0_5] : memref<2x16x48xf32, #tpu.memory_space<vmem>>, vector<2x16x48xf32>
    %5 = arith.subf %3, %4 : vector<2x16x48xf32>
    %6 = arith.mulf %5, %5 : vector<2x16x48xf32>
    %cst = arith.constant dense<0.000000e+00> : vector<2x16xf32>
    %7 = vector.multi_reduction <add>, %6, %cst [2] : vector<2x16x48xf32> to vector<2x16xf32>
    %cst_6 = arith.constant 4.800000e+01 : f32
    %8 = vector.broadcast %cst_6 : f32 to vector<2x16xf32>
    %9 = arith.divf %7, %8 : vector<2x16xf32>
    %c0_7 = arith.constant 0 : index
    %c0_8 = arith.constant 0 : index
    %10 = vector.load %arg3[%c0_7, %c0_8] : memref<2x16xf32, #tpu.memory_space<vmem>>, vector<2x16xf32>
    %c0_9 = arith.constant 0 : index
    %c0_10 = arith.constant 0 : index
    %11 = memref.load %arg4[%c0_9, %c0_10] : memref<1x2xf32, #tpu.memory_space<smem>>
    %12 = arith.mulf %9, %10 : vector<2x16xf32>
    %13 = vector.shape_cast %12 : vector<2x16xf32> to vector<1x2x16xf32>
    %cst_11 = arith.constant dense<0.000000e+00> : vector<1xf32>
    %14 = vector.multi_reduction <add>, %13, %cst_11 [1, 2] : vector<1x2x16xf32> to vector<1xf32>
    %15 = vector.shape_cast %14 : vector<1xf32> to vector<1x1x1xf32>
    %16 = vector.extract %15[0, 0, 0] : f32 from vector<1x1x1xf32>
    %17 = arith.addf %11, %16 : f32
    %c0_12 = arith.constant 0 : index
    %c0_13 = arith.constant 0 : index
    %18 = memref.load %arg4[%c0_12, %c0_13] : memref<1x2xf32, #tpu.memory_space<smem>>
    memref.store %17, %arg4[%c0_12, %c0_13] : memref<1x2xf32, #tpu.memory_space<smem>>
    %c0_14 = arith.constant 0 : index
    %c1 = arith.constant 1 : index
    %19 = memref.load %arg4[%c0_14, %c1] : memref<1x2xf32, #tpu.memory_space<smem>>
    %20 = vector.shape_cast %10 : vector<2x16xf32> to vector<1x2x16xf32>
    %cst_15 = arith.constant dense<0.000000e+00> : vector<1xf32>
    %21 = vector.multi_reduction <add>, %20, %cst_15 [1, 2] : vector<1x2x16xf32> to vector<1xf32>
    %22 = vector.shape_cast %21 : vector<1xf32> to vector<1x1x1xf32>
    %23 = vector.extract %22[0, 0, 0] : f32 from vector<1x1x1xf32>
    %24 = arith.addf %19, %23 : f32
    %c0_16 = arith.constant 0 : index
    %c1_17 = arith.constant 1 : index
    %25 = memref.load %arg4[%c0_16, %c1_17] : memref<1x2xf32, #tpu.memory_space<smem>>
    memref.store %24, %arg4[%c0_16, %c1_17] : memref<1x2xf32, #tpu.memory_space<smem>>
    return
  }
  func.func @transform_0(%arg0: i32) -> (i32, i32, i32) {
    %c0_i32 = arith.constant 0 : i32
    %c0_i32_0 = arith.constant 0 : i32
    %c0_i32_1 = arith.constant 0 : i32
    return %arg0, %c0_i32, %c0_i32_0 : i32, i32, i32
  }
  func.func @transform_1(%arg0: i32) -> (i32, i32, i32) {
    %c0_i32 = arith.constant 0 : i32
    %c0_i32_0 = arith.constant 0 : i32
    %c0_i32_1 = arith.constant 0 : i32
    return %arg0, %c0_i32, %c0_i32_0 : i32, i32, i32
  }
  func.func @transform_2(%arg0: i32) -> (i32, i32) {
    %c0_i32 = arith.constant 0 : i32
    %c0_i32_0 = arith.constant 0 : i32
    return %arg0, %c0_i32 : i32, i32
  }
  func.func @transform_3(%arg0: i32) -> (i32, i32) {
    %c0_i32 = arith.constant 0 : i32
    %c0_i32_0 = arith.constant 0 : i32
    %c0_i32_1 = arith.constant 0 : i32
    return %c0_i32, %c0_i32_0 : i32, i32
  }
}

</mosaic_0001>

<bundles_post_ra>
// kernel: mae_forward.12
= control target key start
LH: loop header
LB: loop body
LE: loop exit
PB: predicated region body
PF: predicated region fallthrough
CT: control target
= control target key end

     0   :  { %vm52_vm0 = vcmask 392192   ;;  %s225_s1 = inlined_call_operand.vmem [shape: bf16[48,128], index: 1, kind: input, shape index: {}]   ;;  %s226_s0 = inlined_call_operand.vmem [shape: f32[32,48], index: 0, kind: input, shape index: {}]   ;;  %s227_s2 = inlined_call_operand.vmem [shape: f32[1,128], index: 2, kind: input, shape index: {}]   ;;  %s228_s3 = inlined_call_operand.vmem [shape: bf16[32,128], index: 3, kind: output, shape index: {}]  }
   0x1   :  { %v172_v0 = vld [vmem:[%s225_s1 + $0x10] sm:$0xff]   ;;  %v173_v1 = vld [vmem:[%s225_s1 + $0x8] sm:$0xff]   ;;  %v15_v2 = vld [vmem:[%s226_s0] sm:$0xff] }
   0x2   :  { %162 = vmatprep.subr.bf16.mxu0 %v172_v0  ;;  %v16_v3 = vld [vmem:[%s226_s0 + $0x8] sm:$0xff]  ;;  %v174_v4 = vld [vmem:[%s225_s1] sm:$0xff]   ;;  %v17_v6 = vld [vmem:[%s226_s0 + $0x10] sm:$0xff] }
   0x3   :  { %163 = vmatpush3.bf16.msra.mxu0 %v172_v0  ;;  %v19_v5 = vpack.c.bf16 %v16_v3, %v15_v2  ;;  %v18_v7 = vld [vmem:[%s226_s0 + $0x18] sm:$0xff]  ;;  %v132_v10 = vld [vmem:[%s227_s2] ss:$0 sm:$0xff] }
   0x4   :  { %164 = vmatprep.subr.bf16.mxu0 %v173_v1  ;;  %v20_v8 = vpack.c.bf16 %v18_v7, %v17_v6 }
   0x5   :  { %168 = vmatprep.mubr.msk.bf16.mxu0 %vm52_vm0, %v19_v5 }
   0x7   :  { %165 = vmatpush3.bf16.msra.mxu0 %v173_v1 }
   0x8   :  { %166 = vmatprep.subr.bf16.mxu0 %v174_v4 }
   0xb   :  { %167 = vmatpush3.bf16.msra.mxu0 %v174_v4 }
   0xe   :  { %169 = vmatmul.mubr.msk.bf16.vlgmr.msra.gmra.mxu0 %vm52_vm0, %v20_v8 }
  0xce   :  { %v170_v9 = vpop.f32.mrf.mxu0 }
  0xcf   :  { %v102_v13 = vadd.f32 %v170_v9, %v132_v10 }
  0xd0   :  { %v93_v11 = vpop.f32.mrf.mxu0 }
  0xd1   :  { %v94_v16 = vadd.f32 %v132_v10, %v93_v11 }
  0xd2   :  { %v171_v12 = vpop.f32.mrf.mxu0 }
  0xd3   :  { %v105_v14 = vadd.f32 %v171_v12, %v132_v10 }
  0xd4   :  { %v96_v15 = vpop.f32.mrf.mxu0 }
  0xd5   :  { %v154_v17 = vpack.c.bf16 %v105_v14, %v102_v13  ;;  %v97_v18 = vadd.f32 %v132_v10, %v96_v15 }
  0xd7   :  { %156 = vst [vmem:[%s228_s3 + $0x8] sm:$0xff] %v154_v17   ;;  %v149_v19 = vpack.c.bf16 %v97_v18, %v94_v16 }
  0xd9   :  { %150 = vst [vmem:[%s228_s3] sm:$0xff] %v149_v19  }

// kernel: mae_forward.17
= control target key start
LH: loop header
LB: loop body
LE: loop exit
PB: predicated region body
PF: predicated region fallthrough
CT: control target
= control target key end

     0   :  { %v260_v3 = vmov 0.0   ;;  %vm261_vm0 = vmmov 0   ;;  %s331_s0 = inlined_call_operand.vmem [shape: bf16[16,128], index: 0, kind: input, shape index: {}]   ;;  %s332_s3 = inlined_call_operand.vmem [shape: bf16[128,128], index: 3, kind: input, shape index: {}]   ;;  %s333_s1 = inlined_call_operand.vmem [shape: f32[1,128], index: 1, kind: input, shape index: {}]   ;;  %s334_s2 = inlined_call_operand.vmem [shape: f32[1,128], index: 2, kind: input, shape index: {}]   ;;  %s335_s4 = inlined_call_operand.vmem [shape: f32[1,128], index: 4, kind: input, shape index: {}]   ;;  %s336_s5 = inlined_call_operand.vmem [shape: bf16[16,128], index: 5, kind: output, shape index: {}]  }
   0x1   :  { %v209_v0 = vld [vmem:[%s331_s0] sm:$0xff]   ;;  %226 = vmatprep.subr.bf16.mxu0 %v260_v3  ;;  %v248_v4 = vld [vmem:[%s332_s3 + $0x38] sm:$0xff]   ;;  %v249_v13 = vld [vmem:[%s332_s3 + $0x30] sm:$0xff]   ;;  %242 = vmatprep.mubr.msk.bf16.mxu0 %vm261_vm0, %v260_v3 }
   0x2   :  { %v210_v1 = vunpack.c.l.bf16 %v209_v0  ;;  %v211_v2 = vunpack.c.h.bf16 %v209_v0  ;;  %227 = vmatpush3.bf16.msra.mxu0 %v248_v4  ;;  %v250_v14 = vld [vmem:[%s332_s3 + $0x28] sm:$0xff]   ;;  %v251_v15 = vld [vmem:[%s332_s3 + $0x20] sm:$0xff]   ;;  %v252_v16 = vld [vmem:[%s332_s3 + $0x18] sm:$0xff]  }
   0x3   :  { %228 = vmatprep.subr.bf16.mxu0 %v260_v3  ;;  %v253_v17 = vld [vmem:[%s332_s3 + $0x10] sm:$0xff]   ;;  %v254_v18 = vld [vmem:[%s332_s3 + $0x8] sm:$0xff]   ;;  %v255_v19 = vld [vmem:[%s332_s3] sm:$0xff]  }
   0x4   :  { %25 = vadd.xlane.f32.xlu0 %v210_v1  ;;  %v193_v28 = vld [vmem:[%s333_s1] ss:$0 sm:$0xff] }
   0x5   :  { %v194_v32 = vld [vmem:[%s334_s2] ss:$0 sm:$0xff] }
   0x6   :  { %229 = vmatpush3.bf16.msra.mxu0 %v249_v13  ;;  %v195_v38 = vld [vmem:[%s335_s4] ss:$0 sm:$0xff] }
   0x7   :  { %230 = vmatprep.subr.bf16.mxu0 %v260_v3 }
   0x8   :  { %27 = vadd.xlane.f32.xlu0 %v211_v2 }
   0xa   :  { %231 = vmatpush3.bf16.msra.mxu0 %v250_v14 }
   0xb   :  { %232 = vmatprep.subr.bf16.mxu0 %v260_v3 }
   0xe   :  { %233 = vmatpush3.bf16.msra.mxu0 %v251_v15 }
   0xf   :  { %234 = vmatprep.subr.bf16.mxu0 %v260_v3 }
  0x12   :  { %235 = vmatpush3.bf16.msra.mxu0 %v252_v16 }
  0x13   :  { %236 = vmatprep.subr.bf16.mxu0 %v260_v3 }
  0x16   :  { %237 = vmatpush3.bf16.msra.mxu0 %v253_v17 }
  0x17   :  { %238 = vmatprep.subr.bf16.mxu0 %v260_v3 }
  0x1a   :  { %239 = vmatpush3.bf16.msra.mxu0 %v254_v18 }
  0x1b   :  { %240 = vmatprep.subr.bf16.mxu0 %v260_v3 }
  0x1e   :  { %241 = vmatpush3.bf16.msra.mxu0 %v255_v19 }
  0x8d   :  { %v26_v5 = vpop.xlane.xlu0 %25 }
  0x8e   :  { %v30_v6 = vmul.f32 0.0078125, %v26_v5 }
  0x90   :  { %v32_v7 = vsub.f32 %v210_v1, %v30_v6 }
  0x91   :  { %v28_v8 = vpop.xlane.xlu0 %27 }
  0x92   :  { %v31_v9 = vmul.f32 0.0078125, %v28_v8  ;;  %v34_v10 = vmul.f32 %v32_v7, %v32_v7 }
  0x94   :  { %v33_v11 = vsub.f32 %v211_v2, %v31_v9  ;;  %36 = vadd.xlane.f32.xlu1 %v34_v10 }
  0x96   :  { %v35_v12 = vmul.f32 %v33_v11, %v33_v11 }
  0x98   :  { %38 = vadd.xlane.f32.xlu1 %v35_v12 }
 0x11d   :  { %v37_v20 = vpop.xlane.xlu1 %36 }
 0x11e   :  { %v40_v21 = vmul.f32 0.0078125, %v37_v20 }
 0x120   :  { %v42_v22 = vadd.f32 1e-06, %v40_v21 }
 0x121   :  { %v39_v23 = vpop.xlane.xlu1 %38 }
 0x122   :  { %256 = vrsqrt.f32 %v42_v22  ;;  %v41_v24 = vmul.f32 0.0078125, %v39_v23 }
 0x124   :  { %v43_v25 = vadd.f32 1e-06, %v41_v24 }
 0x126   :  { %258 = vrsqrt.f32 %v43_v25 }
 0x12f   :  { %v257_v26 = vpop.eup %256 }
 0x130   :  { %v46_v27 = vmul.f32 %v257_v26, %v32_v7 }
 0x132   :  { %v55_v31 = vmul.f32 %v193_v28, %v46_v27 }
 0x133   :  { %v259_v29 = vpop.eup %258 }
 0x134   :  { %v47_v30 = vmul.f32 %v259_v29, %v33_v11  ;;  %v64_v34 = vadd.f32 %v194_v32, %v55_v31 }
 0x136   :  { %v56_v33 = vmul.f32 %v193_v28, %v47_v30 }
 0x138   :  { %v65_v35 = vadd.f32 %v194_v32, %v56_v33 }
 0x13a   :  { %v66_v36 = vpack.c.bf16 %v65_v35, %v64_v34 }
 0x13c   :  { %243 = vmatmul.mubr.bf16.vlgmr.msra.gmra.mxu0 %v66_v36 }
 0x1fc   :  { %v172_v37 = vpop.f32.mrf.mxu0 }
 0x1fd   :  { %v173_v41 = vadd.f32 %v195_v38, %v172_v37 }
 0x1fe   :  { %v244_v39 = vpop.f32.mrf.mxu0 }
 0x200   :  { %v175_v40 = vpop.f32.mrf.mxu0 }
 0x201   :  { %v176_v42 = vadd.f32 %v195_v38, %v175_v40 }
 0x202   :  { %v245_v43 = vpop.f32.mrf.mxu0 }
 0x203   :  { %v215_v44 = vpack.c.bf16 %v176_v42, %v173_v41 }
 0x205   :  { %216 = vst [vmem:[%s336_s5] sm:$0xff] %v215_v44  }

// kernel: mae_forward.14
= control target key start
LH: loop header
LB: loop body
LE: loop exit
PB: predicated region body
PF: predicated region fallthrough
CT: control target
= control target key end

     0   :  { %v1035_v37 = vmov 0   ;;  %s1362_s0 = inlined_call_operand.vmem [shape: bf16[16,128], index: 0, kind: input, shape index: {}]   ;;  %s1363_s3 = inlined_call_operand.vmem [shape: bf16[128,512], index: 3, kind: input, shape index: {}]   ;;  %s1364_s1 = inlined_call_operand.vmem [shape: f32[1,128], index: 1, kind: input, shape index: {}]   ;;  %s1365_s2 = inlined_call_operand.vmem [shape: f32[1,128], index: 2, kind: input, shape index: {}]   ;;  %s1366_s5 = inlined_call_operand.vmem [shape: bf16[512,128], index: 5, kind: input, shape index: {}]   ;;  %s1367_s4 = inlined_call_operand.vmem [shape: f32[1,512], index: 4, kind: input, shape index: {}]   ;;  %s1368_s6 = inlined_call_operand.vmem [shape: f32[1,128], index: 6, kind: input, shape index: {}]   ;;  %s1369_s7 = inlined_call_operand.vmem [shape: bf16[16,128], index: 7, kind: output, shape index: {}]  }
   0x1   :  { %v882_v0 = vld [vmem:[%s1362_s0] sm:$0xff]   ;;  %v937_v4 = vld [vmem:[%s1363_s3 + $0xec] ss:$16 sps:$4 sm:$0xff]   ;;  %v940_v6 = vld [vmem:[%s1363_s3 + $0xe8] ss:$16 sps:$4 sm:$0xff]   ;;  %319 = vmatprep.mubr.bf16.mxu0 %v1035_v37  ;;  %362 = vmatprep.mubr.bf16.mxu1 %v1035_v37 }
   0x2   :  { %v1079_v1 = vunpack.c.l.bf16 %v882_v0  ;;  %v1082_v2 = vunpack.c.h.bf16 %v882_v0  ;;  %v935_v3 = vld [vmem:[%s1363_s3 + $0xe4] ss:$16 sps:$4 sm:$0xff]   ;;  %v939_v5 = vld [vmem:[%s1363_s3 + $0xe0] ss:$16 sps:$4 sm:$0xff]   ;;  %330 = vmatprep.subr.bf16.mxu1 %v937_v4  ;;  %v943_v16 = vld [vmem:[%s1363_s3 + $0xcc] ss:$16 sps:$4 sm:$0xff]  }
   0x3   :  { %287 = vmatprep.subr.bf16.mxu0 %v935_v3  ;;  %331 = vmatpush1.bf16.msra.mxu1 %v940_v6  ;;  %v941_v15 = vld [vmem:[%s1363_s3 + $0xc4] ss:$16 sps:$4 sm:$0xff]   ;;  %v945_v17 = vld [vmem:[%s1363_s3 + $0xc0] ss:$16 sps:$4 sm:$0xff]   ;;  %v946_v18 = vld [vmem:[%s1363_s3 + $0xc8] ss:$16 sps:$4 sm:$0xff]  }
   0x4   :  { %31 = vadd.xlane.f32.xlu0 %v1079_v1  ;;  %288 = vmatpush1.bf16.msra.mxu0 %v939_v5  ;;  %v947_v19 = vld [vmem:[%s1363_s3 + $0xa4] ss:$16 sps:$4 sm:$0xff]   ;;  %v949_v20 = vld [vmem:[%s1363_s3 + $0xac] ss:$16 sps:$4 sm:$0xff]   ;;  %v951_v21 = vld [vmem:[%s1363_s3 + $0xa0] ss:$16 sps:$4 sm:$0xff]  }
   0x5   :  { %289 = vmatprep.subr.bf16.mxu0 %v941_v15  ;;  %332 = vmatprep.subr.bf16.mxu1 %v943_v16  ;;  %v952_v22 = vld [vmem:[%s1363_s3 + $0xa8] ss:$16 sps:$4 sm:$0xff]   ;;  %v953_v23 = vld [vmem:[%s1363_s3 + $0x84] ss:$16 sps:$4 sm:$0xff]   ;;  %v955_v24 = vld [vmem:[%s1363_s3 + $0x8c] ss:$16 sps:$4 sm:$0xff]  }
   0x6   :  { %v957_v25 = vld [vmem:[%s1363_s3 + $0x80] ss:$16 sps:$4 sm:$0xff]   ;;  %v958_v26 = vld [vmem:[%s1363_s3 + $0x88] ss:$16 sps:$4 sm:$0xff]   ;;  %v959_v27 = vld [vmem:[%s1363_s3 + $0x64] ss:$16 sps:$4 sm:$0xff]  }
   0x7   :  { %333 = vmatpush1.bf16.msra.mxu1 %v946_v18  ;;  %v961_v28 = vld [vmem:[%s1363_s3 + $0x6c] ss:$16 sps:$4 sm:$0xff]   ;;  %v963_v29 = vld [vmem:[%s1363_s3 + $0x60] ss:$16 sps:$4 sm:$0xff]   ;;  %v964_v30 = vld [vmem:[%s1363_s3 + $0x68] ss:$16 sps:$4 sm:$0xff]  }
   0x8   :  { %33 = vadd.xlane.f32.xlu0 %v1082_v2  ;;  %290 = vmatpush1.bf16.msra.mxu0 %v945_v17  ;;  %v965_v31 = vld [vmem:[%s1363_s3 + $0x44] ss:$16 sps:$4 sm:$0xff]   ;;  %v967_v32 = vld [vmem:[%s1363_s3 + $0x4c] ss:$16 sps:$4 sm:$0xff]   ;;  %v969_v33 = vld [vmem:[%s1363_s3 + $0x40] ss:$16 sps:$4 sm:$0xff]  }
   0x9   :  { %291 = vmatprep.subr.bf16.mxu0 %v947_v19  ;;  %334 = vmatprep.subr.bf16.mxu1 %v949_v20  ;;  %v970_v34 = vld [vmem:[%s1363_s3 + $0x48] ss:$16 sps:$4 sm:$0xff]   ;;  %v971_v35 = vld [vmem:[%s1363_s3 + $0x24] ss:$16 sps:$4 sm:$0xff]   ;;  %v973_v36 = vld [vmem:[%s1363_s3 + $0x2c] ss:$16 sps:$4 sm:$0xff]  }
   0xa   :  { %v975_v38 = vld [vmem:[%s1363_s3 + $0x20] ss:$16 sps:$4 sm:$0xff]   ;;  %v976_v39 = vld [vmem:[%s1363_s3 + $0x28] ss:$16 sps:$4 sm:$0xff]   ;;  %v977_v40 = vld [vmem:[%s1363_s3 + $0x4] ss:$16 sps:$4 sm:$0xff]  }
   0xb   :  { %335 = vmatpush1.bf16.msra.mxu1 %v952_v22  ;;  %v979_v41 = vld [vmem:[%s1363_s3 + $0xc] ss:$16 sps:$4 sm:$0xff]   ;;  %v981_v42 = vld [vmem:[%s1363_s3] ss:$16 sps:$4 sm:$0xff]   ;;  %v982_v43 = vld [vmem:[%s1363_s3 + $0x8] ss:$16 sps:$4 sm:$0xff]  }
   0xc   :  { %292 = vmatpush1.bf16.msra.mxu0 %v951_v21  ;;  %336 = vmatprep.subr.bf16.mxu1 %v955_v24  ;;  %v810_v52 = vld [vmem:[%s1364_s1] ss:$0 sm:$0xff]  ;;  %v983_v61 = vld [vmem:[%s1366_s5 + $0x78] sm:$0xff]   ;;  %v987_v3 = vld [vmem:[%s1366_s5 + $0x70] sm:$0xff]  }
   0xd   :  { %293 = vmatprep.subr.bf16.mxu0 %v953_v23  ;;  %v811_v56 = vld [vmem:[%s1365_s2] ss:$0 sm:$0xff]  ;;  %v984_v62 = vld [vmem:[%s1366_s5 + $0xf8] sm:$0xff]   ;;  %v988_v4 = vld [vmem:[%s1366_s5 + $0xf0] sm:$0xff]  }
   0xe   :  { %v985_v63 = vld [vmem:[%s1366_s5 + $0x38] sm:$0xff]   ;;  %v989_v5 = vld [vmem:[%s1366_s5 + $0x30] sm:$0xff]   ;;  %v1007_v23 = vld [vmem:[%s1366_s5 + $0x48] sm:$0xff]  }
   0xf   :  { %337 = vmatpush1.bf16.msra.mxu1 %v958_v26  ;;  %v986_v0 = vld [vmem:[%s1366_s5 + $0xb8] sm:$0xff]   ;;  %v990_v6 = vld [vmem:[%s1366_s5 + $0xb0] sm:$0xff]   ;;  %v1008_v24 = vld [vmem:[%s1366_s5 + $0xc8] sm:$0xff]  }
  0x10   :  { %294 = vmatpush1.bf16.msra.mxu0 %v957_v25  ;;  %338 = vmatprep.subr.bf16.mxu1 %v961_v28  ;;  %v999_v15 = vld [vmem:[%s1366_s5 + $0x58] sm:$0xff]   ;;  %v1003_v19 = vld [vmem:[%s1366_s5 + $0x50] sm:$0xff]   ;;  %v1009_v25 = vld [vmem:[%s1366_s5 + $0x8] sm:$0xff]  }
  0x11   :  { %295 = vmatprep.subr.bf16.mxu0 %v959_v27  ;;  %v1000_v16 = vld [vmem:[%s1366_s5 + $0xd8] sm:$0xff]   ;;  %v1004_v20 = vld [vmem:[%s1366_s5 + $0xd0] sm:$0xff]   ;;  %v1010_v26 = vld [vmem:[%s1366_s5 + $0x88] sm:$0xff]  }
  0x12   :  { %v1001_v17 = vld [vmem:[%s1366_s5 + $0x18] sm:$0xff]   ;;  %v1005_v21 = vld [vmem:[%s1366_s5 + $0x10] sm:$0xff]   ;;  %v1011_v27 = vld [vmem:[%s1366_s5 + $0x40] sm:$0xff]  }
  0x13   :  { %339 = vmatpush1.bf16.msra.mxu1 %v964_v30  ;;  %v1002_v18 = vld [vmem:[%s1366_s5 + $0x98] sm:$0xff]   ;;  %v1006_v22 = vld [vmem:[%s1366_s5 + $0x90] sm:$0xff]   ;;  %v1012_v28 = vld [vmem:[%s1366_s5 + $0xc0] sm:$0xff]  }
  0x14   :  { %296 = vmatpush1.bf16.msra.mxu0 %v963_v29  ;;  %340 = vmatprep.subr.bf16.mxu1 %v967_v32  ;;  %v1013_v29 = vld [vmem:[%s1366_s5] sm:$0xff]  }
  0x15   :  { %297 = vmatprep.subr.bf16.mxu0 %v965_v31  ;;  %v1014_v30 = vld [vmem:[%s1366_s5 + $0x80] sm:$0xff]   ;;  %v107_v31 = vlaneseq }
  0x17   :  { %341 = vmatpush1.bf16.msra.mxu1 %v970_v34  ;;  %v108_v32 = vshrl.u32 %v107_v31, 7 }
  0x18   :  { %298 = vmatpush1.bf16.msra.mxu0 %v969_v33  ;;  %342 = vmatprep.subr.bf16.mxu1 %v973_v36 }
  0x19   :  { %299 = vmatprep.subr.bf16.mxu0 %v971_v35  ;;  %v109_v33 = vsub.s32 0, %v108_v32  ;;  %v117_v34 = vsub.s32 2, %v108_v32  ;;  %v105_v35 = vld [vmem:[%s1367_s4] sm:$0xf]  ;;  %v113_v36 = vsub.s32 1, %v108_v32  ;;  %v121_v37 = vsub.s32 3, %v108_v32 }
  0x1b   :  { %343 = vmatpush1.bf16.msra.mxu1 %v976_v39  ;;  %v118_v39 = vrot.slane %v105_v35, %v117_v34 }
  0x1c   :  { %300 = vmatpush1.bf16.msra.mxu0 %v975_v38  ;;  %344 = vmatprep.subr.bf16.mxu1 %v979_v41  ;;  %v110_v38 = vrot.slane %v105_v35, %v109_v33  ;;  %v122_v41 = vrot.slane %v105_v35, %v121_v37 }
  0x1d   :  { %301 = vmatprep.subr.bf16.mxu0 %v977_v40  ;;  %v114_v40 = vrot.slane %v105_v35, %v113_v36 }
  0x1f   :  { %345 = vmatpush1.bf16.msra.mxu1 %v982_v43 }
  0x20   :  { %302 = vmatpush1.bf16.msra.mxu0 %v981_v42  ;;  %912 = vmatprep.subr.bf16.mxu1 %v984_v62 }
  0x21   :  { %890 = vmatprep.subr.bf16.mxu0 %v983_v61 }
  0x8d   :  { %v32_v7 = vpop.xlane.xlu0 %31 }
  0x8e   :  { %v36_v8 = vmul.f32 0.0078125, %v32_v7  ;;  %v991_v7 = vld [vmem:[%s1366_s5 + $0x68] sm:$0xff]  }
  0x90   :  { %v1098_v9 = vsub.f32 %v1079_v1, %v36_v8  ;;  %v992_v8 = vld [vmem:[%s1366_s5 + $0xe8] sm:$0xff]  }
  0x91   :  { %v34_v10 = vpop.xlane.xlu0 %33 }
  0x92   :  { %v37_v11 = vmul.f32 0.0078125, %v34_v10  ;;  %v40_v12 = vmul.f32 %v1098_v9, %v1098_v9  ;;  %v994_v10 = vld [vmem:[%s1366_s5 + $0xa8] sm:$0xff]  }
  0x94   :  { %v1103_v13 = vsub.f32 %v1082_v2, %v37_v11  ;;  %42 = vadd.xlane.f32.xlu1 %v40_v12  ;;  %v995_v11 = vld [vmem:[%s1366_s5 + $0x60] sm:$0xff]  }
  0x95   :  { %v996_v12 = vld [vmem:[%s1366_s5 + $0xe0] sm:$0xff]  }
  0x96   :  { %v41_v14 = vmul.f32 %v1103_v13, %v1103_v13 }
  0x98   :  { %44 = vadd.xlane.f32.xlu1 %v41_v14  ;;  %v998_v14 = vld [vmem:[%s1366_s5 + $0xa0] sm:$0xff]  }
 0x11d   :  { %v43_v44 = vpop.xlane.xlu1 %42 }
 0x11e   :  { %v46_v45 = vmul.f32 0.0078125, %v43_v44 }
 0x120   :  { %v48_v46 = vadd.f32 1e-06, %v46_v45 }
 0x121   :  { %v45_v47 = vpop.xlane.xlu1 %44 }
 0x122   :  { %1015 = vrsqrt.f32 %v48_v46  ;;  %v47_v48 = vmul.f32 0.0078125, %v45_v47 }
 0x124   :  { %v49_v49 = vadd.f32 1e-06, %v47_v48 }
 0x126   :  { %1017 = vrsqrt.f32 %v49_v49 }
 0x12f   :  { %v1016_v50 = vpop.eup %1015 }
 0x130   :  { %v52_v51 = vmul.f32 %v1016_v50, %v1098_v9  ;;  %v993_v9 = vld [vmem:[%s1366_s5 + $0x28] sm:$0xff]  }
 0x132   :  { %v61_v55 = vmul.f32 %v810_v52, %v52_v51 }
 0x133   :  { %v1018_v53 = vpop.eup %1017 }
 0x134   :  { %v53_v54 = vmul.f32 %v1018_v53, %v1103_v13  ;;  %v70_v58 = vadd.f32 %v811_v56, %v61_v55  ;;  %v997_v13 = vld [vmem:[%s1366_s5 + $0x20] sm:$0xff]  }
 0x136   :  { %v62_v57 = vmul.f32 %v810_v52, %v53_v54 }
 0x138   :  { %v71_v59 = vadd.f32 %v811_v56, %v62_v57 }
 0x13a   :  { %v72_v60 = vpack.c.bf16 %v71_v59, %v70_v58 }
 0x13c   :  { %320 = vmatmul.mubr.bf16.vlgmr.msra.gmra.mxu0 %v72_v60  ;;  %363 = vmatmul.mubr.bf16.vlgmr.msra.gmra.mxu1 %v72_v60 }
 0x13d   :  { %891 = vmatpush3.bf16.msra.mxu0 %v985_v63  ;;  %913 = vmatpush3.bf16.msra.mxu1 %v986_v0 }
 0x13e   :  { %892 = vmatprep.subr.bf16.mxu0 %v987_v3  ;;  %914 = vmatprep.subr.bf16.mxu1 %v988_v4 }
 0x141   :  { %893 = vmatpush3.bf16.msra.mxu0 %v989_v5  ;;  %915 = vmatpush3.bf16.msra.mxu1 %v990_v6 }
 0x142   :  { %894 = vmatprep.subr.bf16.mxu0 %v991_v7  ;;  %916 = vmatprep.subr.bf16.mxu1 %v992_v8 }
 0x145   :  { %895 = vmatpush3.bf16.msra.mxu0 %v993_v9  ;;  %917 = vmatpush3.bf16.msra.mxu1 %v994_v10 }
 0x146   :  { %896 = vmatprep.subr.bf16.mxu0 %v995_v11  ;;  %918 = vmatprep.subr.bf16.mxu1 %v996_v12 }
 0x149   :  { %897 = vmatpush3.bf16.msra.mxu0 %v997_v13  ;;  %919 = vmatpush3.bf16.msra.mxu1 %v998_v14 }
 0x14a   :  { %898 = vmatprep.subr.bf16.mxu0 %v999_v15  ;;  %920 = vmatprep.subr.bf16.mxu1 %v1000_v16 }
 0x14d   :  { %899 = vmatpush3.bf16.msra.mxu0 %v1001_v17  ;;  %921 = vmatpush3.bf16.msra.mxu1 %v1002_v18 }
 0x14e   :  { %900 = vmatprep.subr.bf16.mxu0 %v1003_v19  ;;  %922 = vmatprep.subr.bf16.mxu1 %v1004_v20 }
 0x151   :  { %901 = vmatpush3.bf16.msra.mxu0 %v1005_v21  ;;  %923 = vmatpush3.bf16.msra.mxu1 %v1006_v22 }
 0x152   :  { %902 = vmatprep.subr.bf16.mxu0 %v1007_v23  ;;  %924 = vmatprep.subr.bf16.mxu1 %v1008_v24 }
 0x155   :  { %903 = vmatpush3.bf16.msra.mxu0 %v1009_v25  ;;  %925 = vmatpush3.bf16.msra.mxu1 %v1010_v26 }
 0x156   :  { %904 = vmatprep.subr.bf16.mxu0 %v1011_v27  ;;  %926 = vmatprep.subr.bf16.mxu1 %v1012_v28 }
 0x159   :  { %905 = vmatpush3.bf16.msra.mxu0 %v1013_v29  ;;  %927 = vmatpush3.bf16.msra.mxu1 %v1014_v30 }
 0x1fc   :  { %v321_v42 = vpop.f32.mrf.mxu0  ;;  %v364_v43 = vpop.f32.mrf.mxu1 }
 0x1fd   :  { %v1298_v44 = vadd.f32 %v321_v42, %v110_v38  ;;  %v1300_v45 = vadd.f32 %v364_v43, %v118_v39 }
 0x1fe   :  { %v323_v46 = vpop.f32.mrf.mxu0  ;;  %v366_v47 = vpop.f32.mrf.mxu1 }
 0x1ff   :  { %v373_v48 = vmul.f32 %v1298_v44, %v1298_v44  ;;  %v375_v49 = vmul.f32 %v1300_v45, %v1300_v45  ;;  %v1306_v50 = vadd.f32 %v323_v46, %v114_v40  ;;  %v1308_v51 = vadd.f32 %v366_v47, %v122_v41 }
 0x200   :  { %v325_v52 = vpop.f32.mrf.mxu0  ;;  %v368_v53 = vpop.f32.mrf.mxu1 }
 0x201   :  { %v381_v54 = vmul.f32 %v373_v48, %v1298_v44  ;;  %v383_v55 = vmul.f32 %v375_v49, %v1300_v45  ;;  %v374_v56 = vmul.f32 %v1306_v50, %v1306_v50  ;;  %v376_v57 = vmul.f32 %v1308_v51, %v1308_v51 }
 0x202   :  { %v1316_v58 = vadd.f32 %v325_v52, %v110_v38  ;;  %v1318_v59 = vadd.f32 %v368_v53, %v118_v39  ;;  %v327_v60 = vpop.f32.mrf.mxu0  ;;  %v370_v61 = vpop.f32.mrf.mxu1 }
 0x203   :  { %v389_v62 = vmul.f32 0.044715, %v381_v54  ;;  %v391_v63 = vmul.f32 0.044715, %v383_v55  ;;  %v382_v0 = vmul.f32 %v374_v56, %v1306_v50  ;;  %v384_v3 = vmul.f32 %v376_v57, %v1308_v51 }
 0x204   :  { %v377_v4 = vmul.f32 %v1316_v58, %v1316_v58  ;;  %v379_v5 = vmul.f32 %v1318_v59, %v1318_v59  ;;  %v1326_v6 = vadd.f32 %v327_v60, %v114_v40  ;;  %v1328_v7 = vadd.f32 %v370_v61, %v122_v41 }
 0x205   :  { %v397_v8 = vadd.f32 %v389_v62, %v1298_v44  ;;  %v399_v9 = vadd.f32 %v391_v63, %v1300_v45  ;;  %v390_v10 = vmul.f32 0.044715, %v382_v0  ;;  %v392_v11 = vmul.f32 0.044715, %v384_v3 }
 0x206   :  { %v385_v12 = vmul.f32 %v377_v4, %v1316_v58  ;;  %v387_v13 = vmul.f32 %v379_v5, %v1318_v59  ;;  %v378_v14 = vmul.f32 %v1326_v6, %v1326_v6  ;;  %v380_v15 = vmul.f32 %v1328_v7, %v1328_v7 }
 0x207   :  { %v405_v16 = vmul.f32 0.7978846, %v397_v8  ;;  %v407_v17 = vmul.f32 0.7978846, %v399_v9  ;;  %v398_v18 = vadd.f32 %v390_v10, %v1306_v50  ;;  %v400_v19 = vadd.f32 %v392_v11, %v1308_v51 }
 0x208   :  { %v393_v20 = vmul.f32 0.044715, %v385_v12  ;;  %v395_v21 = vmul.f32 0.044715, %v387_v13  ;;  %v386_v22 = vmul.f32 %v378_v14, %v1326_v6  ;;  %v388_v23 = vmul.f32 %v380_v15, %v1328_v7 }
 0x209   :  { %1019 = vtanh.f32 %v405_v16  ;;  %v406_v24 = vmul.f32 0.7978846, %v398_v18  ;;  %v408_v25 = vmul.f32 0.7978846, %v400_v19 }
 0x20a   :  { %1021 = vtanh.f32 %v407_v17  ;;  %v401_v26 = vadd.f32 %v393_v20, %v1316_v58  ;;  %v403_v27 = vadd.f32 %v395_v21, %v1318_v59  ;;  %v394_v28 = vmul.f32 0.044715, %v386_v22 }
 0x20b   :  { %1023 = vtanh.f32 %v406_v24  ;;  %v396_v29 = vmul.f32 0.044715, %v388_v23 }
 0x20c   :  { %1025 = vtanh.f32 %v408_v25  ;;  %v409_v30 = vmul.f32 0.7978846, %v401_v26  ;;  %v411_v31 = vmul.f32 0.7978846, %v403_v27  ;;  %v402_v32 = vadd.f32 %v394_v28, %v1326_v6 }
 0x20d   :  { %v404_v33 = vadd.f32 %v396_v29, %v1328_v7 }
 0x20e   :  { %1027 = vtanh.f32 %v409_v30  ;;  %v410_v34 = vmul.f32 0.7978846, %v402_v32 }
 0x20f   :  { %1029 = vtanh.f32 %v411_v31  ;;  %v412_v35 = vmul.f32 0.7978846, %v404_v33 }
 0x210   :  { %1031 = vtanh.f32 %v410_v34 }
 0x211   :  { %1033 = vtanh.f32 %v412_v35 }
 0x216   :  { %v1020_v36 = vpop.eup %1019 }
 0x217   :  { %v1022_v37 = vpop.eup %1021  ;;  %v421_v42 = vadd.f32 1.0, %v1020_v36 }
 0x218   :  { %v1024_v38 = vpop.eup %1023  ;;  %v423_v47 = vadd.f32 1.0, %v1022_v37 }
 0x219   :  { %v1026_v39 = vpop.eup %1025  ;;  %v422_v40 = vadd.f32 1.0, %v1024_v38  ;;  %v429_v57 = vmul.f32 0.5, %v421_v42 }
 0x21a   :  { %v424_v43 = vadd.f32 1.0, %v1026_v39  ;;  %v431_v63 = vmul.f32 0.5, %v423_v47 }
 0x21b   :  { %v1028_v41 = vpop.eup %1027  ;;  %v430_v56 = vmul.f32 0.5, %v422_v40  ;;  %v437_v10 = vmul.f32 %v429_v57, %v1298_v44  ;;  %v844_v44 = vld [vmem:[%s1368_s6] ss:$0 sm:$0xff] }
 0x21c   :  { %v1030_v46 = vpop.eup %1029  ;;  %v425_v48 = vadd.f32 1.0, %v1028_v41  ;;  %v432_v62 = vmul.f32 0.5, %v424_v43  ;;  %v439_v13 = vmul.f32 %v431_v63, %v1300_v45 }
 0x21d   :  { %v1032_v49 = vpop.eup %1031  ;;  %v427_v52 = vadd.f32 1.0, %v1030_v46  ;;  %v438_v8 = vmul.f32 %v430_v56, %v1306_v50 }
 0x21e   :  { %v1034_v53 = vpop.eup %1033  ;;  %v433_v54 = vmul.f32 0.5, %v425_v48  ;;  %v426_v55 = vadd.f32 1.0, %v1032_v49  ;;  %v440_v11 = vmul.f32 %v432_v62, %v1308_v51 }
 0x21f   :  { %v435_v60 = vmul.f32 0.5, %v427_v52  ;;  %v428_v61 = vadd.f32 1.0, %v1034_v53 }
 0x220   :  { %v434_v0 = vmul.f32 0.5, %v426_v55  ;;  %v441_v3 = vmul.f32 %v433_v54, %v1316_v58 }
 0x221   :  { %v436_v4 = vmul.f32 0.5, %v428_v61  ;;  %v443_v5 = vmul.f32 %v435_v60, %v1318_v59 }
 0x222   :  { %v442_v9 = vmul.f32 %v434_v0, %v1326_v6  ;;  %v445_v16 = vpack.c.bf16 %v441_v3, %v437_v10 }
 0x223   :  { %v444_v12 = vmul.f32 %v436_v4, %v1328_v7  ;;  %v447_v58 = vpack.c.bf16 %v443_v5, %v439_v13 }
 0x224   :  { %v446_v14 = vpack.c.bf16 %v442_v9, %v438_v8 }
 0x225   :  { %v448_v15 = vpack.c.bf16 %v444_v12, %v440_v11 }
 0x226   :  { %744 = vmatprep.mubr.bf16.mxu0 %v446_v14 }
 0x227   :  { %785 = vmatprep.mubr.bf16.mxu1 %v448_v15  ;;  %745 = vmatmul.mubr.bf16.vlgmr.msra.gmra.mxu0 %v445_v16 }
 0x228   :  { %786 = vmatmul.mubr.bf16.vlgmr.msra.gmra.mxu1 %v447_v58 }
 0x2e7   :  { %v906_v59 = vpop.f32.mrf.mxu0 }
 0x2e8   :  { %v928_v50 = vpop.f32.mrf.mxu1 }
 0x2e9   :  { %v907_v6 = vpop.f32.mrf.mxu0 }
 0x2ea   :  { %v908_v51 = vadd.f32 %v907_v6, %v906_v59  ;;  %v929_v17 = vpop.f32.mrf.mxu1 }
 0x2eb   :  { %v909_v7 = vpop.f32.mrf.mxu0  ;;  %v930_v20 = vadd.f32 %v929_v17, %v928_v50 }
 0x2ec   :  { %v747_v18 = vadd.f32 %v908_v51, %v844_v44  ;;  %v931_v45 = vpop.f32.mrf.mxu1 }
 0x2ed   :  { %v910_v19 = vpop.f32.mrf.mxu0 }
 0x2ee   :  { %v911_v21 = vadd.f32 %v910_v19, %v909_v7  ;;  %v932_v22 = vpop.f32.mrf.mxu1  ;;  %v788_v23 = vadd.f32 %v930_v20, %v747_v18 }
 0x2ef   :  { %v933_v25 = vadd.f32 %v932_v22, %v931_v45 }
 0x2f0   :  { %v750_v24 = vadd.f32 %v911_v21, %v844_v44  ;;  %v794_v27 = vadd.f32 %v1079_v1, %v788_v23 }
 0x2f2   :  { %v791_v26 = vadd.f32 %v933_v25, %v750_v24 }
 0x2f4   :  { %v795_v28 = vadd.f32 %v1082_v2, %v791_v26 }
 0x2f6   :  { %v888_v29 = vpack.c.bf16 %v795_v28, %v794_v27 }
 0x2f8   :  { %889 = vst [vmem:[%s1369_s7] sm:$0xff] %v888_v29  }

// kernel: mae_forward.13
= control target key start
LH: loop header
LB: loop body
LE: loop exit
PB: predicated region body
PF: predicated region fallthrough
CT: control target
= control target key end

     0   :  { %s1510_s24 = smov 0   ;;  %s1740_s0 = inlined_call_operand.vmem [shape: bf16[2,8,128], index: 0, kind: input, shape index: {}]   ;;  %s1741_s1 = inlined_call_operand.vmem [shape: f32[1,128], index: 1, kind: input, shape index: {}]   ;;  %s1742_s2 = inlined_call_operand.vmem [shape: f32[1,128], index: 2, kind: input, shape index: {}]   ;;  %s1743_s3 = inlined_call_operand.vmem [shape: bf16[128,384], index: 3, kind: input, shape index: {}]   ;;  %s1744_s4 = inlined_call_operand.vmem [shape: f32[1,384], index: 4, kind: input, shape index: {}]   ;;  %s1745_s5 = inlined_call_operand.vmem [shape: bf16[128,128], index: 5, kind: input, shape index: {}]   ;;  %s1746_s6 = inlined_call_operand.vmem [shape: f32[1,128], index: 6, kind: input, shape index: {}]   ;;  %s1747_s7 = inlined_call_operand.vmem [shape: bf16[2,8,128], index: 7, kind: output, shape index: {}]  }
   0x1 LB: > { %s1210_s25 = sadd.s32 4294967295, %s1462_s24   ;;  %p1214_p0 = scmp.ge.s32.totalorder %s1462_s24, 1  ;;  %s1462_s24 = sphi %s1510_s24, %s17_s24  }
   0x2   : > { %p236_p1 = scmp.lt.s32.totalorder %s1462_s24, 3 }
   0x4   : > { %p237_p2 = pnand %p1214_p0, %p236_p1 }
   0x5   : > { %p266_p3 = scmp.lt.s32.totalorder (!%p237_p2), %s1210_s25, 1  ;;  %s1467_s21 = smov (!%p237_p2), 64  }
   0x6   : > { %240 = sbr.rel (%p237_p2) target bundleno = 1721 (0x6b9), region = 48  ;;  %s1468_s22 = smov (!%p237_p2), 96  }
   0x7   : > { %s1469_s23 = smov (!%p237_p2), 32  }
   0xb   : > { %s1749_s25 = smov (!%p266_p3, %s1210_s25), 1  ;;  %v1398_v2 = vld [vmem:[%s1743_s3 + $0xac] ss:$12 sps:$4 sm:$0xff]   ;;  %v1400_v3 = vld [vmem:[%s1743_s3 + $0xa8] ss:$12 sps:$4 sm:$0xff]   ;;  %v1464_v4 = vmov 0.0   ;;  %v340_v42 = vlaneseq }
   0xc   : > { %s1215_s26 = sshll.u32 %s1749_s25, 2  ;;  %1296 = vmatprep.subr.bf16.mxu1 %v1464_v4  ;;  %v1401_v5 = vld [vmem:[%s1743_s3 + $0xb0] ss:$12 sps:$4 sm:$0xff]   ;;  %v1402_v6 = vld [vmem:[%s1743_s3 + $0x94] ss:$12 sps:$4 sm:$0xff]   ;;  %483 = vmatprep.subr.bf16.mxu0 %v1398_v2  ;;  %v1465_v23 = vmov 0  }
   0xd   : > { %s269_s29 = scalar_lea.vmem %s1740_s0, %s1215_s26  ;;  %484 = vmatpush1.bf16.msra.mxu0 %v1400_v3  ;;  %1297 = vmatpush3.bf16.msra.mxu1 %v1401_v5  ;;  %v1404_v7 = vld [vmem:[%s1743_s3 + $0x90] ss:$12 sps:$4 sm:$0xff]   ;;  %v1405_v8 = vld [vmem:[%s1743_s3 + $0x98] ss:$12 sps:$4 sm:$0xff]   ;;  %v1409_v15 = vld [vmem:[%s1743_s3 + $0x80] ss:$12 sps:$4 sm:$0xff]   ;;  %s273_s27 = scalar_lea.vmem %s1747_s7, %s1215_s26 }
   0xe   : > { %v275_v0 = vld [vmem:[%s269_s29] sm:$0xf]  ;;  %485 = vmatprep.subr.bf16.mxu0 %v1402_v6  ;;  %1298 = vmatprep.subr.bf16.mxu1 %v1464_v4  ;;  %v1406_v13 = vld [vmem:[%s1743_s3 + $0x7c] ss:$12 sps:$4 sm:$0xff]   ;;  %v1408_v14 = vld [vmem:[%s1743_s3 + $0x78] ss:$12 sps:$4 sm:$0xff]  }
   0xf   : > { %v1526_v1 = vunpack.c.l.bf16 %v275_v0  ;;  %v1410_v16 = vld [vmem:[%s1743_s3 + $0x64] ss:$12 sps:$4 sm:$0xff]   ;;  %v1412_v17 = vld [vmem:[%s1743_s3 + $0x60] ss:$12 sps:$4 sm:$0xff]   ;;  %v1413_v18 = vld [vmem:[%s1743_s3 + $0x68] ss:$12 sps:$4 sm:$0xff]   ;;  %515 = vmatprep.mubr.bf16.mxu0 %v1465_v23 }
  0x10   : > { %v1414_v19 = vld [vmem:[%s1743_s3 + $0x4c] ss:$12 sps:$4 sm:$0xff]   ;;  %v1416_v20 = vld [vmem:[%s1743_s3 + $0x48] ss:$12 sps:$4 sm:$0xff]   ;;  %v1417_v21 = vld [vmem:[%s1743_s3 + $0x50] ss:$12 sps:$4 sm:$0xff]  }
  0x11   : > { %277 = vadd.xlane.f32.xlu0 %v1526_v1  ;;  %486 = vmatpush1.bf16.msra.mxu0 %v1404_v7  ;;  %v1418_v22 = vld [vmem:[%s1743_s3 + $0x34] ss:$12 sps:$4 sm:$0xff]   ;;  %vm1466_vm0 = vmmov 0   ;;  %v1420_v24 = vld [vmem:[%s1743_s3 + $0x30] ss:$12 sps:$4 sm:$0xff]   ;;  %v341_v43 = vshrl.u32 %v340_v42, 7 }
  0x12   : > { %1299 = vmatpush3.bf16.msra.mxu1 %v1405_v8  ;;  %487 = vmatprep.subr.bf16.mxu0 %v1406_v13  ;;  %v1421_v25 = vld [vmem:[%s1743_s3 + $0x38] ss:$12 sps:$4 sm:$0xff]   ;;  %v1422_v26 = vld [vmem:[%s1743_s3 + $0x1c] ss:$12 sps:$4 sm:$0xff]   ;;  %v1425_v28 = vld [vmem:[%s1743_s3 + $0x20] ss:$12 sps:$4 sm:$0xff]  }
  0x13   : > { %1300 = vmatprep.subr.bf16.mxu1 %v1464_v4  ;;  %1312 = vmatprep.mubr.msk.bf16.mxu1 %vm1466_vm0, %v1464_v4  ;;  %v1424_v27 = vld [vmem:[%s1743_s3 + $0x18] ss:$12 sps:$4 sm:$0xff]   ;;  %v1428_v30 = vld [vmem:[%s1743_s3] ss:$12 sps:$4 sm:$0xff]   ;;  %v1429_v31 = vld [vmem:[%s1743_s3 + $0x8] ss:$12 sps:$4 sm:$0xff]  }
  0x14   : > { %v1426_v29 = vld [vmem:[%s1743_s3 + $0x4] ss:$12 sps:$4 sm:$0xff]   ;;  %v1217_v36 = vld [vmem:[%s1741_s1] ss:$0 sm:$0xff]  ;;  %v350_v44 = vsub.s32 2, %v341_v43  ;;  %v346_v46 = vsub.s32 1, %v341_v43 }
  0x15   : > { %488 = vmatpush1.bf16.msra.mxu0 %v1408_v14  ;;  %v1218_v38 = vld [vmem:[%s1742_s2] ss:$0 sm:$0xff]  ;;  %v342_v47 = vsub.s32 0, %v341_v43  ;;  %vm838_vm1 = vcmask 1043456   ;;  %vm588_vm2 = vcmask 261120   ;;  %v778_v14 = vand.u32 127, %v340_v42 }
  0x16   : > { %1301 = vmatpush3.bf16.msra.mxu1 %v1409_v15  ;;  %489 = vmatprep.subr.bf16.mxu0 %v1410_v16  ;;  %v338_v45 = vld [vmem:[%s1744_s4] sm:$0x7]  ;;  %vm786_vm4 = vcmask 64512   ;;  %vm1036_vm5 = vcmask 523264   ;;  %vm1039_vm6 = vcmask 785408  }
  0x17   : > { %1302 = vmatprep.subr.bf16.mxu1 %v1464_v4  ;;  %v351_v48 = vrot.slane %v338_v45, %v350_v44  ;;  %v347_v49 = vrot.slane %v338_v45, %v346_v46  ;;  %v343_v52 = vrot.slane %v338_v45, %v342_v47  ;;  %vm779_vm3 = vcmp.lt.s32.totalorder %v778_v14, 5 }
  0x19   : > { %490 = vmatpush1.bf16.msra.mxu0 %v1412_v17 }
  0x1a   : > { %1303 = vmatpush3.bf16.msra.mxu1 %v1413_v18  ;;  %491 = vmatprep.subr.bf16.mxu0 %v1414_v19 }
  0x1b   : > { %1304 = vmatprep.subr.bf16.mxu1 %v1464_v4 }
  0x1d   : > { %492 = vmatpush1.bf16.msra.mxu0 %v1416_v20 }
  0x1e   : > { %1305 = vmatpush3.bf16.msra.mxu1 %v1417_v21  ;;  %493 = vmatprep.subr.bf16.mxu0 %v1418_v22 }
  0x1f   : > { %1306 = vmatprep.subr.bf16.mxu1 %v1464_v4 }
  0x21   : > { %494 = vmatpush1.bf16.msra.mxu0 %v1420_v24 }
  0x22   : > { %1307 = vmatpush3.bf16.msra.mxu1 %v1421_v25  ;;  %495 = vmatprep.subr.bf16.mxu0 %v1422_v26 }
  0x23   : > { %1308 = vmatprep.subr.bf16.mxu1 %v1464_v4 }
  0x25   : > { %496 = vmatpush1.bf16.msra.mxu0 %v1424_v27 }
  0x26   : > { %1309 = vmatpush3.bf16.msra.mxu1 %v1425_v28  ;;  %497 = vmatprep.subr.bf16.mxu0 %v1426_v29 }
  0x27   : > { %1310 = vmatprep.subr.bf16.mxu1 %v1464_v4 }
  0x29   : > { %498 = vmatpush1.bf16.msra.mxu0 %v1428_v30 }
  0x2a   : > { %1311 = vmatpush3.bf16.msra.mxu1 %v1429_v31  ;;  %1340 = vmatprep.subr.bf16.mxu0 %v1464_v4 }
  0x2b   : > { %1316 = vmatprep.subr.bf16.mxu1 %v1464_v4 }
  0x9a   : > { %v278_v9 = vpop.xlane.xlu0 %277 }
  0x9b   : > { %v280_v10 = vmul.f32 0.0078125, %v278_v9 }
  0x9d   : > { %v281_v11 = vsub.f32 %v1526_v1, %v280_v10 }
  0x9f   : > { %v282_v12 = vmul.f32 %v281_v11, %v281_v11 }
  0xa1   : > { %283 = vadd.xlane.f32.xlu0 %v282_v12 }
 0x12a   : > { %v284_v32 = vpop.xlane.xlu0 %283 }
 0x12b   : > { %v285_v33 = vmul.f32 0.0078125, %v284_v32 }
 0x12d   : > { %v286_v34 = vadd.f32 1e-06, %v285_v33 }
 0x12f   : > { %1438 = vrsqrt.f32 %v286_v34 }
 0x13c   : > { %v1439_v35 = vpop.eup %1438 }
 0x13d   : > { %v288_v37 = vmul.f32 %v1439_v35, %v281_v11 }
 0x13f   : > { %v296_v39 = vmul.f32 %v1217_v36, %v288_v37 }
 0x141   : > { %v304_v40 = vadd.f32 %v1218_v38, %v296_v39 }
 0x143   : > { %v305_v41 = vpack.c.bf16 %v304_v40, %v304_v40 }
 0x145   : > { %516 = vmatmul.mubr.bf16.vlgmr.msra.gmra.mxu0 %v305_v41  ;;  %1313 = vmatmul.mubr.bf16.vlgmr.msra.gmra.mxu1 %v305_v41 }
 0x146   : > { %1318 = vmatprep.mubr.msk.bf16.mxu1 %vm1466_vm0, %v1464_v4  ;;  %1342 = vmatprep.mubr.msk.bf16.mxu0 %vm1466_vm0, %v1464_v4 }
 0x205   : > { %v517_v50 = vpop.f32.mrf.mxu0  ;;  %v558_v51 = vpop.f32.mrf.mxu1 }
 0x206   : > { %v559_v53 = vadd.f32 %v558_v51, %v351_v48  ;;  %v518_v60 = vadd.f32 %v517_v50, %v343_v52 }
 0x207   : > { %v519_v54 = vpop.f32.mrf.mxu0  ;;  %v1314_v55 = vpop.f32.mrf.mxu1 }
 0x208   : > { %v1628_v56 = vpack.c.bf16 %v559_v53, %v559_v53  ;;  %v520_v57 = vadd.f32 %v519_v54, %v347_v49  ;;  %v564_v3 = vpack.c.bf16 %v518_v60, %v518_v60 }
 0x209   : > { %v521_v58 = vpop.f32.mrf.mxu0  ;;  %v561_v59 = vpop.f32.mrf.mxu1 }
 0x20a   : > { %v565_v61 = vpack.c.bf16 %v520_v57, %v520_v57  ;;  %v840_v62 = vsel %vm838_vm1, %v1628_v56, 0 }
 0x20b   : > { %v522_v63 = vpop.f32.mrf.mxu0  ;;  %v1315_v0 = vpop.f32.mrf.mxu1  ;;  %1341 = vmatpush3.bf16.msra.mxu0 %v840_v62 }
 0x20c   : > { %577 = vrot.lane.b32.xlu0 %v565_v61, %s1467_s21  ;;  %575 = vrot.lane.b32.xlu1 %v565_v61, %s1468_s22  ;;  %v593_v2 = vsel %vm588_vm2, %v565_v61, 0 }
 0x20d   : > { %1317 = vmatpush3.bf16.xpose.msra.mxu1 %v593_v2  ;;  %1352 = vmatprep.subr.bf16.mxu0 %v1464_v4 }
 0x20e   : > { %1322 = vmatprep.subr.bf16.mxu1 %v1464_v4 }
 0x210   : > { %568 = vrot.lane.b32.xlu1 %v564_v3, %s1468_s22 }
 0x214   : > { %570 = vrot.lane.b32.xlu1 %v564_v3, %s1467_s21  ;;  %1319 = vmatmul.mubr.msk.bf16.vlgmr.msra.gmra.mxu1 %vm588_vm2, %v564_v3 }
 0x215   : > { %1324 = vmatprep.mubr.msk.bf16.mxu1 %vm1466_vm0, %v1464_v4 }
 0x218   : > { %579 = vrot.lane.b32.xlu1 %v565_v61, %s1469_s23 }
 0x21c   : > { %572 = vrot.lane.b32.xlu1 %v564_v3, %s1469_s23 }
 0x27e   : > { %v576_v5 = vpop.permute.xlu1 %575  ;;  %v578_v8 = vpop.permute.xlu0 %577 }
 0x27f   : > { %v639_v6 = vsel %vm588_vm2, %v576_v5, 0  ;;  %v685_v10 = vsel %vm588_vm2, %v578_v8, 0 }
 0x280   : > { %1323 = vmatpush3.bf16.xpose.msra.mxu1 %v639_v6 }
 0x281   : > { %1328 = vmatprep.subr.bf16.mxu1 %v1464_v4 }
 0x282   : > { %v569_v7 = vpop.permute.xlu1 %568 }
 0x286   : > { %v571_v9 = vpop.permute.xlu1 %570 }
 0x287   : > { %1325 = vmatmul.mubr.msk.bf16.vlgmr.msra.gmra.mxu1 %vm588_vm2, %v569_v7 }
 0x288   : > { %1329 = vmatpush3.bf16.xpose.msra.mxu1 %v685_v10  ;;  %1330 = vmatprep.mubr.msk.bf16.mxu1 %vm1466_vm0, %v1464_v4 }
 0x289   : > { %1334 = vmatprep.subr.bf16.mxu1 %v1464_v4 }
 0x28a   : > { %v580_v11 = vpop.permute.xlu1 %579 }
 0x28b   : > { %v731_v12 = vsel %vm588_vm2, %v580_v11, 0 }
 0x28e   : > { %v573_v13 = vpop.permute.xlu1 %572 }
 0x28f   : > { %1331 = vmatmul.mubr.msk.bf16.vlgmr.msra.gmra.mxu1 %vm588_vm2, %v571_v9 }
 0x290   : > { %1335 = vmatpush3.bf16.xpose.msra.mxu1 %v731_v12  ;;  %1336 = vmatprep.mubr.msk.bf16.mxu1 %vm1466_vm0, %v1464_v4 }
 0x291   : > { %1346 = vmatprep.subr.bf16.mxu1 %v1464_v4 }
 0x297   : > { %1337 = vmatmul.mubr.msk.bf16.vlgmr.msra.gmra.mxu1 %vm588_vm2, %v573_v13 }
 0x298   : > { %1348 = vmatprep.mubr.msk.bf16.mxu1 %vm1466_vm0, %v1464_v4 }
 0x2d4   : > { %v629_v15 = vpop.f32.mrf.mxu1 }
 0x2d5   : > { %v773_v16 = vmul.f32 0.17677669, %v629_v15 }
 0x2d6   : > { %v1320_v17 = vpop.f32.mrf.mxu1 }
 0x2d7   : > { %v782_v18 = vsel %vm779_vm3, %v773_v16, -1e+30 }
 0x2d8   : > { %v632_v19 = vpop.f32.mrf.mxu1  ;;  %v787_v20 = vsel %vm786_vm4, %v782_v18, -inf }
 0x2d9   : > { %788 = vmax.xlane.f32.xlu1 %v787_v20 }
 0x2da   : > { %v1321_v21 = vpop.f32.mrf.mxu1 }
 0x347   : > { %v675_v22 = vpop.f32.mrf.mxu1 }
 0x348   : > { %v774_v23 = vmul.f32 0.17677669, %v675_v22 }
 0x349   : > { %v1326_v24 = vpop.f32.mrf.mxu1 }
 0x34a   : > { %v783_v25 = vsel %vm779_vm3, %v774_v23, -1e+30 }
 0x34b   : > { %v678_v26 = vpop.f32.mrf.mxu1  ;;  %v790_v27 = vsel %vm786_vm4, %v783_v25, -inf }
 0x34c   : > { %791 = vmax.xlane.f32.xlu0 %v790_v27  ;;  %v1430_v27 = vld [vmem:[%s1745_s5 + $0x38] sm:$0xff]  }
 0x34d   : > { %v1327_v28 = vpop.f32.mrf.mxu1 }
 0x34f   : > { %v721_v29 = vpop.f32.mrf.mxu1 }
 0x350   : > { %v775_v30 = vmul.f32 0.17677669, %v721_v29  ;;  %v1431_v29 = vld [vmem:[%s1745_s5 + $0x30] sm:$0xff]  }
 0x351   : > { %v1332_v31 = vpop.f32.mrf.mxu1 }
 0x352   : > { %v784_v32 = vsel %vm779_vm3, %v775_v30, -1e+30 }
 0x353   : > { %v724_v33 = vpop.f32.mrf.mxu1  ;;  %v793_v34 = vsel %vm786_vm4, %v784_v32, -inf }
 0x354   : > { %794 = vmax.xlane.f32.xlu1 %v793_v34  ;;  %v1432_v33 = vld [vmem:[%s1745_s5 + $0x28] sm:$0xff]  }
 0x355   : > { %v1333_v35 = vpop.f32.mrf.mxu1 }
 0x357   : > { %v767_v36 = vpop.f32.mrf.mxu1 }
 0x358   : > { %v776_v37 = vmul.f32 0.17677669, %v767_v36  ;;  %v1433_v36 = vld [vmem:[%s1745_s5 + $0x20] sm:$0xff]  }
 0x359   : > { %v1338_v38 = vpop.f32.mrf.mxu1 }
 0x35a   : > { %v785_v39 = vsel %vm779_vm3, %v776_v37, -1e+30 }
 0x35b   : > { %v770_v40 = vpop.f32.mrf.mxu1  ;;  %v796_v41 = vsel %vm786_vm4, %v785_v39, -inf }
 0x35c   : > { %797 = vmax.xlane.f32.xlu1 %v796_v41  ;;  %v1434_v40 = vld [vmem:[%s1745_s5 + $0x18] sm:$0xff]  }
 0x35d   : > { %v1339_v42 = vpop.f32.mrf.mxu1 }
 0x35e   : > { %v1435_v42 = vld [vmem:[%s1745_s5 + $0x10] sm:$0xff]  }
 0x362   : > { %v789_v43 = vpop.xlane.xlu1 %788 }
 0x363   : > { %v799_v44 = vsub.f32 %v782_v18, %v789_v43  ;;  %v1436_v43 = vld [vmem:[%s1745_s5 + $0x8] sm:$0xff]  }
 0x365   : > { %v803_v45 = vmul.f32 1.442695, %v799_v44  ;;  %v1437_v44 = vld [vmem:[%s1745_s5] sm:$0xff]  }
 0x367   : > { %1440 = vpow2.f32 %v803_v45 }
 0x374   : > { %v1441_v46 = vpop.eup %1440 }
 0x375   : > { %v811_v47 = vsel %vm786_vm4, %v1441_v46, 0.0 }
 0x376   : > { %812 = vadd.xlane.f32.xlu0 %v811_v47 }
 0x3d5   : > { %v792_v48 = vpop.xlane.xlu0 %791 }
 0x3d6   : > { %v800_v49 = vsub.f32 %v783_v25, %v792_v48 }
 0x3d8   : > { %v805_v50 = vmul.f32 1.442695, %v800_v49 }
 0x3da   : > { %1442 = vpow2.f32 %v805_v50 }
 0x3dd   : > { %v795_v51 = vpop.xlane.xlu1 %794 }
 0x3de   : > { %v801_v52 = vsub.f32 %v784_v32, %v795_v51 }
 0x3e0   : > { %v807_v53 = vmul.f32 1.442695, %v801_v52 }
 0x3e2   : > { %1444 = vpow2.f32 %v807_v53 }
 0x3e5   : > { %v798_v60 = vpop.xlane.xlu1 %797 }
 0x3e6   : > { %v802_v61 = vsub.f32 %v785_v39, %v798_v60 }
 0x3e7   : > { %v1443_v54 = vpop.eup %1442 }
 0x3e8   : > { %v814_v55 = vsel %vm786_vm4, %v1443_v54, 0.0  ;;  %v809_v62 = vmul.f32 1.442695, %v802_v61 }
 0x3e9   : > { %815 = vadd.xlane.f32.xlu1 %v814_v55 }
 0x3ef   : > { %v1445_v57 = vpop.eup %1444 }
 0x3f0   : > { %v817_v58 = vsel %vm786_vm4, %v1445_v57, 0.0 }
 0x3f1   : > { %818 = vadd.xlane.f32.xlu0 %v817_v58 }
 0x3fa   : > { %584 = vrot.lane.b32.xlu1 %v1628_v56, %s1467_s21 }
 0x3ff   : > { %v813_v59 = vpop.xlane.xlu0 %812 }
 0x400   : > { %1446 = vrcp.f32 %v813_v59 }
 0x401   : > { %1448 = vpow2.f32 %v809_v62 }
 0x407   : > { %582 = vrot.lane.b32.xlu0 %v1628_v56, %s1468_s22 }
 0x40d   : > { %v1447_v63 = vpop.eup %1446 }
 0x40e   : > { %v827_v0 = vmul.f32 %v1447_v63, %v1441_v46  ;;  %v1449_v3 = vpop.eup %1448 }
 0x40f   : > { %v820_v5 = vsel %vm786_vm4, %v1449_v3, 0.0 }
 0x410   : > { %v831_v2 = vpack.c.bf16 %v827_v0, %v827_v0 }
 0x412   : > { %1343 = vmatmul.mubr.msk.bf16.vlgmr.msra.gmra.mxu0 %vm786_vm4, %v831_v2 }
 0x413   : > { %1354 = vmatprep.mubr.msk.bf16.mxu0 %vm1466_vm0, %v1464_v4 }
 0x41e   : > { %821 = vadd.xlane.f32.xlu1 %v820_v5 }
 0x42f   : > { %586 = vrot.lane.b32.xlu1 %v1628_v56, %s1469_s23 }
 0x472   : > { %v816_v6 = vpop.xlane.xlu1 %815 }
 0x473   : > { %1450 = vrcp.f32 %v816_v6 }
 0x476   : > { %v585_v7 = vpop.permute.xlu1 %584 }
 0x477   : > { %v932_v8 = vsel %vm838_vm1, %v585_v7, 0 }
 0x478   : > { %1353 = vmatpush3.bf16.msra.mxu0 %v932_v8 }
 0x479   : > { %1364 = vmatprep.subr.bf16.mxu0 %v1464_v4 }
 0x47a   : > { %v819_v9 = vpop.xlane.xlu0 %818 }
 0x47b   : > { %1452 = vrcp.f32 %v819_v9 }
 0x47e   : > { %v583_v10 = vpop.permute.xlu0 %582 }
 0x47f   : > { %v886_v11 = vsel %vm838_vm1, %v583_v10, 0 }
 0x480   : > { %v1451_v12 = vpop.eup %1450  ;;  %1347 = vmatpush3.bf16.msra.mxu1 %v886_v11 }
 0x481   : > { %v828_v13 = vmul.f32 %v1451_v12, %v1443_v54  ;;  %1358 = vmatprep.subr.bf16.mxu1 %v1464_v4 }
 0x483   : > { %v832_v14 = vpack.c.bf16 %v828_v13, %v828_v13 }
 0x485   : > { %1349 = vmatmul.mubr.msk.bf16.vlgmr.msra.gmra.mxu1 %vm786_vm4, %v832_v14 }
 0x486   : > { %1360 = vmatprep.mubr.msk.bf16.mxu1 %vm1466_vm0, %v1464_v4 }
 0x488   : > { %v1453_v56 = vpop.eup %1452 }
 0x489   : > { %v829_v15 = vmul.f32 %v1453_v56, %v1445_v57 }
 0x48b   : > { %v833_v16 = vpack.c.bf16 %v829_v15, %v829_v15 }
 0x48d   : > { %1355 = vmatmul.mubr.msk.bf16.vlgmr.msra.gmra.mxu0 %vm786_vm4, %v833_v16 }
 0x48e   : > { %1380 = vmatprep.mubr.msk.bf16.mxu0 %vm1466_vm0, %v1464_v4  ;;  %1365 = vmatpush3.bf16.msra.mxu0 %v1430_v27 }
 0x48f   : > { %1366 = vmatprep.subr.bf16.mxu0 %v1464_v4 }
 0x492   : > { %1367 = vmatpush3.bf16.msra.mxu0 %v1431_v29 }
 0x493   : > { %1368 = vmatprep.subr.bf16.mxu0 %v1464_v4 }
 0x496   : > { %1369 = vmatpush3.bf16.msra.mxu0 %v1432_v33 }
 0x497   : > { %1370 = vmatprep.subr.bf16.mxu0 %v1464_v4 }
 0x49a   : > { %1371 = vmatpush3.bf16.msra.mxu0 %v1433_v36 }
 0x49b   : > { %1372 = vmatprep.subr.bf16.mxu0 %v1464_v4 }
 0x49e   : > { %1373 = vmatpush3.bf16.msra.mxu0 %v1434_v40 }
 0x49f   : > { %1374 = vmatprep.subr.bf16.mxu0 %v1464_v4 }
 0x4a2   : > { %1375 = vmatpush3.bf16.msra.mxu0 %v1435_v42 }
 0x4a3   : > { %1376 = vmatprep.subr.bf16.mxu0 %v1464_v4 }
 0x4a6   : > { %1377 = vmatpush3.bf16.msra.mxu0 %v1436_v43 }
 0x4a7   : > { %v822_v17 = vpop.xlane.xlu1 %821  ;;  %1378 = vmatprep.subr.bf16.mxu0 %v1464_v4  ;;  %v1251_v4 = vld [vmem:[%s1746_s6] ss:$0 sm:$0xff] }
 0x4a8   : > { %1454 = vrcp.f32 %v822_v17 }
 0x4aa   : > { %1379 = vmatpush3.bf16.msra.mxu0 %v1437_v44 }
 0x4ab   : > { %v587_v18 = vpop.permute.xlu1 %586 }
 0x4ac   : > { %v978_v19 = vsel %vm838_vm1, %v587_v18, 0 }
 0x4ad   : > { %1359 = vmatpush3.bf16.msra.mxu1 %v978_v19 }
 0x4b5   : > { %v1455_v20 = vpop.eup %1454 }
 0x4b6   : > { %v830_v21 = vmul.f32 %v1455_v20, %v1449_v3 }
 0x4b8   : > { %v834_v22 = vpack.c.bf16 %v830_v21, %v830_v21 }
 0x4ba   : > { %1361 = vmatmul.mubr.msk.bf16.vlgmr.msra.gmra.mxu1 %vm786_vm4, %v834_v22 }
 0x4d2   : > { %v876_v23 = vpop.f32.mrf.mxu0 }
 0x4d3   : > { %v1020_v51 = vpack.c.bf16 %v876_v23, %v876_v23 }
 0x4d4   : > { %v1344_v24 = vpop.f32.mrf.mxu0 }
 0x4d6   : > { %v879_v25 = vpop.f32.mrf.mxu0 }
 0x4d8   : > { %v1345_v26 = vpop.f32.mrf.mxu0 }
 0x545   : > { %v922_v28 = vpop.f32.mrf.mxu1 }
 0x546   : > { %v1021_v30 = vpack.c.bf16 %v922_v28, %v922_v28 }
 0x547   : > { %v1350_v31 = vpop.f32.mrf.mxu1 }
 0x548   : > { %1025 = vrot.lane.b32.xlu0 %v1021_v30, %s1469_s23 }
 0x549   : > { %v925_v32 = vpop.f32.mrf.mxu1 }
 0x54b   : > { %v1351_v34 = vpop.f32.mrf.mxu1 }
 0x54d   : > { %v968_v35 = vpop.f32.mrf.mxu0 }
 0x54e   : > { %v1022_v37 = vpack.c.bf16 %v968_v35, %v968_v35 }
 0x54f   : > { %v1356_v38 = vpop.f32.mrf.mxu0 }
 0x550   : > { %1028 = vrot.lane.b32.xlu1 %v1022_v37, %s1467_s21 }
 0x551   : > { %v971_v39 = vpop.f32.mrf.mxu0 }
 0x553   : > { %v1357_v41 = vpop.f32.mrf.mxu0 }
 0x57a   : > { %v1014_v45 = vpop.f32.mrf.mxu1 }
 0x57b   : > { %v1023_v46 = vpack.c.bf16 %v1014_v45, %v1014_v45 }
 0x57c   : > { %v1362_v47 = vpop.f32.mrf.mxu1 }
 0x57d   : > { %1031 = vrot.lane.b32.xlu0 %v1023_v46, %s1468_s22 }
 0x57e   : > { %v1017_v48 = vpop.f32.mrf.mxu1 }
 0x580   : > { %v1363_v49 = vpop.f32.mrf.mxu1 }
 0x5ba   : > { %v1026_v50 = vpop.permute.xlu0 %1025 }
 0x5bb   : > { %v1035_v53 = vsel %vm588_vm2, %v1020_v51, %v1026_v50 }
 0x5c2   : > { %v1029_v52 = vpop.permute.xlu1 %1028 }
 0x5c3   : > { %v1038_v54 = vsel %vm1036_vm5, %v1035_v53, %v1029_v52 }
 0x5ef   : > { %v1032_v55 = vpop.permute.xlu0 %1031 }
 0x5f0   : > { %v1041_v57 = vsel %vm1039_vm6, %v1038_v54, %v1032_v55 }
 0x5f1   : > { %1381 = vmatmul.mubr.bf16.vlgmr.msra.gmra.mxu0 %v1041_v57 }
 0x6b1   : > { %v1148_v58 = vpop.f32.mrf.mxu0 }
 0x6b2   : > { %v1149_v59 = vadd.f32 %v1251_v4, %v1148_v58 }
 0x6b3   : > { %v1382_v60 = vpop.f32.mrf.mxu0 }
 0x6b4   : > { %v1154_v61 = vadd.f32 %v1149_v59, %v1526_v1 }
 0x6b5   : > { %v1151_v62 = vpop.f32.mrf.mxu0 }
 0x6b6   : > { %v1155_v63 = vpack.c.bf16 %v1154_v61, %v1154_v61 }
 0x6b7   : > { %v1383_v0 = vpop.f32.mrf.mxu0 }
 0x6b8   : > { %1156 = vst [vmem:[%s273_s27] sm:$0xf] %v1155_v63 }
 0x6b9 PF: > { %s17_s24 = sadd.s32 1, %s1462_s24  }
 0x6ba   : > { %p14_p4 = scmp.ge.s32.totalorder %s17_s24, 4  }
 0x6bc   :  { %16 = sbr.rel (!%p14_p4) target bundleno = 1 (0x1), region = 78 }

// kernel: mae_forward.22
= control target key start
LH: loop header
LB: loop body
LE: loop exit
PB: predicated region body
PF: predicated region fallthrough
CT: control target
= control target key end

     0   :  { %v370_v9 = vmov 0.0   ;;  %vm371_vm0 = vmmov 0   ;;  %vm257_vm1 = vcmask 392192   ;;  %s520_s0 = inlined_call_operand.vmem [shape: bf16[48,128], index: 0, kind: input, shape index: {}]   ;;  %s521_s3 = inlined_call_operand.vmem [shape: bf16[128,48], index: 3, kind: input, shape index: {}]   ;;  %s522_s1 = inlined_call_operand.vmem [shape: f32[1,128], index: 1, kind: input, shape index: {}]   ;;  %s523_s2 = inlined_call_operand.vmem [shape: f32[1,128], index: 2, kind: input, shape index: {}]   ;;  %s524_s4 = inlined_call_operand.vmem [shape: f32[1,48], index: 4, kind: input, shape index: {}]   ;;  %s525_s5 = inlined_call_operand.vmem [shape: f32[48,48], index: 5, kind: output, shape index: {}]  }
   0x1   :  { %v291_v0 = vld [vmem:[%s520_s0 + $0x8] sm:$0xff]   ;;  %v280_v1 = vld [vmem:[%s520_s0] sm:$0xff]   ;;  %v292_v6 = vld [vmem:[%s520_s0 + $0x10] sm:$0xff]   ;;  %332 = vmatprep.subr.bf16.mxu1 %v370_v9  ;;  %304 = vmatprep.subr.bf16.mxu0 %v370_v9 }
   0x2   :  { %v285_v2 = vunpack.c.l.bf16 %v291_v0  ;;  %v281_v3 = vunpack.c.l.bf16 %v280_v1  ;;  %v286_v4 = vunpack.c.h.bf16 %v291_v0  ;;  %v282_v5 = vunpack.c.h.bf16 %v280_v1  ;;  %v350_v10 = vld [vmem:[%s521_s3 + $0x38] sm:$0xff]   ;;  %v351_v35 = vld [vmem:[%s521_s3 + $0x30] sm:$0xff]   ;;  %v352_v36 = vld [vmem:[%s521_s3 + $0x28] sm:$0xff]   ;;  %324 = vmatprep.mubr.msk.bf16.mxu1 %vm371_vm0, %v370_v9  ;;  %320 = vmatprep.mubr.msk.bf16.mxu0 %vm371_vm0, %v370_v9 }
   0x3   :  { %v289_v7 = vunpack.c.l.bf16 %v292_v6  ;;  %v290_v8 = vunpack.c.h.bf16 %v292_v6  ;;  %340 = vmatpush3.bf16.msra.mxu1 %v350_v10  ;;  %305 = vmatpush3.bf16.msra.mxu0 %v350_v10  ;;  %v353_v37 = vld [vmem:[%s521_s3 + $0x20] sm:$0xff]   ;;  %v354_v38 = vld [vmem:[%s521_s3 + $0x18] sm:$0xff]   ;;  %v355_v39 = vld [vmem:[%s521_s3 + $0x10] sm:$0xff]  }
   0x4   :  { %37 = vadd.xlane.f32.xlu0 %v285_v2  ;;  %33 = vadd.xlane.f32.xlu1 %v281_v3  ;;  %v356_v40 = vld [vmem:[%s521_s3 + $0x8] sm:$0xff]   ;;  %v357_v41 = vld [vmem:[%s521_s3] sm:$0xff]  }
   0x5   :  { %333 = vmatprep.subr.bf16.mxu1 %v370_v9  ;;  %306 = vmatprep.subr.bf16.mxu0 %v370_v9  ;;  %v268_v62 = vld [vmem:[%s522_s1] ss:$0 sm:$0xff] }
   0x7   :  { %341 = vmatpush3.bf16.msra.mxu1 %v351_v35  ;;  %307 = vmatpush3.bf16.msra.mxu0 %v351_v35 }
   0x8   :  { %39 = vadd.xlane.f32.xlu0 %v286_v4  ;;  %35 = vadd.xlane.f32.xlu1 %v282_v5 }
   0x9   :  { %334 = vmatprep.subr.bf16.mxu1 %v370_v9  ;;  %308 = vmatprep.subr.bf16.mxu0 %v370_v9 }
   0xb   :  { %342 = vmatpush3.bf16.msra.mxu1 %v352_v36  ;;  %309 = vmatpush3.bf16.msra.mxu0 %v352_v36 }
   0xc   :  { %41 = vadd.xlane.f32.xlu0 %v289_v7  ;;  %43 = vadd.xlane.f32.xlu1 %v290_v8 }
   0xd   :  { %335 = vmatprep.subr.bf16.mxu1 %v370_v9  ;;  %310 = vmatprep.subr.bf16.mxu0 %v370_v9 }
   0xf   :  { %343 = vmatpush3.bf16.msra.mxu1 %v353_v37  ;;  %311 = vmatpush3.bf16.msra.mxu0 %v353_v37 }
  0x10   :  { %336 = vmatprep.subr.bf16.mxu1 %v370_v9  ;;  %312 = vmatprep.subr.bf16.mxu0 %v370_v9 }
  0x13   :  { %344 = vmatpush3.bf16.msra.mxu1 %v354_v38  ;;  %313 = vmatpush3.bf16.msra.mxu0 %v354_v38 }
  0x14   :  { %337 = vmatprep.subr.bf16.mxu1 %v370_v9  ;;  %314 = vmatprep.subr.bf16.mxu0 %v370_v9 }
  0x17   :  { %345 = vmatpush3.bf16.msra.mxu1 %v355_v39  ;;  %315 = vmatpush3.bf16.msra.mxu0 %v355_v39 }
  0x18   :  { %338 = vmatprep.subr.bf16.mxu1 %v370_v9  ;;  %316 = vmatprep.subr.bf16.mxu0 %v370_v9 }
  0x1b   :  { %346 = vmatpush3.bf16.msra.mxu1 %v356_v40  ;;  %317 = vmatpush3.bf16.msra.mxu0 %v356_v40 }
  0x1c   :  { %339 = vmatprep.subr.bf16.mxu1 %v370_v9  ;;  %318 = vmatprep.subr.bf16.mxu0 %v370_v9 }
  0x1f   :  { %347 = vmatpush3.bf16.msra.mxu1 %v357_v41  ;;  %319 = vmatpush3.bf16.msra.mxu0 %v357_v41 }
  0x8d   :  { %v38_v11 = vpop.xlane.xlu0 %37  ;;  %v34_v12 = vpop.xlane.xlu1 %33 }
  0x8e   :  { %v48_v13 = vmul.f32 0.0078125, %v38_v11  ;;  %v46_v14 = vmul.f32 0.0078125, %v34_v12 }
  0x90   :  { %v418_v15 = vsub.f32 %v285_v2, %v48_v13  ;;  %v420_v16 = vsub.f32 %v281_v3, %v46_v14 }
  0x91   :  { %v40_v17 = vpop.xlane.xlu0 %39  ;;  %v36_v18 = vpop.xlane.xlu1 %35 }
  0x92   :  { %v49_v19 = vmul.f32 0.0078125, %v40_v17  ;;  %v60_v20 = vmul.f32 %v418_v15, %v418_v15  ;;  %v47_v21 = vmul.f32 0.0078125, %v36_v18  ;;  %v58_v24 = vmul.f32 %v420_v16, %v420_v16 }
  0x94   :  { %v424_v22 = vsub.f32 %v286_v4, %v49_v19  ;;  %68 = vadd.xlane.f32.xlu0 %v60_v20  ;;  %v426_v23 = vsub.f32 %v282_v5, %v47_v21  ;;  %v269_v4 = vld [vmem:[%s523_s2] ss:$0 sm:$0xff] }
  0x95   :  { %v42_v25 = vpop.xlane.xlu0 %41  ;;  %v44_v26 = vpop.xlane.xlu1 %43 }
  0x96   :  { %v50_v27 = vmul.f32 0.0078125, %v42_v25  ;;  %v61_v28 = vmul.f32 %v424_v22, %v424_v22  ;;  %v51_v29 = vmul.f32 0.0078125, %v44_v26  ;;  %v59_v32 = vmul.f32 %v426_v23, %v426_v23 }
  0x98   :  { %v432_v30 = vsub.f32 %v289_v7, %v50_v27  ;;  %70 = vadd.xlane.f32.xlu1 %v61_v28  ;;  %64 = vadd.xlane.f32.xlu0 %v58_v24  ;;  %v434_v31 = vsub.f32 %v290_v8, %v51_v29 }
  0x9a   :  { %v62_v33 = vmul.f32 %v432_v30, %v432_v30  ;;  %v63_v34 = vmul.f32 %v434_v31, %v434_v31 }
  0x9c   :  { %72 = vadd.xlane.f32.xlu0 %v62_v33  ;;  %66 = vadd.xlane.f32.xlu1 %v59_v32 }
  0xa0   :  { %74 = vadd.xlane.f32.xlu1 %v63_v34 }
 0x11d   :  { %v69_v42 = vpop.xlane.xlu0 %68 }
 0x11e   :  { %v78_v43 = vmul.f32 0.0078125, %v69_v42 }
 0x120   :  { %v84_v44 = vadd.f32 1e-06, %v78_v43 }
 0x121   :  { %v65_v45 = vpop.xlane.xlu0 %64  ;;  %v71_v46 = vpop.xlane.xlu1 %70 }
 0x122   :  { %358 = vrsqrt.f32 %v84_v44  ;;  %v76_v47 = vmul.f32 0.0078125, %v65_v45  ;;  %v79_v48 = vmul.f32 0.0078125, %v71_v46 }
 0x124   :  { %v82_v49 = vadd.f32 1e-06, %v76_v47  ;;  %v85_v50 = vadd.f32 1e-06, %v79_v48 }
 0x125   :  { %v73_v51 = vpop.xlane.xlu0 %72  ;;  %v67_v52 = vpop.xlane.xlu1 %66 }
 0x126   :  { %360 = vrsqrt.f32 %v82_v49  ;;  %v80_v53 = vmul.f32 0.0078125, %v73_v51  ;;  %v77_v54 = vmul.f32 0.0078125, %v67_v52 }
 0x127   :  { %362 = vrsqrt.f32 %v85_v50 }
 0x128   :  { %v86_v55 = vadd.f32 1e-06, %v80_v53  ;;  %v83_v56 = vadd.f32 1e-06, %v77_v54 }
 0x129   :  { %v75_v57 = vpop.xlane.xlu1 %74 }
 0x12a   :  { %364 = vrsqrt.f32 %v86_v55  ;;  %v81_v58 = vmul.f32 0.0078125, %v75_v57 }
 0x12b   :  { %366 = vrsqrt.f32 %v83_v56 }
 0x12c   :  { %v87_v59 = vadd.f32 1e-06, %v81_v58 }
 0x12e   :  { %368 = vrsqrt.f32 %v87_v59 }
 0x12f   :  { %v359_v60 = vpop.eup %358 }
 0x130   :  { %v96_v61 = vmul.f32 %v359_v60, %v418_v15 }
 0x132   :  { %v109_v2 = vmul.f32 %v268_v62, %v96_v61 }
 0x133   :  { %v361_v63 = vpop.eup %360 }
 0x134   :  { %v363_v0 = vpop.eup %362  ;;  %v94_v3 = vmul.f32 %v361_v63, %v420_v16  ;;  %v122_v10 = vadd.f32 %v269_v4, %v109_v2 }
 0x135   :  { %v97_v1 = vmul.f32 %v363_v0, %v424_v22 }
 0x136   :  { %v107_v13 = vmul.f32 %v268_v62, %v94_v3 }
 0x137   :  { %v365_v5 = vpop.eup %364  ;;  %v110_v6 = vmul.f32 %v268_v62, %v97_v1 }
 0x138   :  { %v367_v7 = vpop.eup %366  ;;  %v98_v8 = vmul.f32 %v365_v5, %v432_v30  ;;  %v120_v19 = vadd.f32 %v269_v4, %v107_v13 }
 0x139   :  { %v123_v11 = vadd.f32 %v269_v4, %v110_v6  ;;  %v95_v12 = vmul.f32 %v367_v7, %v426_v23  ;;  %v270_v23 = vld [vmem:[%s524_s4] ss:$0 sm:$0xff] }
 0x13a   :  { %v111_v16 = vmul.f32 %v268_v62, %v98_v8 }
 0x13b   :  { %v369_v14 = vpop.eup %368  ;;  %v127_v15 = vpack.c.bf16 %v123_v11, %v122_v10  ;;  %v108_v17 = vmul.f32 %v268_v62, %v95_v12 }
 0x13c   :  { %v99_v18 = vmul.f32 %v369_v14, %v434_v31  ;;  %v124_v24 = vadd.f32 %v269_v4, %v111_v16 }
 0x13d   :  { %325 = vmatmul.mubr.bf16.vlgmr.msra.gmra.mxu1 %v127_v15  ;;  %v121_v20 = vadd.f32 %v269_v4, %v108_v17 }
 0x13e   :  { %328 = vmatprep.mubr.msk.bf16.mxu1 %vm371_vm0, %v370_v9  ;;  %v112_v21 = vmul.f32 %v268_v62, %v99_v18 }
 0x13f   :  { %v126_v22 = vpack.c.bf16 %v121_v20, %v120_v19 }
 0x140   :  { %v125_v25 = vadd.f32 %v269_v4, %v112_v21 }
 0x141   :  { %321 = vmatmul.mubr.bf16.vlgmr.msra.gmra.mxu0 %v126_v22 }
 0x142   :  { %v128_v26 = vpack.c.bf16 %v125_v25, %v124_v24 }
 0x145   :  { %329 = vmatmul.mubr.bf16.gmra.mxu1 %v128_v26 }
 0x1fd   :  { %v242_v27 = vpop.f32.mrf.mxu1 }
 0x1fe   :  { %v243_v28 = vadd.f32 %v270_v23, %v242_v27 }
 0x1ff   :  { %v326_v29 = vpop.f32.mrf.mxu1 }
 0x200   :  { %260 = vst.msk [vmem:[%s525_s5 + $0x10] sm:$0xff] %vm257_vm1, %v243_v28 }
 0x201   :  { %v234_v9 = vpop.f32.mrf.mxu0  ;;  %v245_v30 = vpop.f32.mrf.mxu1 }
 0x202   :  { %v235_v31 = vadd.f32 %v270_v23, %v234_v9  ;;  %v246_v32 = vadd.f32 %v270_v23, %v245_v30 }
 0x203   :  { %v322_v33 = vpop.f32.mrf.mxu0  ;;  %v327_v34 = vpop.f32.mrf.mxu1 }
 0x204   :  { %258 = vst.msk [vmem:[%s525_s5] sm:$0xff] %vm257_vm1, %v235_v31  ;;  %261 = vst.msk [vmem:[%s525_s5 + $0x18] sm:$0xff] %vm257_vm1, %v246_v32 }
 0x205   :  { %v237_v35 = vpop.f32.mrf.mxu0  ;;  %v250_v36 = vpop.f32.mrf.mxu1 }
 0x206   :  { %v238_v37 = vadd.f32 %v270_v23, %v237_v35  ;;  %v251_v38 = vadd.f32 %v270_v23, %v250_v36 }
 0x207   :  { %v323_v39 = vpop.f32.mrf.mxu0  ;;  %v330_v40 = vpop.f32.mrf.mxu1 }
 0x208   :  { %259 = vst.msk [vmem:[%s525_s5 + $0x8] sm:$0xff] %vm257_vm1, %v238_v37  ;;  %262 = vst.msk [vmem:[%s525_s5 + $0x20] sm:$0xff] %vm257_vm1, %v251_v38 }
 0x209   :  { %v253_v41 = vpop.f32.mrf.mxu1 }
 0x20a   :  { %v254_v42 = vadd.f32 %v270_v23, %v253_v41 }
 0x20b   :  { %v331_v43 = vpop.f32.mrf.mxu1 }
 0x20c   :  { %263 = vst.msk [vmem:[%s525_s5 + $0x28] sm:$0xff] %vm257_vm1, %v254_v42 }

// kernel: mae_forward.19
= control target key start
LH: loop header
LB: loop body
LE: loop exit
PB: predicated region body
PF: predicated region fallthrough
CT: control target
= control target key end

     0   :  { %v1439_v63 = vmov 0   ;;  %s1998_s0 = inlined_call_operand.vmem [shape: bf16[48,128], index: 0, kind: input, shape index: {}]   ;;  %s1999_s3 = inlined_call_operand.vmem [shape: bf16[128,512], index: 3, kind: input, shape index: {}]   ;;  %s2000_s1 = inlined_call_operand.vmem [shape: f32[1,128], index: 1, kind: input, shape index: {}]   ;;  %s2001_s2 = inlined_call_operand.vmem [shape: f32[1,128], index: 2, kind: input, shape index: {}]   ;;  %s2002_s5 = inlined_call_operand.vmem [shape: bf16[512,128], index: 5, kind: input, shape index: {}]   ;;  %s2003_s4 = inlined_call_operand.vmem [shape: f32[1,512], index: 4, kind: input, shape index: {}]   ;;  %s2004_s6 = inlined_call_operand.vmem [shape: f32[1,128], index: 6, kind: input, shape index: {}]   ;;  %s2005_s7 = inlined_call_operand.vmem [shape: bf16[48,128], index: 7, kind: output, shape index: {}]  }
   0x1   :  { %v1200_v0 = vld [vmem:[%s1998_s0] sm:$0xff]   ;;  %v1226_v1 = vld [vmem:[%s1998_s0 + $0x8] sm:$0xff]   ;;  %v1227_v6 = vld [vmem:[%s1998_s0 + $0x10] sm:$0xff]   ;;  %381 = vmatprep.mubr.bf16.mxu0 %v1439_v63  ;;  %444 = vmatprep.mubr.bf16.mxu1 %v1439_v63 }
   0x2   :  { %v1486_v2 = vunpack.c.l.bf16 %v1200_v0  ;;  %v1488_v3 = vunpack.c.l.bf16 %v1226_v1  ;;  %v1492_v4 = vunpack.c.h.bf16 %v1200_v0  ;;  %v1494_v5 = vunpack.c.h.bf16 %v1226_v1  ;;  %v1299_v9 = vld [vmem:[%s1999_s3 + $0xe4] ss:$16 sps:$4 sm:$0xff]   ;;  %v1301_v10 = vld [vmem:[%s1999_s3 + $0xec] ss:$16 sps:$4 sm:$0xff]   ;;  %v1303_v11 = vld [vmem:[%s1999_s3 + $0xe0] ss:$16 sps:$4 sm:$0xff]  }
   0x3   :  { %v1501_v7 = vunpack.c.l.bf16 %v1227_v6  ;;  %v1503_v8 = vunpack.c.h.bf16 %v1227_v6  ;;  %349 = vmatprep.subr.bf16.mxu0 %v1299_v9  ;;  %v1304_v12 = vld [vmem:[%s1999_s3 + $0xe8] ss:$16 sps:$4 sm:$0xff]   ;;  %412 = vmatprep.subr.bf16.mxu1 %v1301_v10  ;;  %v1305_v37 = vld [vmem:[%s1999_s3 + $0xc4] ss:$16 sps:$4 sm:$0xff]   ;;  %v1307_v38 = vld [vmem:[%s1999_s3 + $0xcc] ss:$16 sps:$4 sm:$0xff]  }
   0x4   :  { %39 = vadd.xlane.f32.xlu0 %v1486_v2  ;;  %43 = vadd.xlane.f32.xlu1 %v1488_v3  ;;  %v1309_v39 = vld [vmem:[%s1999_s3 + $0xc0] ss:$16 sps:$4 sm:$0xff]   ;;  %v1310_v40 = vld [vmem:[%s1999_s3 + $0xc8] ss:$16 sps:$4 sm:$0xff]   ;;  %v1311_v41 = vld [vmem:[%s1999_s3 + $0xa4] ss:$16 sps:$4 sm:$0xff]  }
   0x5   :  { %350 = vmatpush1.bf16.msra.mxu0 %v1303_v11  ;;  %413 = vmatpush1.bf16.msra.mxu1 %v1304_v12  ;;  %v1313_v42 = vld [vmem:[%s1999_s3 + $0xac] ss:$16 sps:$4 sm:$0xff]   ;;  %v1315_v43 = vld [vmem:[%s1999_s3 + $0xa0] ss:$16 sps:$4 sm:$0xff]   ;;  %v1316_v44 = vld [vmem:[%s1999_s3 + $0xa8] ss:$16 sps:$4 sm:$0xff]  }
   0x6   :  { %351 = vmatprep.subr.bf16.mxu0 %v1305_v37  ;;  %414 = vmatprep.subr.bf16.mxu1 %v1307_v38  ;;  %v1317_v45 = vld [vmem:[%s1999_s3 + $0x84] ss:$16 sps:$4 sm:$0xff]   ;;  %v1319_v46 = vld [vmem:[%s1999_s3 + $0x8c] ss:$16 sps:$4 sm:$0xff]   ;;  %v1321_v47 = vld [vmem:[%s1999_s3 + $0x80] ss:$16 sps:$4 sm:$0xff]  }
   0x7   :  { %v1322_v48 = vld [vmem:[%s1999_s3 + $0x88] ss:$16 sps:$4 sm:$0xff]   ;;  %v1323_v49 = vld [vmem:[%s1999_s3 + $0x64] ss:$16 sps:$4 sm:$0xff]   ;;  %v1325_v50 = vld [vmem:[%s1999_s3 + $0x6c] ss:$16 sps:$4 sm:$0xff]  }
   0x8   :  { %41 = vadd.xlane.f32.xlu0 %v1492_v4  ;;  %45 = vadd.xlane.f32.xlu1 %v1494_v5  ;;  %v1327_v51 = vld [vmem:[%s1999_s3 + $0x60] ss:$16 sps:$4 sm:$0xff]   ;;  %v1328_v52 = vld [vmem:[%s1999_s3 + $0x68] ss:$16 sps:$4 sm:$0xff]   ;;  %v1329_v53 = vld [vmem:[%s1999_s3 + $0x44] ss:$16 sps:$4 sm:$0xff]  }
   0x9   :  { %352 = vmatpush1.bf16.msra.mxu0 %v1309_v39  ;;  %415 = vmatpush1.bf16.msra.mxu1 %v1310_v40  ;;  %v1331_v54 = vld [vmem:[%s1999_s3 + $0x4c] ss:$16 sps:$4 sm:$0xff]   ;;  %v1333_v55 = vld [vmem:[%s1999_s3 + $0x40] ss:$16 sps:$4 sm:$0xff]   ;;  %v1334_v56 = vld [vmem:[%s1999_s3 + $0x48] ss:$16 sps:$4 sm:$0xff]  }
   0xa   :  { %353 = vmatprep.subr.bf16.mxu0 %v1311_v41  ;;  %416 = vmatprep.subr.bf16.mxu1 %v1313_v42  ;;  %v1335_v57 = vld [vmem:[%s1999_s3 + $0x24] ss:$16 sps:$4 sm:$0xff]   ;;  %v1337_v58 = vld [vmem:[%s1999_s3 + $0x2c] ss:$16 sps:$4 sm:$0xff]   ;;  %v1339_v59 = vld [vmem:[%s1999_s3 + $0x20] ss:$16 sps:$4 sm:$0xff]  }
   0xb   :  { %v1340_v60 = vld [vmem:[%s1999_s3 + $0x28] ss:$16 sps:$4 sm:$0xff]   ;;  %v1341_v61 = vld [vmem:[%s1999_s3 + $0x4] ss:$16 sps:$4 sm:$0xff]   ;;  %v1343_v62 = vld [vmem:[%s1999_s3 + $0xc] ss:$16 sps:$4 sm:$0xff]  }
   0xc   :  { %47 = vadd.xlane.f32.xlu0 %v1501_v7  ;;  %49 = vadd.xlane.f32.xlu1 %v1503_v8  ;;  %v1345_v0 = vld [vmem:[%s1999_s3] ss:$16 sps:$4 sm:$0xff]   ;;  %v1346_v1 = vld [vmem:[%s1999_s3 + $0x8] ss:$16 sps:$4 sm:$0xff]  }
   0xd   :  { %354 = vmatpush1.bf16.msra.mxu0 %v1315_v43  ;;  %417 = vmatpush1.bf16.msra.mxu1 %v1316_v44  ;;  %v1121_v39 = vld [vmem:[%s2001_s2] ss:$0 sm:$0xff] }
   0xe   :  { %355 = vmatprep.subr.bf16.mxu0 %v1317_v45  ;;  %418 = vmatprep.subr.bf16.mxu1 %v1319_v46 }
  0x11   :  { %356 = vmatpush1.bf16.msra.mxu0 %v1321_v47  ;;  %419 = vmatpush1.bf16.msra.mxu1 %v1322_v48 }
  0x12   :  { %357 = vmatprep.subr.bf16.mxu0 %v1323_v49  ;;  %420 = vmatprep.subr.bf16.mxu1 %v1325_v50 }
  0x15   :  { %358 = vmatpush1.bf16.msra.mxu0 %v1327_v51  ;;  %421 = vmatpush1.bf16.msra.mxu1 %v1328_v52 }
  0x16   :  { %359 = vmatprep.subr.bf16.mxu0 %v1329_v53  ;;  %422 = vmatprep.subr.bf16.mxu1 %v1331_v54 }
  0x19   :  { %360 = vmatpush1.bf16.msra.mxu0 %v1333_v55  ;;  %423 = vmatpush1.bf16.msra.mxu1 %v1334_v56 }
  0x1a   :  { %361 = vmatprep.subr.bf16.mxu0 %v1335_v57  ;;  %424 = vmatprep.subr.bf16.mxu1 %v1337_v58  ;;  %v1349_v57 = vld [vmem:[%s2002_s5 + $0x38] sm:$0xff]  }
  0x1b   :  { %v1350_v58 = vld [vmem:[%s2002_s5 + $0xb8] sm:$0xff]  }
  0x1d   :  { %362 = vmatpush1.bf16.msra.mxu0 %v1339_v59  ;;  %425 = vmatpush1.bf16.msra.mxu1 %v1340_v60  ;;  %v1351_v59 = vld [vmem:[%s2002_s5 + $0x70] sm:$0xff]  }
  0x1e   :  { %363 = vmatprep.subr.bf16.mxu0 %v1341_v61  ;;  %426 = vmatprep.subr.bf16.mxu1 %v1343_v62  ;;  %v1352_v60 = vld [vmem:[%s2002_s5 + $0xf0] sm:$0xff]  }
  0x1f   :  { %v1353_v61 = vld [vmem:[%s2002_s5 + $0x30] sm:$0xff]  }
  0x20   :  { %v1354_v62 = vld [vmem:[%s2002_s5 + $0xb0] sm:$0xff]  }
  0x21   :  { %364 = vmatpush1.bf16.msra.mxu0 %v1345_v0  ;;  %427 = vmatpush1.bf16.msra.mxu1 %v1346_v1  ;;  %v1356_v0 = vld [vmem:[%s2002_s5 + $0xe8] sm:$0xff]  }
  0x22   :  { %v1357_v1 = vld [vmem:[%s2002_s5 + $0x28] sm:$0xff]  }
  0x8d   :  { %v40_v13 = vpop.xlane.xlu0 %39  ;;  %v44_v14 = vpop.xlane.xlu1 %43 }
  0x8e   :  { %v52_v15 = vmul.f32 0.0078125, %v40_v13  ;;  %v54_v16 = vmul.f32 0.0078125, %v44_v14 }
  0x90   :  { %v1520_v17 = vsub.f32 %v1486_v2, %v52_v15  ;;  %v1523_v18 = vsub.f32 %v1488_v3, %v54_v16 }
  0x91   :  { %v42_v19 = vpop.xlane.xlu0 %41  ;;  %v46_v20 = vpop.xlane.xlu1 %45 }
  0x92   :  { %v53_v21 = vmul.f32 0.0078125, %v42_v19  ;;  %v64_v22 = vmul.f32 %v1520_v17, %v1520_v17  ;;  %v55_v23 = vmul.f32 0.0078125, %v46_v20  ;;  %v66_v26 = vmul.f32 %v1523_v18, %v1523_v18 }
  0x94   :  { %v1528_v24 = vsub.f32 %v1492_v4, %v53_v21  ;;  %70 = vadd.xlane.f32.xlu0 %v64_v22  ;;  %v1531_v25 = vsub.f32 %v1494_v5, %v55_v23 }
  0x95   :  { %v48_v27 = vpop.xlane.xlu0 %47  ;;  %v50_v28 = vpop.xlane.xlu1 %49 }
  0x96   :  { %v56_v29 = vmul.f32 0.0078125, %v48_v27  ;;  %v65_v30 = vmul.f32 %v1528_v24, %v1528_v24  ;;  %v57_v31 = vmul.f32 0.0078125, %v50_v28  ;;  %v67_v34 = vmul.f32 %v1531_v25, %v1531_v25 }
  0x98   :  { %v1538_v32 = vsub.f32 %v1501_v7, %v56_v29  ;;  %74 = vadd.xlane.f32.xlu0 %v66_v26  ;;  %72 = vadd.xlane.f32.xlu1 %v65_v30  ;;  %v1541_v33 = vsub.f32 %v1503_v8, %v57_v31 }
  0x9a   :  { %v68_v35 = vmul.f32 %v1538_v32, %v1538_v32  ;;  %v69_v36 = vmul.f32 %v1541_v33, %v1541_v33 }
  0x9c   :  { %76 = vadd.xlane.f32.xlu1 %v67_v34  ;;  %78 = vadd.xlane.f32.xlu0 %v68_v35  ;;  %v1120_v34 = vld [vmem:[%s2000_s1] ss:$0 sm:$0xff] }
  0xa0   :  { %80 = vadd.xlane.f32.xlu1 %v69_v36 }
 0x11d   :  { %v71_v6 = vpop.xlane.xlu0 %70 }
 0x11e   :  { %v82_v9 = vmul.f32 0.0078125, %v71_v6  ;;  %v1358_v6 = vld [vmem:[%s2002_s5 + $0xa8] sm:$0xff]  }
 0x120   :  { %v88_v10 = vadd.f32 1e-06, %v82_v9  ;;  %v1359_v9 = vld [vmem:[%s2002_s5 + $0x60] sm:$0xff]  }
 0x121   :  { %v73_v11 = vpop.xlane.xlu1 %72  ;;  %v75_v12 = vpop.xlane.xlu0 %74 }
 0x122   :  { %1379 = vrsqrt.f32 %v88_v10  ;;  %v83_v13 = vmul.f32 0.0078125, %v73_v11  ;;  %v84_v14 = vmul.f32 0.0078125, %v75_v12  ;;  %v1360_v10 = vld [vmem:[%s2002_s5 + $0xe0] sm:$0xff]  }
 0x123   :  { %v1361_v11 = vld [vmem:[%s2002_s5 + $0x20] sm:$0xff]  }
 0x124   :  { %v89_v15 = vadd.f32 1e-06, %v83_v13  ;;  %v90_v16 = vadd.f32 1e-06, %v84_v14  ;;  %v1362_v12 = vld [vmem:[%s2002_s5 + $0xa0] sm:$0xff]   ;;  %v1363_v13 = vld [vmem:[%s2002_s5 + $0x58] sm:$0xff]  }
 0x125   :  { %v77_v19 = vpop.xlane.xlu1 %76  ;;  %v79_v20 = vpop.xlane.xlu0 %78  ;;  %v1364_v14 = vld [vmem:[%s2002_s5 + $0xd8] sm:$0xff]  }
 0x126   :  { %1381 = vrsqrt.f32 %v89_v15  ;;  %v85_v21 = vmul.f32 0.0078125, %v77_v19  ;;  %v86_v23 = vmul.f32 0.0078125, %v79_v20  ;;  %v1365_v15 = vld [vmem:[%s2002_s5 + $0x18] sm:$0xff]   ;;  %v1367_v19 = vld [vmem:[%s2002_s5 + $0x50] sm:$0xff]  }
 0x127   :  { %1383 = vrsqrt.f32 %v90_v16  ;;  %v1366_v16 = vld [vmem:[%s2002_s5 + $0x98] sm:$0xff]   ;;  %v1368_v20 = vld [vmem:[%s2002_s5 + $0xd0] sm:$0xff]  }
 0x128   :  { %v91_v22 = vadd.f32 1e-06, %v85_v21  ;;  %v92_v28 = vadd.f32 1e-06, %v86_v23  ;;  %v1369_v21 = vld [vmem:[%s2002_s5 + $0x10] sm:$0xff]   ;;  %v1371_v23 = vld [vmem:[%s2002_s5 + $0x48] sm:$0xff]  }
 0x129   :  { %v81_v26 = vpop.xlane.xlu1 %80 }
 0x12a   :  { %1385 = vrsqrt.f32 %v91_v22  ;;  %v87_v27 = vmul.f32 0.0078125, %v81_v26  ;;  %v1370_v22 = vld [vmem:[%s2002_s5 + $0x90] sm:$0xff]   ;;  %v1372_v26 = vld [vmem:[%s2002_s5 + $0xc8] sm:$0xff]  }
 0x12c   :  { %v93_v29 = vadd.f32 1e-06, %v87_v27  ;;  %v1373_v27 = vld [vmem:[%s2002_s5 + $0x8] sm:$0xff]  }
 0x12e   :  { %1387 = vrsqrt.f32 %v93_v29  ;;  %v1375_v29 = vld [vmem:[%s2002_s5 + $0x40] sm:$0xff]  }
 0x12f   :  { %v1380_v30 = vpop.eup %1379  ;;  %1389 = vrsqrt.f32 %v92_v28  ;;  %v1374_v28 = vld [vmem:[%s2002_s5 + $0x88] sm:$0xff]  }
 0x130   :  { %v100_v31 = vmul.f32 %v1380_v30, %v1520_v17  ;;  %v1376_v30 = vld [vmem:[%s2002_s5 + $0xc0] sm:$0xff]  }
 0x132   :  { %v113_v37 = vmul.f32 %v1120_v34, %v100_v31  ;;  %v1377_v31 = vld [vmem:[%s2002_s5] sm:$0xff]  }
 0x133   :  { %v1382_v35 = vpop.eup %1381 }
 0x134   :  { %v101_v36 = vmul.f32 %v1382_v35, %v1528_v24  ;;  %v1384_v38 = vpop.eup %1383  ;;  %v126_v42 = vadd.f32 %v1121_v39, %v113_v37  ;;  %v169_v35 = vlaneseq }
 0x135   :  { %v102_v44 = vmul.f32 %v1384_v38, %v1523_v18 }
 0x136   :  { %v114_v40 = vmul.f32 %v1120_v34, %v101_v36  ;;  %v170_v36 = vshrl.u32 %v169_v35, 7 }
 0x137   :  { %v1386_v41 = vpop.eup %1385  ;;  %v115_v24 = vmul.f32 %v1120_v34, %v102_v44 }
 0x138   :  { %v127_v43 = vadd.f32 %v1121_v39, %v114_v40  ;;  %v103_v17 = vmul.f32 %v1386_v41, %v1531_v25  ;;  %v171_v37 = vsub.s32 0, %v170_v36  ;;  %v179_v38 = vsub.s32 2, %v170_v36 }
 0x139   :  { %v128_v51 = vadd.f32 %v1121_v39, %v115_v24  ;;  %v175_v40 = vsub.s32 1, %v170_v36  ;;  %v183_v41 = vsub.s32 3, %v170_v36 }
 0x13a   :  { %v132_v45 = vpack.c.bf16 %v127_v43, %v126_v42  ;;  %v116_v46 = vmul.f32 %v1120_v34, %v103_v17 }
 0x13b   :  { %v1388_v47 = vpop.eup %1387 }
 0x13c   :  { %382 = vmatmul.mubr.bf16.vlgmr.msra.gmra.mxu0 %v132_v45  ;;  %445 = vmatmul.mubr.bf16.vlgmr.msra.gmra.mxu1 %v132_v45  ;;  %v1390_v48 = vpop.eup %1389  ;;  %v129_v49 = vadd.f32 %v1121_v39, %v116_v46  ;;  %v105_v50 = vmul.f32 %v1388_v47, %v1541_v33  ;;  %v1347_v33 = vld [vmem:[%s2002_s5 + $0x78] sm:$0xff]  }
 0x13d   :  { %391 = vmatprep.mubr.bf16.mxu0 %v1439_v63  ;;  %454 = vmatprep.mubr.bf16.mxu1 %v1439_v63  ;;  %v104_v52 = vmul.f32 %v1390_v48, %v1538_v32  ;;  %v1348_v32 = vld [vmem:[%s2002_s5 + $0xf8] sm:$0xff]  }
 0x13e   :  { %v133_v18 = vpack.c.bf16 %v129_v49, %v128_v51  ;;  %v118_v53 = vmul.f32 %v1120_v34, %v105_v50  ;;  %1230 = vmatprep.subr.bf16.mxu0 %v1347_v33  ;;  %1264 = vmatprep.subr.bf16.mxu1 %v1348_v32 }
 0x13f   :  { %v117_v25 = vmul.f32 %v1120_v34, %v104_v52  ;;  %1231 = vmatpush3.bf16.msra.mxu0 %v1349_v57  ;;  %1265 = vmatpush3.bf16.msra.mxu1 %v1350_v58  ;;  %v1378_v34 = vld [vmem:[%s2002_s5 + $0x80] sm:$0xff]  }
 0x140   :  { %v131_v54 = vadd.f32 %v1121_v39, %v118_v53  ;;  %1232 = vmatprep.subr.bf16.mxu0 %v1351_v59  ;;  %1266 = vmatprep.subr.bf16.mxu1 %v1352_v60 }
 0x141   :  { %v130_v55 = vadd.f32 %v1121_v39, %v117_v25  ;;  %v167_v39 = vld [vmem:[%s2003_s4] sm:$0xf] }
 0x142   :  { %v1750_v42 = vrot.slane %v167_v39, %v171_v37  ;;  %v1752_v43 = vrot.slane %v167_v39, %v179_v38  ;;  %v1754_v44 = vrot.slane %v167_v39, %v175_v40  ;;  %v1756_v17 = vrot.slane %v167_v39, %v183_v41 }
 0x143   :  { %v134_v56 = vpack.c.bf16 %v131_v54, %v130_v55  ;;  %1233 = vmatpush3.bf16.msra.mxu0 %v1353_v61  ;;  %1267 = vmatpush3.bf16.msra.mxu1 %v1354_v62 }
 0x144   :  { %392 = vmatmul.mubr.bf16.gmra.mxu0 %v133_v18  ;;  %455 = vmatmul.mubr.bf16.gmra.mxu1 %v133_v18 }
 0x145   :  { %401 = vmatprep.mubr.bf16.mxu0 %v1439_v63  ;;  %464 = vmatprep.mubr.bf16.mxu1 %v1439_v63  ;;  %v1355_v63 = vld [vmem:[%s2002_s5 + $0x68] sm:$0xff]  }
 0x146   :  { %1234 = vmatprep.subr.bf16.mxu0 %v1355_v63  ;;  %1268 = vmatprep.subr.bf16.mxu1 %v1356_v0 }
 0x147   :  { %1235 = vmatpush3.bf16.msra.mxu0 %v1357_v1  ;;  %1269 = vmatpush3.bf16.msra.mxu1 %v1358_v6 }
 0x148   :  { %1236 = vmatprep.subr.bf16.mxu0 %v1359_v9  ;;  %1270 = vmatprep.subr.bf16.mxu1 %v1360_v10 }
 0x14b   :  { %1237 = vmatpush3.bf16.msra.mxu0 %v1361_v11  ;;  %1271 = vmatpush3.bf16.msra.mxu1 %v1362_v12 }
 0x14c   :  { %402 = vmatmul.mubr.bf16.gmra.mxu0 %v134_v56  ;;  %465 = vmatmul.mubr.bf16.gmra.mxu1 %v134_v56 }
 0x14d   :  { %1238 = vmatprep.subr.bf16.mxu0 %v1363_v13  ;;  %1272 = vmatprep.subr.bf16.mxu1 %v1364_v14 }
 0x14f   :  { %1239 = vmatpush3.bf16.msra.mxu0 %v1365_v15  ;;  %1273 = vmatpush3.bf16.msra.mxu1 %v1366_v16 }
 0x150   :  { %1240 = vmatprep.subr.bf16.mxu0 %v1367_v19  ;;  %1274 = vmatprep.subr.bf16.mxu1 %v1368_v20 }
 0x153   :  { %1241 = vmatpush3.bf16.msra.mxu0 %v1369_v21  ;;  %1275 = vmatpush3.bf16.msra.mxu1 %v1370_v22 }
 0x154   :  { %1242 = vmatprep.subr.bf16.mxu0 %v1371_v23  ;;  %1276 = vmatprep.subr.bf16.mxu1 %v1372_v26 }
 0x157   :  { %1243 = vmatpush3.bf16.msra.mxu0 %v1373_v27  ;;  %1277 = vmatpush3.bf16.msra.mxu1 %v1374_v28 }
 0x158   :  { %1244 = vmatprep.subr.bf16.mxu0 %v1375_v29  ;;  %1278 = vmatprep.subr.bf16.mxu1 %v1376_v30 }
 0x15b   :  { %1245 = vmatpush3.bf16.msra.mxu0 %v1377_v31  ;;  %1279 = vmatpush3.bf16.msra.mxu1 %v1378_v34 }
 0x1fc   :  { %v383_v45 = vpop.f32.mrf.mxu0  ;;  %v446_v46 = vpop.f32.mrf.mxu1 }
 0x1fd   :  { %v1759_v47 = vadd.f32 %v383_v45, %v1750_v42  ;;  %v1762_v24 = vadd.f32 %v446_v46, %v1752_v43 }
 0x1fe   :  { %v385_v48 = vpop.f32.mrf.mxu0  ;;  %v448_v49 = vpop.f32.mrf.mxu1 }
 0x1ff   :  { %v475_v50 = vmul.f32 %v1759_v47, %v1759_v47  ;;  %v477_v51 = vmul.f32 %v1762_v24, %v1762_v24  ;;  %v1769_v52 = vadd.f32 %v385_v48, %v1754_v44  ;;  %v1772_v18 = vadd.f32 %v448_v49, %v1756_v17 }
 0x200   :  { %v387_v53 = vpop.f32.mrf.mxu0  ;;  %v450_v25 = vpop.f32.mrf.mxu1 }
 0x201   :  { %v499_v54 = vmul.f32 %v475_v50, %v1759_v47  ;;  %v501_v55 = vmul.f32 %v477_v51, %v1762_v24  ;;  %v476_v56 = vmul.f32 %v1769_v52, %v1769_v52  ;;  %v478_v33 = vmul.f32 %v1772_v18, %v1772_v18 }
 0x202   :  { %v1781_v32 = vadd.f32 %v387_v53, %v1750_v42  ;;  %v1784_v57 = vadd.f32 %v450_v25, %v1752_v43  ;;  %v389_v58 = vpop.f32.mrf.mxu0  ;;  %v452_v59 = vpop.f32.mrf.mxu1 }
 0x203   :  { %v523_v60 = vmul.f32 0.044715, %v499_v54  ;;  %v525_v61 = vmul.f32 0.044715, %v501_v55  ;;  %v500_v62 = vmul.f32 %v476_v56, %v1769_v52  ;;  %v502_v63 = vmul.f32 %v478_v33, %v1772_v18 }
 0x204   :  { %v479_v0 = vmul.f32 %v1781_v32, %v1781_v32  ;;  %v481_v1 = vmul.f32 %v1784_v57, %v1784_v57  ;;  %v1793_v6 = vadd.f32 %v389_v58, %v1754_v44  ;;  %v1796_v9 = vadd.f32 %v452_v59, %v1756_v17  ;;  %v393_v10 = vpop.f32.mrf.mxu0  ;;  %v456_v11 = vpop.f32.mrf.mxu1 }
 0x205   :  { %v547_v12 = vadd.f32 %v523_v60, %v1759_v47  ;;  %v549_v13 = vadd.f32 %v525_v61, %v1762_v24  ;;  %v524_v14 = vmul.f32 0.044715, %v500_v62  ;;  %v526_v15 = vmul.f32 0.044715, %v502_v63 }
 0x206   :  { %v503_v16 = vmul.f32 %v479_v0, %v1781_v32  ;;  %v505_v19 = vmul.f32 %v481_v1, %v1784_v57  ;;  %v480_v20 = vmul.f32 %v1793_v6, %v1793_v6  ;;  %v482_v21 = vmul.f32 %v1796_v9, %v1796_v9  ;;  %v395_v28 = vpop.f32.mrf.mxu0  ;;  %v458_v35 = vpop.f32.mrf.mxu1 }
 0x207   :  { %v571_v22 = vmul.f32 0.7978846, %v547_v12  ;;  %v573_v23 = vmul.f32 0.7978846, %v549_v13  ;;  %v548_v26 = vadd.f32 %v524_v14, %v1769_v52  ;;  %v550_v27 = vadd.f32 %v526_v15, %v1772_v18 }
 0x208   :  { %v527_v29 = vmul.f32 0.044715, %v503_v16  ;;  %v529_v30 = vmul.f32 0.044715, %v505_v19  ;;  %v504_v31 = vmul.f32 %v480_v20, %v1793_v6  ;;  %v506_v34 = vmul.f32 %v482_v21, %v1796_v9  ;;  %v397_v49 = vpop.f32.mrf.mxu0  ;;  %v460_v25 = vpop.f32.mrf.mxu1 }
 0x209   :  { %1391 = vtanh.f32 %v571_v22  ;;  %v572_v36 = vmul.f32 0.7978846, %v548_v26  ;;  %v574_v37 = vmul.f32 0.7978846, %v550_v27  ;;  %v1811_v38 = vadd.f32 %v393_v10, %v1750_v42 }
 0x20a   :  { %1393 = vtanh.f32 %v573_v23  ;;  %v551_v39 = vadd.f32 %v527_v29, %v1781_v32  ;;  %v553_v40 = vadd.f32 %v529_v30, %v1784_v57  ;;  %v528_v41 = vmul.f32 0.044715, %v504_v31  ;;  %v399_v0 = vpop.f32.mrf.mxu0  ;;  %v462_v12 = vpop.f32.mrf.mxu1 }
 0x20b   :  { %1395 = vtanh.f32 %v572_v36  ;;  %v530_v45 = vmul.f32 0.044715, %v506_v34  ;;  %v483_v46 = vmul.f32 %v1811_v38, %v1811_v38  ;;  %v1818_v48 = vadd.f32 %v456_v11, %v1752_v43 }
 0x20c   :  { %1397 = vtanh.f32 %v574_v37  ;;  %v575_v50 = vmul.f32 0.7978846, %v551_v39  ;;  %v577_v51 = vmul.f32 0.7978846, %v553_v40  ;;  %v552_v53 = vadd.f32 %v528_v41, %v1793_v6  ;;  %v403_v37 = vpop.f32.mrf.mxu0 }
 0x20d   :  { %v554_v54 = vadd.f32 %v530_v45, %v1796_v9  ;;  %v507_v55 = vmul.f32 %v483_v46, %v1811_v38  ;;  %v485_v56 = vmul.f32 %v1818_v48, %v1818_v48  ;;  %v1826_v33 = vadd.f32 %v395_v28, %v1754_v44 }
 0x20e   :  { %1399 = vtanh.f32 %v575_v50  ;;  %v576_v58 = vmul.f32 0.7978846, %v552_v53  ;;  %v1829_v59 = vadd.f32 %v458_v35, %v1756_v17  ;;  %v1832_v60 = vadd.f32 %v397_v49, %v1750_v42  ;;  %v466_v49 = vpop.f32.mrf.mxu1 }
 0x20f   :  { %1401 = vtanh.f32 %v577_v51  ;;  %v578_v61 = vmul.f32 0.7978846, %v554_v54  ;;  %v531_v62 = vmul.f32 0.044715, %v507_v55  ;;  %v509_v63 = vmul.f32 %v485_v56, %v1818_v48 }
 0x210   :  { %1403 = vtanh.f32 %v576_v58  ;;  %v484_v1 = vmul.f32 %v1826_v33, %v1826_v33  ;;  %v486_v10 = vmul.f32 %v1829_v59, %v1829_v59  ;;  %v487_v11 = vmul.f32 %v1832_v60, %v1832_v60 }
 0x211   :  { %1405 = vtanh.f32 %v578_v61  ;;  %v555_v13 = vadd.f32 %v531_v62, %v1811_v38  ;;  %v533_v14 = vmul.f32 0.044715, %v509_v63  ;;  %v1843_v15 = vadd.f32 %v460_v25, %v1752_v43 }
 0x212   :  { %v508_v16 = vmul.f32 %v484_v1, %v1826_v33  ;;  %v510_v19 = vmul.f32 %v486_v10, %v1829_v59  ;;  %v511_v20 = vmul.f32 %v487_v11, %v1832_v60  ;;  %v1849_v21 = vadd.f32 %v399_v0, %v1754_v44  ;;  %v405_v11 = vpop.f32.mrf.mxu0 }
 0x213   :  { %v579_v22 = vmul.f32 0.7978846, %v555_v13  ;;  %v557_v23 = vadd.f32 %v533_v14, %v1818_v48  ;;  %v489_v26 = vmul.f32 %v1843_v15, %v1843_v15  ;;  %v1855_v27 = vadd.f32 %v462_v12, %v1756_v17 }
 0x214   :  { %v532_v28 = vmul.f32 0.044715, %v508_v16  ;;  %v534_v29 = vmul.f32 0.044715, %v510_v19  ;;  %v535_v30 = vmul.f32 0.044715, %v511_v20  ;;  %v488_v31 = vmul.f32 %v1849_v21, %v1849_v21  ;;  %v468_v16 = vpop.f32.mrf.mxu1 }
 0x215   :  { %1407 = vtanh.f32 %v579_v22  ;;  %v581_v34 = vmul.f32 0.7978846, %v557_v23  ;;  %v513_v35 = vmul.f32 %v489_v26, %v1843_v15  ;;  %v490_v36 = vmul.f32 %v1855_v27, %v1855_v27 }
 0x216   :  { %v1392_v39 = vpop.eup %1391  ;;  %v556_v40 = vadd.f32 %v532_v28, %v1826_v33  ;;  %v558_v41 = vadd.f32 %v534_v29, %v1829_v59  ;;  %v559_v45 = vadd.f32 %v535_v30, %v1832_v60  ;;  %v512_v46 = vmul.f32 %v488_v31, %v1849_v21 }
 0x217   :  { %v1394_v50 = vpop.eup %1393  ;;  %v619_v51 = vadd.f32 1.0, %v1392_v39  ;;  %1409 = vtanh.f32 %v581_v34  ;;  %v537_v53 = vmul.f32 0.044715, %v513_v35  ;;  %v514_v25 = vmul.f32 %v490_v36, %v1855_v27 }
 0x218   :  { %v1867_v54 = vpop.eup %1395  ;;  %v621_v55 = vadd.f32 1.0, %v1394_v50  ;;  %v580_v56 = vmul.f32 0.7978846, %v556_v40  ;;  %v582_v58 = vmul.f32 0.7978846, %v558_v41  ;;  %v1870_v61 = vadd.f32 %v403_v37, %v1750_v42  ;;  %v407_v37 = vpop.f32.mrf.mxu0 }
 0x219   :  { %v1872_v62 = vpop.eup %1397  ;;  %v643_v63 = vmul.f32 0.5, %v619_v51  ;;  %v583_v0 = vmul.f32 0.7978846, %v559_v45  ;;  %v561_v1 = vadd.f32 %v537_v53, %v1843_v15  ;;  %v536_v10 = vmul.f32 0.044715, %v512_v46  ;;  %v470_v45 = vpop.f32.mrf.mxu1 }
 0x21a   :  { %v645_v12 = vmul.f32 0.5, %v621_v55  ;;  %1411 = vtanh.f32 %v580_v56  ;;  %v538_v13 = vmul.f32 0.044715, %v514_v25  ;;  %v491_v14 = vmul.f32 %v1870_v61, %v1870_v61 }
 0x21b   :  { %v1400_v19 = vpop.eup %1399  ;;  %v1878_v20 = vmul.f32 %v643_v63, %v1759_v47  ;;  %1413 = vtanh.f32 %v582_v58  ;;  %v560_v22 = vadd.f32 %v536_v10, %v1849_v21  ;;  %v585_v29 = vmul.f32 0.7978846, %v561_v1  ;;  %v409_v63 = vpop.f32.mrf.mxu0 }
 0x21c   :  { %v1402_v23 = vpop.eup %1401  ;;  %v1882_v26 = vmul.f32 %v645_v12, %v1762_v24  ;;  %v623_v28 = vadd.f32 1.0, %v1400_v19  ;;  %v562_v30 = vadd.f32 %v538_v13, %v1855_v27  ;;  %1415 = vtanh.f32 %v583_v0  ;;  %v472_v12 = vpop.f32.mrf.mxu1 }
 0x21d   :  { %v1404_v31 = vpop.eup %1403  ;;  %v625_v34 = vadd.f32 1.0, %v1402_v23  ;;  %v584_v35 = vmul.f32 0.7978846, %v560_v22  ;;  %v515_v36 = vmul.f32 %v491_v14, %v1870_v61  ;;  %v1889_v41 = vadd.f32 %v466_v49, %v1752_v43 }
 0x21e   :  { %v1886_v47 = vpop.eup %1405  ;;  %v647_v39 = vmul.f32 0.5, %v623_v28  ;;  %v586_v40 = vmul.f32 0.7978846, %v562_v30  ;;  %v1892_v24 = vadd.f32 %v405_v11, %v1754_v44  ;;  %v1895_v51 = vadd.f32 %v468_v16, %v1756_v17 }
 0x21f   :  { %v649_v46 = vmul.f32 0.5, %v625_v34  ;;  %1417 = vtanh.f32 %v584_v35  ;;  %v539_v50 = vmul.f32 0.044715, %v515_v36  ;;  %v493_v25 = vmul.f32 %v1889_v41, %v1889_v41 }
 0x220   :  { %v1898_v53 = vmul.f32 %v647_v39, %v1781_v32  ;;  %1419 = vtanh.f32 %v585_v29  ;;  %v492_v49 = vmul.f32 %v1892_v24, %v1892_v24  ;;  %v494_v56 = vmul.f32 %v1895_v51, %v1895_v51 }
 0x221   :  { %1421 = vtanh.f32 %v586_v40  ;;  %v563_v55 = vadd.f32 %v539_v50, %v1870_v61  ;;  %v1908_v58 = vadd.f32 %v407_v37, %v1750_v42  ;;  %v1913_v32 = vmul.f32 %v649_v46, %v1784_v57 }
 0x222   :  { %v1910_v0 = vpop.eup %1407  ;;  %v517_v1 = vmul.f32 %v493_v25, %v1889_v41  ;;  %v516_v10 = vmul.f32 %v492_v49, %v1892_v24  ;;  %v1918_v11 = vadd.f32 %v470_v45, %v1752_v43  ;;  %v691_v13 = vpack.c.bf16 %v1898_v53, %v1878_v20 }
 0x223   :  { %v587_v14 = vmul.f32 0.7978846, %v563_v55  ;;  %v518_v42 = vmul.f32 %v494_v56, %v1895_v51  ;;  %v495_v16 = vmul.f32 %v1908_v58, %v1908_v58  ;;  %v1930_v43 = vadd.f32 %v409_v63, %v1754_v44 }
 0x224   :  { %v1925_v19 = vpop.eup %1409  ;;  %v541_v57 = vmul.f32 0.044715, %v517_v1  ;;  %v540_v22 = vmul.f32 0.044715, %v516_v10  ;;  %v497_v23 = vmul.f32 %v1918_v11, %v1918_v11  ;;  %v1934_v30 = vadd.f32 %v472_v12, %v1756_v17 }
 0x225   :  { %1423 = vtanh.f32 %v587_v14  ;;  %v542_v28 = vmul.f32 0.044715, %v518_v42  ;;  %v519_v29 = vmul.f32 %v495_v16, %v1908_v58  ;;  %v496_v37 = vmul.f32 %v1930_v43, %v1930_v43 }
 0x226   :  { %v565_v34 = vadd.f32 %v541_v57, %v1889_v41  ;;  %v564_v35 = vadd.f32 %v540_v22, %v1892_v24  ;;  %v521_v36 = vmul.f32 %v497_v23, %v1918_v11  ;;  %v498_v45 = vmul.f32 %v1934_v30, %v1934_v30 }
 0x227   :  { %v1412_v39 = vpop.eup %1411  ;;  %v566_v44 = vadd.f32 %v542_v28, %v1895_v51  ;;  %v543_v40 = vmul.f32 0.044715, %v519_v29  ;;  %v620_v46 = vadd.f32 1.0, %v1867_v54  ;;  %v520_v55 = vmul.f32 %v496_v37, %v1930_v43 }
 0x228   :  { %v1414_v17 = vpop.eup %1413  ;;  %v589_v50 = vmul.f32 0.7978846, %v565_v34  ;;  %v588_v25 = vmul.f32 0.7978846, %v564_v35  ;;  %v545_v49 = vmul.f32 0.044715, %v521_v36  ;;  %v522_v1 = vmul.f32 %v498_v45, %v1934_v30 }
 0x229   :  { %v590_v56 = vmul.f32 0.7978846, %v566_v44  ;;  %v567_v63 = vadd.f32 %v543_v40, %v1908_v58  ;;  %v624_v10 = vadd.f32 1.0, %v1404_v31  ;;  %v1416_v12 = vpop.eup %1415  ;;  %v544_v42 = vmul.f32 0.044715, %v520_v55 }
 0x22a   :  { %1425 = vtanh.f32 %v589_v50  ;;  %v569_v14 = vadd.f32 %v545_v49, %v1918_v11  ;;  %v644_v16 = vmul.f32 0.5, %v620_v46  ;;  %v546_v57 = vmul.f32 0.044715, %v522_v1 }
 0x22b   :  { %1427 = vtanh.f32 %v588_v25  ;;  %v591_v54 = vmul.f32 0.7978846, %v567_v63  ;;  %v648_v22 = vmul.f32 0.5, %v624_v10  ;;  %v568_v29 = vadd.f32 %v544_v42, %v1930_v43 }
 0x22c   :  { %v1418_v23 = vpop.eup %1417  ;;  %1429 = vtanh.f32 %v590_v56  ;;  %v593_v28 = vmul.f32 0.7978846, %v569_v14  ;;  %v668_v34 = vmul.f32 %v644_v16, %v1769_v52  ;;  %v570_v31 = vadd.f32 %v546_v57, %v1934_v30 }
 0x22d   :  { %v1420_v35 = vpop.eup %1419  ;;  %1431 = vtanh.f32 %v591_v54  ;;  %v672_v36 = vmul.f32 %v648_v22, %v1793_v6  ;;  %v622_v37 = vadd.f32 1.0, %v1872_v62  ;;  %v592_v40 = vmul.f32 0.7978846, %v568_v29 }
 0x22e   :  { %v1422_v44 = vpop.eup %1421  ;;  %1433 = vtanh.f32 %v593_v28  ;;  %v626_v45 = vadd.f32 1.0, %v1886_v47  ;;  %v628_v46 = vadd.f32 1.0, %v1412_v39  ;;  %v594_v50 = vmul.f32 0.7978846, %v570_v31 }
 0x22f   :  { %v692_v25 = vpack.c.bf16 %v672_v36, %v668_v34  ;;  %v646_v49 = vmul.f32 0.5, %v622_v37  ;;  %v632_v55 = vadd.f32 1.0, %v1418_v23  ;;  %1435 = vtanh.f32 %v592_v40 }
 0x230   :  { %v650_v52 = vmul.f32 0.5, %v626_v45  ;;  %v652_v56 = vmul.f32 0.5, %v628_v46  ;;  %v630_v63 = vadd.f32 1.0, %v1414_v17  ;;  %1437 = vtanh.f32 %v594_v50 }
 0x231   :  { %998 = vmatprep.mubr.bf16.mxu0 %v692_v25  ;;  %v670_v6 = vmul.f32 %v646_v49, %v1772_v18  ;;  %v656_v1 = vmul.f32 0.5, %v632_v55  ;;  %v634_v62 = vadd.f32 1.0, %v1422_v44  ;;  %v627_v42 = vadd.f32 1.0, %v1910_v0 }
 0x232   :  { %v1424_v10 = vpop.eup %1423  ;;  %v674_v14 = vmul.f32 %v650_v52, %v1796_v9  ;;  %999 = vmatmul.mubr.bf16.vlgmr.msra.gmra.mxu0 %v691_v13  ;;  %v676_v47 = vmul.f32 %v652_v56, %v1826_v33  ;;  %v654_v39 = vmul.f32 0.5, %v630_v63  ;;  %v631_v54 = vadd.f32 1.0, %v1416_v12 }
 0x233   :  { %v680_v17 = vmul.f32 %v656_v1, %v1849_v21  ;;  %v658_v16 = vmul.f32 0.5, %v634_v62  ;;  %v629_v18 = vadd.f32 1.0, %v1925_v19  ;;  %v693_v57 = vpack.c.bf16 %v1913_v32, %v1882_v26 }
 0x234   :  { %v694_v22 = vpack.c.bf16 %v674_v14, %v670_v6  ;;  %v651_v9 = vmul.f32 0.5, %v627_v42  ;;  %v633_v23 = vadd.f32 1.0, %v1420_v35  ;;  %v678_v20 = vmul.f32 %v654_v39, %v1829_v59 }
 0x235   :  { %v696_v28 = vpack.c.bf16 %v680_v17, %v676_v47  ;;  %v682_v33 = vmul.f32 %v658_v16, %v1855_v27  ;;  %v655_v53 = vmul.f32 0.5, %v631_v54  ;;  %v653_v26 = vmul.f32 0.5, %v629_v18 }
 0x236   :  { %1055 = vmatprep.mubr.bf16.mxu1 %v694_v22  ;;  %v657_v0 = vmul.f32 0.5, %v633_v23  ;;  %v675_v19 = vmul.f32 %v651_v9, %v1811_v38  ;;  %v635_v44 = vadd.f32 1.0, %v1424_v10 }
 0x237   :  { %v1426_v13 = vpop.eup %1425  ;;  %1056 = vmatmul.mubr.bf16.vlgmr.msra.gmra.mxu1 %v693_v57  ;;  %1006 = vmatprep.mubr.bf16.mxu0 %v696_v28  ;;  %v698_v21 = vpack.c.bf16 %v682_v33, %v678_v20  ;;  %v679_v12 = vmul.f32 %v655_v53, %v1832_v60  ;;  %v677_v36 = vmul.f32 %v653_v26, %v1818_v48 }
 0x238   :  { %v1428_v32 = vpop.eup %1427  ;;  %v681_v59 = vmul.f32 %v657_v0, %v1843_v15  ;;  %v637_v45 = vadd.f32 1.0, %v1426_v13  ;;  %v659_v63 = vmul.f32 0.5, %v635_v44 }
 0x239   :  { %v1430_v29 = vpop.eup %1429  ;;  %1063 = vmatprep.mubr.bf16.mxu1 %v698_v21  ;;  %v695_v34 = vpack.c.bf16 %v679_v12, %v675_v19  ;;  %v636_v27 = vadd.f32 1.0, %v1428_v32 }
 0x23a   :  { %v1432_v35 = vpop.eup %1431  ;;  %v638_v37 = vadd.f32 1.0, %v1430_v29  ;;  %v697_v60 = vpack.c.bf16 %v681_v59, %v677_v36  ;;  %v661_v1 = vmul.f32 0.5, %v637_v45  ;;  %v683_v17 = vmul.f32 %v659_v63, %v1870_v61 }
 0x23b   :  { %v1434_v31 = vpop.eup %1433  ;;  %1007 = vmatmul.mubr.bf16.gmra.mxu0 %v695_v34  ;;  %v639_v40 = vadd.f32 1.0, %v1432_v35  ;;  %v660_v55 = vmul.f32 0.5, %v636_v27 }
 0x23c   :  { %v641_v38 = vadd.f32 1.0, %v1434_v31  ;;  %v1436_v46 = vpop.eup %1435  ;;  %v662_v56 = vmul.f32 0.5, %v638_v37  ;;  %v685_v54 = vmul.f32 %v661_v1, %v1889_v41 }
 0x23d   :  { %v663_v50 = vmul.f32 0.5, %v639_v40  ;;  %v1438_v25 = vpop.eup %1437  ;;  %v640_v49 = vadd.f32 1.0, %v1436_v46  ;;  %v684_v10 = vmul.f32 %v660_v55, %v1892_v24 }
 0x23e   :  { %v665_v52 = vmul.f32 0.5, %v641_v38  ;;  %v642_v15 = vadd.f32 1.0, %v1438_v25  ;;  %v686_v39 = vmul.f32 %v662_v56, %v1895_v51  ;;  %v1154_v51 = vld [vmem:[%s2004_s6] ss:$0 sm:$0xff] }
 0x23f   :  { %1064 = vmatmul.mubr.bf16.gmra.mxu1 %v697_v60  ;;  %v664_v6 = vmul.f32 0.5, %v640_v49  ;;  %v687_v48 = vmul.f32 %v663_v50, %v1908_v58 }
 0x240   :  { %v666_v62 = vmul.f32 0.5, %v642_v15  ;;  %v689_v47 = vmul.f32 %v665_v52, %v1918_v11 }
 0x241   :  { %v688_v14 = vmul.f32 %v664_v6, %v1930_v43  ;;  %v699_v57 = vpack.c.bf16 %v687_v48, %v683_v17 }
 0x242   :  { %v690_v42 = vmul.f32 %v666_v62, %v1934_v30  ;;  %v701_v22 = vpack.c.bf16 %v689_v47, %v685_v54 }
 0x243   :  { %v700_v16 = vpack.c.bf16 %v688_v14, %v684_v10 }
 0x244   :  { %v702_v18 = vpack.c.bf16 %v690_v42, %v686_v39 }
 0x245   :  { %1014 = vmatprep.mubr.bf16.mxu0 %v700_v16 }
 0x246   :  { %1071 = vmatprep.mubr.bf16.mxu1 %v702_v18  ;;  %1015 = vmatmul.mubr.bf16.gmra.mxu0 %v699_v57 }
 0x247   :  { %1072 = vmatmul.mubr.bf16.gmra.mxu1 %v701_v22 }
 0x2f2   :  { %v1246_v24 = vpop.f32.mrf.mxu0 }
 0x2f4   :  { %v1247_v58 = vpop.f32.mrf.mxu0 }
 0x2f5   :  { %v1248_v43 = vadd.f32 %v1247_v58, %v1246_v24 }
 0x2f6   :  { %v1249_v11 = vpop.f32.mrf.mxu0 }
 0x2f7   :  { %v1280_v9 = vpop.f32.mrf.mxu1  ;;  %v1001_v41 = vadd.f32 %v1248_v43, %v1154_v51 }
 0x2f8   :  { %v1250_v61 = vpop.f32.mrf.mxu0 }
 0x2f9   :  { %v1281_v30 = vpop.f32.mrf.mxu1  ;;  %v1251_v23 = vadd.f32 %v1250_v61, %v1249_v11 }
 0x2fa   :  { %v1282_v33 = vadd.f32 %v1281_v30, %v1280_v9 }
 0x2fb   :  { %v1283_v28 = vpop.f32.mrf.mxu1  ;;  %v1252_v20 = vpop.f32.mrf.mxu0  ;;  %v1004_v53 = vadd.f32 %v1251_v23, %v1154_v51 }
 0x2fc   :  { %v1058_v21 = vadd.f32 %v1282_v33, %v1001_v41 }
 0x2fd   :  { %v1284_v0 = vpop.f32.mrf.mxu1  ;;  %v1253_v13 = vpop.f32.mrf.mxu0 }
 0x2fe   :  { %v1285_v19 = vadd.f32 %v1284_v0, %v1283_v28  ;;  %v1254_v12 = vadd.f32 %v1253_v13, %v1252_v20  ;;  %v1080_v35 = vadd.f32 %v1486_v2, %v1058_v21 }
 0x2ff   :  { %v1286_v26 = vpop.f32.mrf.mxu1  ;;  %v1255_v32 = vpop.f32.mrf.mxu0 }
 0x300   :  { %v1061_v29 = vadd.f32 %v1285_v19, %v1004_v53  ;;  %v1009_v31 = vadd.f32 %v1254_v12, %v1154_v51 }
 0x301   :  { %v1287_v34 = vpop.f32.mrf.mxu1  ;;  %v1256_v59 = vpop.f32.mrf.mxu0 }
 0x302   :  { %v1081_v27 = vadd.f32 %v1492_v4, %v1061_v29  ;;  %v1257_v36 = vadd.f32 %v1256_v59, %v1255_v32  ;;  %v1288_v40 = vadd.f32 %v1287_v34, %v1286_v26 }
 0x303   :  { %v1289_v37 = vpop.f32.mrf.mxu1 }
 0x304   :  { %v1214_v44 = vpack.c.bf16 %v1081_v27, %v1080_v35  ;;  %v1012_v45 = vadd.f32 %v1257_v36, %v1154_v51  ;;  %v1066_v46 = vadd.f32 %v1288_v40, %v1009_v31 }
 0x305   :  { %v1290_v38 = vpop.f32.mrf.mxu1 }
 0x306   :  { %1215 = vst [vmem:[%s2005_s7] sm:$0xff] %v1214_v44   ;;  %v1291_v60 = vadd.f32 %v1290_v38, %v1289_v37  ;;  %v1258_v50 = vpop.f32.mrf.mxu0  ;;  %v1082_v2 = vadd.f32 %v1488_v3, %v1066_v46 }
 0x307   :  { %v1292_v49 = vpop.f32.mrf.mxu1 }
 0x308   :  { %v1069_v25 = vadd.f32 %v1291_v60, %v1012_v45  ;;  %v1259_v55 = vpop.f32.mrf.mxu0 }
 0x309   :  { %v1260_v52 = vadd.f32 %v1259_v55, %v1258_v50  ;;  %v1293_v15 = vpop.f32.mrf.mxu1 }
 0x30a   :  { %v1083_v4 = vadd.f32 %v1494_v5, %v1069_v25  ;;  %v1261_v56 = vpop.f32.mrf.mxu0  ;;  %v1294_v48 = vadd.f32 %v1293_v15, %v1292_v49 }
 0x30b   :  { %v1017_v6 = vadd.f32 %v1260_v52, %v1154_v51  ;;  %v1295_v1 = vpop.f32.mrf.mxu1 }
 0x30c   :  { %v1219_v63 = vpack.c.bf16 %v1083_v4, %v1082_v2  ;;  %v1262_v62 = vpop.f32.mrf.mxu0 }
 0x30d   :  { %v1263_v10 = vadd.f32 %v1262_v62, %v1261_v56  ;;  %v1296_v14 = vpop.f32.mrf.mxu1  ;;  %v1074_v47 = vadd.f32 %v1294_v48, %v1017_v6 }
 0x30e   :  { %1228 = vst [vmem:[%s2005_s7 + $0x8] sm:$0xff] %v1219_v63   ;;  %v1297_v42 = vadd.f32 %v1296_v14, %v1295_v1 }
 0x30f   :  { %v1020_v39 = vadd.f32 %v1263_v10, %v1154_v51  ;;  %v1084_v5 = vadd.f32 %v1501_v7, %v1074_v47 }
 0x311   :  { %v1077_v3 = vadd.f32 %v1297_v42, %v1020_v39 }
 0x313   :  { %v1085_v17 = vadd.f32 %v1503_v8, %v1077_v3 }
 0x315   :  { %v1224_v16 = vpack.c.bf16 %v1085_v17, %v1084_v5 }
 0x317   :  { %1229 = vst [vmem:[%s2005_s7 + $0x10] sm:$0xff] %v1224_v16  }

// kernel: mae_forward.18
= control target key start
LH: loop header
LB: loop body
LE: loop exit
PB: predicated region body
PF: predicated region fallthrough
CT: control target
= control target key end

     0   :  { %s1948_s24 = smov 0   ;;  %s2350_s0 = inlined_call_operand.vmem [shape: bf16[2,24,128], index: 0, kind: input, shape index: {}]   ;;  %s2351_s1 = inlined_call_operand.vmem [shape: f32[1,128], index: 1, kind: input, shape index: {}]   ;;  %s2352_s2 = inlined_call_operand.vmem [shape: f32[1,128], index: 2, kind: input, shape index: {}]   ;;  %s2353_s3 = inlined_call_operand.vmem [shape: bf16[128,384], index: 3, kind: input, shape index: {}]   ;;  %s2354_s4 = inlined_call_operand.vmem [shape: f32[1,384], index: 4, kind: input, shape index: {}]   ;;  %s2355_s5 = inlined_call_operand.vmem [shape: bf16[128,128], index: 5, kind: input, shape index: {}]   ;;  %s2356_s6 = inlined_call_operand.vmem [shape: f32[1,128], index: 6, kind: input, shape index: {}]   ;;  %s2357_s7 = inlined_call_operand.vmem [shape: bf16[2,24,128], index: 7, kind: output, shape index: {}]  }
   0x1 LB: > { %s1546_s25 = sadd.s32 4294967295, %s1902_s24   ;;  %p1550_p0 = scmp.ge.s32.totalorder %s1902_s24, 1  ;;  %s1902_s24 = sphi %s1948_s24, %s17_s24  }
   0x2   : > { %p237_p1 = scmp.lt.s32.totalorder %s1902_s24, 3 }
   0x4   : > { %p238_p2 = pnand %p1550_p0, %p237_p1 }
   0x5   : > { %p269_p3 = scmp.lt.s32.totalorder (!%p238_p2), %s1546_s25, 1  ;;  %s1905_s21 = smov (!%p238_p2), 96  }
   0x6   : > { %241 = sbr.rel (%p238_p2) target bundleno = 1735 (0x6c7), region = 48  ;;  %s1906_s22 = smov (!%p238_p2), 32  }
   0x7   : > { %s1907_s23 = smov (!%p238_p2), 64  }
   0xb   : > { %s2359_s25 = smov (!%p269_p3, %s1546_s25), 1  ;;  %v1802_v5 = vld [vmem:[%s2353_s3 + $0xac] ss:$12 sps:$4 sm:$0xff]   ;;  %v1804_v6 = vld [vmem:[%s2353_s3 + $0xa8] ss:$12 sps:$4 sm:$0xff]   ;;  %v1904_v34 = vmov 0  }
   0xc   : > { %s1789_s26 = smul.u32 12, %s2359_s25  ;;  %v1805_v7 = vld [vmem:[%s2353_s3 + $0xb0] ss:$12 sps:$4 sm:$0xff]   ;;  %519 = vmatprep.subr.bf16.mxu0 %v1802_v5  ;;  %v1806_v20 = vld [vmem:[%s2353_s3 + $0x94] ss:$12 sps:$4 sm:$0xff]   ;;  %551 = vmatprep.mubr.bf16.mxu0 %v1904_v34  ;;  %vm669_vm0 = vcmask 261120  }
   0xd   : > { %1673 = vmatprep.subr.bf16.mxu1 %v1805_v7  ;;  %520 = vmatpush1.bf16.msra.mxu0 %v1804_v6  ;;  %v1808_v21 = vld [vmem:[%s2353_s3 + $0x90] ss:$12 sps:$4 sm:$0xff]   ;;  %v1809_v22 = vld [vmem:[%s2353_s3 + $0x98] ss:$12 sps:$4 sm:$0xff]   ;;  %v1813_v25 = vld [vmem:[%s2353_s3 + $0x80] ss:$12 sps:$4 sm:$0xff]   ;;  %v376_v6 = vlaneseq }
   0xe   : > { %s273_s29 = scalar_lea.vmem %s2350_s0, %s1789_s26  ;;  %1674 = vmatpush3.bf16.msra.mxu1 %v1805_v7  ;;  %521 = vmatprep.subr.bf16.mxu0 %v1806_v20  ;;  %v1810_v23 = vld [vmem:[%s2353_s3 + $0x7c] ss:$12 sps:$4 sm:$0xff]   ;;  %v1812_v24 = vld [vmem:[%s2353_s3 + $0x78] ss:$12 sps:$4 sm:$0xff]   ;;  %v1816_v27 = vld [vmem:[%s2353_s3 + $0x60] ss:$12 sps:$4 sm:$0xff]   ;;  %s278_s27 = scalar_lea.vmem %s2357_s7, %s1789_s26 }
   0xf   : > { %v1613_v0 = vld [vmem:[%s273_s29] sm:$0xff]   ;;  %v282_v1 = vld [vmem:[%s273_s29 + $0x8] sm:$0xf]  ;;  %1675 = vmatprep.subr.bf16.mxu1 %v1809_v22  ;;  %v1818_v29 = vld [vmem:[%s2353_s3 + $0x4c] ss:$12 sps:$4 sm:$0xff]   ;;  %v2070_v7 = vshrl.u32 %v376_v6, 7 }
  0x10   : > { %v1964_v2 = vunpack.c.l.bf16 %v1613_v0  ;;  %v1966_v3 = vunpack.c.l.bf16 %v282_v1  ;;  %v1970_v4 = vunpack.c.h.bf16 %v1613_v0  ;;  %v1814_v26 = vld [vmem:[%s2353_s3 + $0x64] ss:$12 sps:$4 sm:$0xff]   ;;  %v1817_v28 = vld [vmem:[%s2353_s3 + $0x68] ss:$12 sps:$4 sm:$0xff]   ;;  %v1829_v37 = vld [vmem:[%s2353_s3 + $0x20] ss:$12 sps:$4 sm:$0xff]  }
  0x11   : > { %522 = vmatpush1.bf16.msra.mxu0 %v1808_v21  ;;  %v1821_v30 = vld [vmem:[%s2353_s3 + $0x50] ss:$12 sps:$4 sm:$0xff]   ;;  %v1820_v31 = vld [vmem:[%s2353_s3 + $0x48] ss:$12 sps:$4 sm:$0xff]   ;;  %v1825_v33 = vld [vmem:[%s2353_s3 + $0x38] ss:$12 sps:$4 sm:$0xff]  }
  0x12   : > { %286 = vadd.xlane.f32.xlu0 %v1964_v2  ;;  %290 = vadd.xlane.f32.xlu1 %v1966_v3  ;;  %v1822_v32 = vld [vmem:[%s2353_s3 + $0x34] ss:$12 sps:$4 sm:$0xff]   ;;  %v1824_v35 = vld [vmem:[%s2353_s3 + $0x30] ss:$12 sps:$4 sm:$0xff]   ;;  %v1828_v38 = vld [vmem:[%s2353_s3 + $0x18] ss:$12 sps:$4 sm:$0xff]  }
  0x13   : > { %1676 = vmatpush3.bf16.msra.mxu1 %v1809_v22  ;;  %523 = vmatprep.subr.bf16.mxu0 %v1810_v23  ;;  %v1826_v36 = vld [vmem:[%s2353_s3 + $0x1c] ss:$12 sps:$4 sm:$0xff]   ;;  %v1830_v39 = vld [vmem:[%s2353_s3 + $0x4] ss:$12 sps:$4 sm:$0xff]   ;;  %v1832_v41 = vld [vmem:[%s2353_s3] ss:$12 sps:$4 sm:$0xff]  }
  0x14   : > { %1677 = vmatprep.subr.bf16.mxu1 %v1813_v25  ;;  %v1833_v40 = vld [vmem:[%s2353_s3 + $0x8] ss:$12 sps:$4 sm:$0xff]   ;;  %v1553_v53 = vld [vmem:[%s2351_s1] ss:$0 sm:$0xff]  ;;  %vm1086_vm1 = vcmask 1043456   ;;  %vm939_vm3 = vcmask 195584  }
  0x15   : > { %524 = vmatpush1.bf16.msra.mxu0 %v1812_v24  ;;  %v1554_v59 = vld [vmem:[%s2352_s2] ss:$0 sm:$0xff]  ;;  %vm1341_vm4 = vcmask 523264   ;;  %vm1346_vm5 = vcmask 785408  }
  0x16   : > { %288 = vadd.xlane.f32.xlu0 %v1970_v4  ;;  %525 = vmatprep.subr.bf16.mxu0 %v1814_v26 }
  0x17   : > { %1678 = vmatpush3.bf16.msra.mxu1 %v1813_v25 }
  0x18   : > { %1679 = vmatprep.subr.bf16.mxu1 %v1817_v28 }
  0x19   : > { %526 = vmatpush1.bf16.msra.mxu0 %v1816_v27 }
  0x1a   : > { %527 = vmatprep.subr.bf16.mxu0 %v1818_v29 }
  0x1b   : > { %1680 = vmatpush3.bf16.msra.mxu1 %v1817_v28 }
  0x1c   : > { %1681 = vmatprep.subr.bf16.mxu1 %v1821_v30 }
  0x1d   : > { %528 = vmatpush1.bf16.msra.mxu0 %v1820_v31 }
  0x1e   : > { %529 = vmatprep.subr.bf16.mxu0 %v1822_v32 }
  0x1f   : > { %1682 = vmatpush3.bf16.msra.mxu1 %v1821_v30 }
  0x20   : > { %1683 = vmatprep.subr.bf16.mxu1 %v1825_v33 }
  0x21   : > { %530 = vmatpush1.bf16.msra.mxu0 %v1824_v35 }
  0x22   : > { %531 = vmatprep.subr.bf16.mxu0 %v1826_v36 }
  0x23   : > { %1684 = vmatpush3.bf16.msra.mxu1 %v1825_v33 }
  0x24   : > { %1685 = vmatprep.subr.bf16.mxu1 %v1829_v37 }
  0x25   : > { %532 = vmatpush1.bf16.msra.mxu0 %v1828_v38 }
  0x26   : > { %533 = vmatprep.subr.bf16.mxu0 %v1830_v39 }
  0x27   : > { %1686 = vmatpush3.bf16.msra.mxu1 %v1829_v37 }
  0x28   : > { %1687 = vmatprep.subr.bf16.mxu1 %v1833_v40 }
  0x29   : > { %534 = vmatpush1.bf16.msra.mxu0 %v1832_v41 }
  0x2b   : > { %1688 = vmatpush3.bf16.msra.mxu1 %v1833_v40  ;;  %v386_v40 = vsub.s32 2, %v2070_v7 }
  0x9b   : > { %v287_v8 = vpop.xlane.xlu0 %286  ;;  %v291_v9 = vpop.xlane.xlu1 %290 }
  0x9c   : > { %v293_v10 = vmul.f32 0.0078125, %v287_v8  ;;  %v295_v11 = vmul.f32 0.0078125, %v291_v9  ;;  %v378_v8 = vsub.s32 0, %v2070_v7  ;;  %v374_v9 = vld [vmem:[%s2354_s4] sm:$0x7] }
  0x9e   : > { %v1983_v12 = vsub.f32 %v1964_v2, %v293_v10  ;;  %v1986_v13 = vsub.f32 %v1966_v3, %v295_v11  ;;  %v382_v10 = vsub.s32 1, %v2070_v7 }
  0x9f   : > { %v289_v14 = vpop.xlane.xlu0 %288 }
  0xa0   : > { %v294_v15 = vmul.f32 0.0078125, %v289_v14  ;;  %v299_v16 = vmul.f32 %v1983_v12, %v1983_v12  ;;  %v301_v18 = vmul.f32 %v1986_v13, %v1986_v13 }
  0xa2   : > { %v1991_v17 = vsub.f32 %v1970_v4, %v294_v15  ;;  %302 = vadd.xlane.f32.xlu1 %v299_v16  ;;  %v383_v15 = vrot.slane %v374_v9, %v382_v10 }
  0xa4   : > { %v300_v19 = vmul.f32 %v1991_v17, %v1991_v17 }
  0xa6   : > { %306 = vadd.xlane.f32.xlu1 %v301_v18  ;;  %304 = vadd.xlane.f32.xlu0 %v300_v19 }
 0x12b   : > { %v303_v42 = vpop.xlane.xlu1 %302 }
 0x12c   : > { %v308_v43 = vmul.f32 0.0078125, %v303_v42 }
 0x12e   : > { %v311_v44 = vadd.f32 1e-06, %v308_v43  ;;  %v387_v43 = vrot.slane %v374_v9, %v386_v40 }
 0x12f   : > { %v307_v45 = vpop.xlane.xlu1 %306  ;;  %v305_v46 = vpop.xlane.xlu0 %304 }
 0x130   : > { %1842 = vrsqrt.f32 %v311_v44  ;;  %v310_v47 = vmul.f32 0.0078125, %v307_v45  ;;  %v309_v48 = vmul.f32 0.0078125, %v305_v46 }
 0x132   : > { %v313_v49 = vadd.f32 1e-06, %v310_v47  ;;  %v312_v50 = vadd.f32 1e-06, %v309_v48 }
 0x134   : > { %1844 = vrsqrt.f32 %v313_v49 }
 0x135   : > { %1846 = vrsqrt.f32 %v312_v50 }
 0x13d   : > { %v1843_v51 = vpop.eup %1842 }
 0x13e   : > { %v317_v52 = vmul.f32 %v1843_v51, %v1983_v12  ;;  %v379_v12 = vrot.slane %v374_v9, %v378_v8 }
 0x140   : > { %v327_v58 = vmul.f32 %v1553_v53, %v317_v52 }
 0x141   : > { %v1845_v54 = vpop.eup %1844 }
 0x142   : > { %v1847_v55 = vpop.eup %1846  ;;  %v319_v56 = vmul.f32 %v1845_v54, %v1986_v13  ;;  %v337_v63 = vadd.f32 %v1554_v59, %v327_v58 }
 0x143   : > { %v318_v57 = vmul.f32 %v1847_v55, %v1991_v17 }
 0x144   : > { %v329_v60 = vmul.f32 %v1553_v53, %v319_v56 }
 0x145   : > { %v328_v61 = vmul.f32 %v1553_v53, %v318_v57 }
 0x146   : > { %v339_v62 = vadd.f32 %v1554_v59, %v329_v60 }
 0x147   : > { %v338_v0 = vadd.f32 %v1554_v59, %v328_v61 }
 0x148   : > { %v341_v1 = vpack.c.bf16 %v339_v62, %v339_v62 }
 0x149   : > { %v340_v5 = vpack.c.bf16 %v338_v0, %v337_v63  ;;  %v2131_v63 = vand.u32 127, %v376_v6 }
 0x14b   : > { %552 = vmatmul.mubr.bf16.vlgmr.msra.gmra.mxu0 %v340_v5  ;;  %1689 = vmatprep.mubr.bf16.mxu1 %v340_v5  ;;  %vm924_vm2 = vcmp.lt.s32.totalorder %v2131_v63, 17 }
 0x14c   : > { %1690 = vmatmul.mubr.bf16.vlgmr.msra.gmra.mxu1 %v341_v1  ;;  %561 = vmatprep.mubr.bf16.mxu0 %v1904_v34 }
 0x153   : > { %562 = vmatmul.mubr.bf16.gmra.mxu0 %v341_v1 }
 0x20b   : > { %v553_v11 = vpop.f32.mrf.mxu0 }
 0x20c   : > { %v2077_v13 = vpop.f32.mrf.mxu1  ;;  %v554_v18 = vadd.f32 %v553_v11, %v379_v12 }
 0x20d   : > { %v555_v14 = vpop.f32.mrf.mxu0  ;;  %v613_v48 = vadd.f32 %v2077_v13, %v387_v43 }
 0x20e   : > { %v2079_v16 = vpop.f32.mrf.mxu1  ;;  %v556_v22 = vadd.f32 %v555_v14, %v383_v15 }
 0x20f   : > { %v557_v17 = vpop.f32.mrf.mxu0  ;;  %v2111_v50 = vpack.c.bf16 %v613_v48, %v613_v48  ;;  %v605_v57 = vadd.f32 %v2079_v16, %v387_v43 }
 0x210   : > { %v558_v19 = vadd.f32 %v557_v17, %v379_v12  ;;  %v1692_v20 = vpop.f32.mrf.mxu1 }
 0x211   : > { %v559_v21 = vpop.f32.mrf.mxu0  ;;  %v1088_v60 = vsel %vm1086_vm1, %v2111_v50, 0 }
 0x212   : > { %v618_v23 = vpack.c.bf16 %v558_v19, %v554_v18  ;;  %v560_v24 = vadd.f32 %v559_v21, %v383_v15  ;;  %v607_v52 = vpop.f32.mrf.mxu1 }
 0x213   : > { %v563_v25 = vpop.f32.mrf.mxu0  ;;  %v608_v56 = vadd.f32 %v607_v52, %v387_v43 }
 0x214   : > { %v619_v26 = vpack.c.bf16 %v560_v24, %v556_v22  ;;  %1697 = vmatprep.mubr.msk.bf16.mxu1 %vm669_vm0, %v618_v23  ;;  %v564_v33 = vadd.f32 %v563_v25, %v379_v12 }
 0x215   : > { %v565_v27 = vpop.f32.mrf.mxu0  ;;  %v2121_v59 = vpack.c.bf16 %v608_v56, %v605_v57 }
 0x216   : > { %v566_v28 = vadd.f32 %v565_v27, %v383_v15  ;;  %640 = vrot.lane.b32.xlu1 %v619_v26, %s1905_s21  ;;  %v621_v34 = vpack.c.bf16 %v564_v33, %v564_v33  ;;  %v677_v35 = vsel %vm669_vm0, %v619_v26, 0 }
 0x217   : > { %v567_v29 = vpop.f32.mrf.mxu0 }
 0x218   : > { %v622_v30 = vpack.c.bf16 %v566_v28, %v566_v28 }
 0x219   : > { %v568_v31 = vpop.f32.mrf.mxu0 }
 0x21a   : > { %642 = vrot.lane.b32.xlu0 %v622_v30, %s1905_s21  ;;  %1777 = vmatprep.subr.msk.bf16.mxu1 %vm669_vm0, %v622_v30  ;;  %v680_v32 = vsel %vm669_vm0, %v622_v30, 0 }
 0x21b   : > { %626 = vrot.lane.b32.xlu1 %v618_v23, %s1905_s21  ;;  %1694 = vmatpush3.bf16.xpose.msra.mxu1 %v680_v32 }
 0x21c   : > { %1778 = vmatprep.subr.msk.bf16.mxu1 %vm669_vm0, %v619_v26 }
 0x21e   : > { %650 = vrot.lane.b32.xlu0 %v622_v30, %s1906_s22 }
 0x21f   : > { %646 = vrot.lane.b32.xlu1 %v622_v30, %s1907_s23 }
 0x222   : > { %644 = vrot.lane.b32.xlu0 %v619_v26, %s1907_s23 }
 0x223   : > { %628 = vrot.lane.b32.xlu1 %v621_v34, %s1905_s21  ;;  %1696 = vmatpush3.bf16.xpose.msra.mxu1 %v677_v35 }
 0x226   : > { %630 = vrot.lane.b32.xlu0 %v618_v23, %s1907_s23 }
 0x227   : > { %648 = vrot.lane.b32.xlu1 %v619_v26, %s1906_s22 }
 0x22a   : > { %634 = vrot.lane.b32.xlu0 %v618_v23, %s1906_s22  ;;  %1698 = vmatmul.mubr.msk.bf16.vlgmr.msra.gmra.mxu1 %vm669_vm0, %v621_v34 }
 0x22b   : > { %632 = vrot.lane.b32.xlu1 %v621_v34, %s1907_s23 }
 0x22f   : > { %636 = vrot.lane.b32.xlu1 %v621_v34, %s1906_s22 }
 0x288   : > { %v641_v36 = vpop.permute.xlu1 %640 }
 0x289   : > { %v737_v46 = vsel %vm669_vm0, %v641_v36, 0 }
 0x28c   : > { %v643_v37 = vpop.permute.xlu0 %642 }
 0x28d   : > { %v740_v38 = vsel %vm669_vm0, %v643_v37, 0  ;;  %v627_v39 = vpop.permute.xlu1 %626  ;;  %1779 = vmatprep.subr.msk.bf16.mxu1 %vm669_vm0, %v643_v37 }
 0x28e   : > { %1705 = vmatprep.mubr.msk.bf16.mxu1 %vm669_vm0, %v627_v39  ;;  %1702 = vmatpush3.bf16.xpose.msra.mxu1 %v740_v38 }
 0x28f   : > { %1780 = vmatprep.subr.msk.bf16.mxu1 %vm669_vm0, %v641_v36 }
 0x290   : > { %v651_v41 = vpop.permute.xlu0 %650 }
 0x291   : > { %v647_v42 = vpop.permute.xlu1 %646  ;;  %v860_v55 = vsel %vm669_vm0, %v651_v41, 0 }
 0x292   : > { %v800_v44 = vsel %vm669_vm0, %v647_v42, 0  ;;  %1781 = vmatprep.subr.msk.bf16.mxu0 %vm669_vm0, %v647_v42 }
 0x293   : > { %1710 = vmatpush3.bf16.xpose.msra.mxu0 %v800_v44 }
 0x294   : > { %v645_v45 = vpop.permute.xlu0 %644 }
 0x295   : > { %v629_v47 = vpop.permute.xlu1 %628  ;;  %1782 = vmatprep.subr.msk.bf16.mxu0 %vm669_vm0, %v645_v45  ;;  %v797_v51 = vsel %vm669_vm0, %v645_v45, 0 }
 0x296   : > { %1704 = vmatpush3.bf16.xpose.msra.mxu1 %v737_v46 }
 0x297   : > { %1783 = vmatprep.subr.msk.bf16.mxu1 %vm669_vm0, %v651_v41 }
 0x298   : > { %v631_v49 = vpop.permute.xlu0 %630 }
 0x299   : > { %1713 = vmatprep.mubr.msk.bf16.mxu0 %vm669_vm0, %v631_v49  ;;  %v649_v53 = vpop.permute.xlu1 %648 }
 0x29a   : > { %v857_v61 = vsel %vm669_vm0, %v649_v53, 0 }
 0x29b   : > { %1712 = vmatpush3.bf16.xpose.msra.mxu0 %v797_v51 }
 0x29c   : > { %1785 = vmatprep.subr.msk.bf16.mxu0 %vm1086_vm1, %v2111_v50  ;;  %v635_v54 = vpop.permute.xlu0 %634 }
 0x29d   : > { %1706 = vmatmul.mubr.msk.bf16.vlgmr.msra.gmra.mxu1 %vm669_vm0, %v629_v47  ;;  %v633_v58 = vpop.permute.xlu1 %632 }
 0x29e   : > { %1718 = vmatpush3.bf16.xpose.msra.mxu1 %v860_v55  ;;  %1721 = vmatprep.mubr.msk.bf16.mxu1 %vm669_vm0, %v635_v54 }
 0x29f   : > { %1784 = vmatprep.subr.msk.bf16.mxu1 %vm669_vm0, %v649_v53 }
 0x2a1   : > { %v637_v62 = vpop.permute.xlu1 %636 }
 0x2a2   : > { %1714 = vmatmul.mubr.msk.bf16.vlgmr.msra.gmra.mxu0 %vm669_vm0, %v633_v58 }
 0x2a3   : > { %1726 = vmatpush3.bf16.msra.mxu0 %v1088_v60 }
 0x2a4   : > { %1727 = vmatprep.subr.bf16.mxu0 %v2121_v59 }
 0x2a6   : > { %1720 = vmatpush3.bf16.xpose.msra.mxu1 %v857_v61 }
 0x2a7   : > { %1728 = vmatpush3.bf16.msra.mxu0 %v2121_v59 }
 0x2ad   : > { %1722 = vmatmul.mubr.msk.bf16.vlgmr.msra.gmra.mxu1 %vm669_vm0, %v637_v62 }
 0x2ea   : > { %v1699_v0 = vpop.f32.mrf.mxu1 }
 0x2eb   : > { %v912_v1 = vmul.f32 0.17677669, %v1699_v0 }
 0x2ec   : > { %v716_v5 = vpop.f32.mrf.mxu1 }
 0x2ed   : > { %v910_v7 = vmul.f32 0.17677669, %v716_v5  ;;  %v2136_v8 = vsel %vm924_vm2, %v912_v1, -1e+30 }
 0x2ee   : > { %v1700_v9 = vpop.f32.mrf.mxu1  ;;  %v946_v10 = vsel %vm939_vm3, %v2136_v8, -inf }
 0x2ef   : > { %947 = vmax.xlane.f32.xlu0 %v946_v10  ;;  %v2142_v6 = vsel %vm924_vm2, %v910_v7, -1e+30 }
 0x2f0   : > { %v719_v11 = vpop.f32.mrf.mxu1  ;;  %v940_v13 = vsel %vm939_vm3, %v2142_v6, -inf }
 0x2f1   : > { %v911_v12 = vmul.f32 0.17677669, %v719_v11 }
 0x2f3   : > { %941 = vmax.xlane.f32.xlu0 %v940_v13  ;;  %v2148_v14 = vsel %vm924_vm2, %v911_v12, -1e+30 }
 0x2f4   : > { %v943_v15 = vsel %vm939_vm3, %v2148_v14, -inf }
 0x2f5   : > { %944 = vmax.xlane.f32.xlu1 %v943_v15 }
 0x35d   : > { %v1707_v16 = vpop.f32.mrf.mxu1 }
 0x35e   : > { %v915_v17 = vmul.f32 0.17677669, %v1707_v16 }
 0x35f   : > { %v776_v18 = vpop.f32.mrf.mxu1 }
 0x360   : > { %v913_v19 = vmul.f32 0.17677669, %v776_v18  ;;  %v2154_v20 = vsel %vm924_vm2, %v915_v17, -1e+30 }
 0x361   : > { %v1708_v21 = vpop.f32.mrf.mxu1  ;;  %v955_v22 = vsel %vm939_vm3, %v2154_v20, -inf }
 0x362   : > { %v1715_v23 = vpop.f32.mrf.mxu0  ;;  %956 = vmax.xlane.f32.xlu1 %v955_v22  ;;  %v2160_v24 = vsel %vm924_vm2, %v913_v19, -1e+30 }
 0x363   : > { %v779_v25 = vpop.f32.mrf.mxu1  ;;  %v949_v26 = vsel %vm939_vm3, %v2160_v24, -inf  ;;  %v918_v34 = vmul.f32 0.17677669, %v1715_v23 }
 0x364   : > { %v836_v27 = vpop.f32.mrf.mxu0  ;;  %950 = vmax.xlane.f32.xlu0 %v949_v26  ;;  %v914_v28 = vmul.f32 0.17677669, %v779_v25 }
 0x365   : > { %v916_v29 = vmul.f32 0.17677669, %v836_v27  ;;  %v2181_v41 = vsel %vm924_vm2, %v918_v34, -1e+30 }
 0x366   : > { %v1716_v30 = vpop.f32.mrf.mxu0  ;;  %v2172_v36 = vsel %vm924_vm2, %v914_v28, -1e+30  ;;  %v964_v45 = vsel %vm939_vm3, %v2181_v41, -inf }
 0x367   : > { %v2166_v31 = vsel %vm924_vm2, %v916_v29, -1e+30  ;;  %v952_v39 = vsel %vm939_vm3, %v2172_v36, -inf }
 0x368   : > { %v839_v32 = vpop.f32.mrf.mxu0  ;;  %v958_v33 = vsel %vm939_vm3, %v2166_v31, -inf }
 0x369   : > { %v917_v35 = vmul.f32 0.17677669, %v839_v32  ;;  %959 = vmax.xlane.f32.xlu0 %v958_v33 }
 0x36b   : > { %v934_v37 = vsel %vm924_vm2, %v917_v35, -1e+30 }
 0x36c   : > { %v961_v38 = vsel %vm939_vm3, %v934_v37, -inf }
 0x36d   : > { %962 = vmax.xlane.f32.xlu1 %v961_v38  ;;  %953 = vmax.xlane.f32.xlu0 %v952_v39  ;;  %v1723_v40 = vpop.f32.mrf.mxu1 }
 0x36e   : > { %v921_v43 = vmul.f32 0.17677669, %v1723_v40 }
 0x36f   : > { %v896_v42 = vpop.f32.mrf.mxu1 }
 0x370   : > { %v919_v44 = vmul.f32 0.17677669, %v896_v42  ;;  %v2193_v52 = vsel %vm924_vm2, %v921_v43, -1e+30 }
 0x371   : > { %965 = vmax.xlane.f32.xlu0 %v964_v45  ;;  %v1724_v46 = vpop.f32.mrf.mxu1  ;;  %v973_v54 = vsel %vm939_vm3, %v2193_v52, -inf }
 0x372   : > { %v2187_v47 = vsel %vm924_vm2, %v919_v44, -1e+30 }
 0x373   : > { %v899_v48 = vpop.f32.mrf.mxu1  ;;  %v967_v49 = vsel %vm939_vm3, %v2187_v47, -inf }
 0x374   : > { %v920_v51 = vmul.f32 0.17677669, %v899_v48  ;;  %968 = vmax.xlane.f32.xlu1 %v967_v49 }
 0x376   : > { %v2197_v53 = vsel %vm924_vm2, %v920_v51, -1e+30 }
 0x377   : > { %v970_v55 = vsel %vm939_vm3, %v2197_v53, -inf }
 0x378   : > { %974 = vmax.xlane.f32.xlu1 %v973_v54  ;;  %971 = vmax.xlane.f32.xlu0 %v970_v55  ;;  %v948_v56 = vpop.xlane.xlu0 %947 }
 0x379   : > { %v978_v57 = vsub.f32 %v2136_v8, %v948_v56 }
 0x37b   : > { %v992_v60 = vmul.f32 1.442695, %v978_v57 }
 0x37c   : > { %v942_v58 = vpop.xlane.xlu0 %941 }
 0x37d   : > { %v976_v61 = vsub.f32 %v2142_v6, %v942_v58  ;;  %1848 = vpow2.f32 %v992_v60 }
 0x37e   : > { %v945_v62 = vpop.xlane.xlu1 %944 }
 0x37f   : > { %v988_v63 = vmul.f32 1.442695, %v976_v61  ;;  %v977_v0 = vsub.f32 %v2148_v14, %v945_v62 }
 0x381   : > { %1850 = vpow2.f32 %v988_v63  ;;  %v990_v1 = vmul.f32 1.442695, %v977_v0 }
 0x383   : > { %1852 = vpow2.f32 %v990_v1 }
 0x389   : > { %654 = vrot.lane.b32.xlu1 %v2121_v59, %s1905_s21 }
 0x38a   : > { %v2214_v5 = vpop.eup %1848 }
 0x38b   : > { %v1018_v7 = vsel %vm939_vm3, %v2214_v5, 0.0 }
 0x38d   : > { %661 = vrot.lane.b32.xlu1 %v2111_v50, %s1907_s23 }
 0x38e   : > { %656 = vrot.lane.b32.xlu0 %v2111_v50, %s1905_s21 }
 0x391   : > { %666 = vrot.lane.b32.xlu1 %v2111_v50, %s1906_s22  ;;  %v2218_v50 = vpop.eup %1850 }
 0x392   : > { %v1012_v8 = vsel %vm939_vm3, %v2218_v50, 0.0  ;;  %v2222_v9 = vpop.eup %1852 }
 0x393   : > { %v1015_v10 = vsel %vm939_vm3, %v2222_v9, 0.0 }
 0x3ad   : > { %1019 = vadd.xlane.f32.xlu0 %v1018_v7 }
 0x3b1   : > { %1013 = vadd.xlane.f32.xlu0 %v1012_v8 }
 0x3b5   : > { %1016 = vadd.xlane.f32.xlu1 %v1015_v10 }
 0x3eb   : > { %v957_v6 = vpop.xlane.xlu1 %956 }
 0x3ec   : > { %v981_v11 = vsub.f32 %v2154_v20, %v957_v6 }
 0x3ed   : > { %v951_v12 = vpop.xlane.xlu0 %950 }
 0x3ee   : > { %v998_v13 = vmul.f32 1.442695, %v981_v11  ;;  %v979_v14 = vsub.f32 %v2160_v24, %v951_v12 }
 0x3f0   : > { %1854 = vpow2.f32 %v998_v13  ;;  %v994_v15 = vmul.f32 1.442695, %v979_v14 }
 0x3f2   : > { %1856 = vpow2.f32 %v994_v15  ;;  %v960_v16 = vpop.xlane.xlu0 %959 }
 0x3f3   : > { %v982_v21 = vsub.f32 %v2166_v31, %v960_v16 }
 0x3f5   : > { %v1000_v20 = vmul.f32 1.442695, %v982_v21 }
 0x3f6   : > { %v963_v17 = vpop.xlane.xlu1 %962  ;;  %v954_v18 = vpop.xlane.xlu0 %953 }
 0x3f7   : > { %v983_v19 = vsub.f32 %v934_v37, %v963_v17  ;;  %v980_v27 = vsub.f32 %v2172_v36, %v954_v18 }
 0x3f9   : > { %v1002_v22 = vmul.f32 1.442695, %v983_v19  ;;  %v996_v32 = vmul.f32 1.442695, %v980_v27 }
 0x3fa   : > { %v966_v23 = vpop.xlane.xlu0 %965 }
 0x3fb   : > { %1858 = vpow2.f32 %v1002_v22  ;;  %v984_v25 = vsub.f32 %v2181_v41, %v966_v23 }
 0x3fd   : > { %v2230_v26 = vpop.eup %1854  ;;  %v1004_v24 = vmul.f32 1.442695, %v984_v25  ;;  %v969_v28 = vpop.xlane.xlu1 %968 }
 0x3fe   : > { %v1027_v29 = vsel %vm939_vm3, %v2230_v26, 0.0  ;;  %v985_v31 = vsub.f32 %v2187_v47, %v969_v28 }
 0x3ff   : > { %v2235_v30 = vpop.eup %1856  ;;  %1860 = vpow2.f32 %v1004_v24  ;;  %1028 = vadd.xlane.f32.xlu1 %v1027_v29 }
 0x400   : > { %1862 = vpow2.f32 %v1000_v20  ;;  %v1021_v36 = vsel %vm939_vm3, %v2235_v30, 0.0  ;;  %v1006_v38 = vmul.f32 1.442695, %v985_v31 }
 0x401   : > { %v975_v33 = vpop.xlane.xlu1 %974  ;;  %v972_v34 = vpop.xlane.xlu0 %971  ;;  %1864 = vpow2.f32 %v996_v32 }
 0x402   : > { %v987_v35 = vsub.f32 %v2193_v52, %v975_v33  ;;  %v986_v37 = vsub.f32 %v2197_v53, %v972_v34 }
 0x403   : > { %1022 = vadd.xlane.f32.xlu1 %v1021_v36 }
 0x404   : > { %v1010_v39 = vmul.f32 1.442695, %v987_v35  ;;  %v1008_v40 = vmul.f32 1.442695, %v986_v37 }
 0x405   : > { %v655_v41 = vpop.permute.xlu1 %654  ;;  %v657_v42 = vpop.permute.xlu0 %656 }
 0x406   : > { %1866 = vpow2.f32 %v1010_v39  ;;  %v1145_v43 = vsel %vm1086_vm1, %v657_v42, 0  ;;  %1786 = vmatprep.subr.msk.bf16.mxu1 %vm1086_vm1, %v657_v42 }
 0x407   : > { %1734 = vmatpush3.bf16.msra.mxu1 %v1145_v43  ;;  %1868 = vpow2.f32 %v1006_v38 }
 0x408   : > { %v2244_v44 = vpop.eup %1858  ;;  %1735 = vmatprep.subr.bf16.mxu1 %v655_v41  ;;  %1870 = vpow2.f32 %v1008_v40 }
 0x409   : > { %v1033_v45 = vsel %vm939_vm3, %v2244_v44, 0.0  ;;  %v662_v46 = vpop.permute.xlu1 %661 }
 0x40a   : > { %1034 = vadd.xlane.f32.xlu1 %v1033_v45  ;;  %1787 = vmatprep.subr.msk.bf16.mxu0 %vm1086_vm1, %v662_v46 }
 0x40b   : > { %1736 = vmatpush3.bf16.msra.mxu1 %v655_v41 }
 0x40c   : > { %v2249_v47 = vpop.eup %1860 }
 0x40d   : > { %v2251_v48 = vpop.permute.xlu1 %666  ;;  %v1036_v49 = vsel %vm939_vm3, %v2249_v47, 0.0  ;;  %v2255_v51 = vpop.eup %1862 }
 0x40e   : > { %1037 = vadd.xlane.f32.xlu0 %v1036_v49  ;;  %1788 = vmatprep.subr.msk.bf16.mxu1 %vm1086_vm1, %v2251_v48  ;;  %v1030_v52 = vsel %vm939_vm3, %v2255_v51, 0.0  ;;  %v2261_v53 = vpop.eup %1864  ;;  %v1836_v49 = vld [vmem:[%s2355_s5 + $0x28] sm:$0xff]  }
 0x40f   : > { %v1024_v57 = vsel %vm939_vm3, %v2261_v53, 0.0 }
 0x412   : > { %1031 = vadd.xlane.f32.xlu0 %v1030_v52 }
 0x413   : > { %v2263_v54 = vpop.eup %1866 }
 0x414   : > { %v1045_v55 = vsel %vm939_vm3, %v2263_v54, 0.0  ;;  %v2267_v56 = vpop.eup %1868 }
 0x415   : > { %1046 = vadd.xlane.f32.xlu1 %v1045_v55  ;;  %v2271_v58 = vpop.eup %1870  ;;  %v1039_v60 = vsel %vm939_vm3, %v2267_v56, 0.0  ;;  %v1838_v55 = vld [vmem:[%s2355_s5 + $0x18] sm:$0xff]  }
 0x416   : > { %1025 = vadd.xlane.f32.xlu0 %v1024_v57  ;;  %v1042_v61 = vsel %vm939_vm3, %v2271_v58, 0.0 }
 0x419   : > { %1040 = vadd.xlane.f32.xlu1 %v1039_v60  ;;  %v1840_v60 = vld [vmem:[%s2355_s5 + $0x8] sm:$0xff]  }
 0x41a   : > { %1043 = vadd.xlane.f32.xlu0 %v1042_v61 }
 0x42a   : > { %664 = vrot.lane.b32.xlu1 %v2121_v59, %s1906_s22 }
 0x430   : > { %659 = vrot.lane.b32.xlu0 %v2121_v59, %s1907_s23  ;;  %v1202_v59 = vsel %vm1086_vm1, %v662_v46, 0 }
 0x436   : > { %v1020_v62 = vpop.xlane.xlu0 %1019 }
 0x437   : > { %1872 = vrcp.f32 %v1020_v62 }
 0x43a   : > { %v1014_v63 = vpop.xlane.xlu0 %1013 }
 0x43b   : > { %1874 = vrcp.f32 %v1014_v63 }
 0x43e   : > { %v1017_v0 = vpop.xlane.xlu1 %1016 }
 0x43f   : > { %1876 = vrcp.f32 %v1017_v0  ;;  %v1841_v0 = vld [vmem:[%s2355_s5] sm:$0xff]  }
 0x444   : > { %v1873_v1 = vpop.eup %1872 }
 0x445   : > { %v1062_v10 = vmul.f32 %v1873_v1, %v2214_v5 }
 0x447   : > { %v1073_v13 = vpack.c.bf16 %v1062_v10, %v1062_v10 }
 0x448   : > { %v1875_v7 = vpop.eup %1874 }
 0x449   : > { %v1060_v6 = vmul.f32 %v1875_v7, %v2218_v50 }
 0x44c   : > { %v1877_v8 = vpop.eup %1876 }
 0x44d   : > { %v1061_v11 = vmul.f32 %v1877_v8, %v2222_v9 }
 0x44f   : > { %v1072_v12 = vpack.c.bf16 %v1061_v11, %v1060_v6 }
 0x451   : > { %1729 = vmatprep.mubr.msk.bf16.mxu0 %vm939_vm3, %v1072_v12 }
 0x452   : > { %1730 = vmatmul.mubr.msk.bf16.vlgmr.msra.gmra.mxu0 %vm939_vm3, %v1073_v13 }
 0x453   : > { %1742 = vmatpush3.bf16.msra.mxu0 %v1202_v59 }
 0x488   : > { %v1029_v14 = vpop.xlane.xlu1 %1028 }
 0x48c   : > { %v1023_v15 = vpop.xlane.xlu1 %1022 }
 0x493   : > { %v1035_v16 = vpop.xlane.xlu1 %1034 }
 0x497   : > { %v1038_v17 = vpop.xlane.xlu0 %1037 }
 0x498   : > { %1878 = vrcp.f32 %v1038_v17 }
 0x499   : > { %1880 = vrcp.f32 %v1035_v16 }
 0x49b   : > { %v1032_v5 = vpop.xlane.xlu0 %1031 }
 0x49c   : > { %1882 = vrcp.f32 %v1032_v5 }
 0x49d   : > { %1884 = vrcp.f32 %v1029_v14 }
 0x49e   : > { %1886 = vrcp.f32 %v1023_v15  ;;  %v1047_v50 = vpop.xlane.xlu1 %1046 }
 0x49f   : > { %v1026_v9 = vpop.xlane.xlu0 %1025 }
 0x4a0   : > { %1888 = vrcp.f32 %v1026_v9 }
 0x4a2   : > { %v1041_v18 = vpop.xlane.xlu1 %1040 }
 0x4a3   : > { %1890 = vrcp.f32 %v1041_v18  ;;  %v1044_v19 = vpop.xlane.xlu0 %1043 }
 0x4a4   : > { %1892 = vrcp.f32 %v1044_v19 }
 0x4a5   : > { %1894 = vrcp.f32 %v1047_v50  ;;  %v1879_v21 = vpop.eup %1878 }
 0x4a6   : > { %v1881_v22 = vpop.eup %1880  ;;  %v1068_v20 = vmul.f32 %v1879_v21, %v2249_v47  ;;  %v1834_v47 = vld [vmem:[%s2355_s5 + $0x38] sm:$0xff]  }
 0x4a7   : > { %v660_v23 = vpop.permute.xlu0 %659  ;;  %v1067_v28 = vmul.f32 %v1881_v22, %v2244_v44 }
 0x4a8   : > { %1743 = vmatprep.subr.bf16.mxu0 %v660_v23  ;;  %v1077_v33 = vpack.c.bf16 %v1068_v20, %v1068_v20 }
 0x4a9   : > { %v1883_v25 = vpop.eup %1882  ;;  %1744 = vmatpush3.bf16.msra.mxu0 %v660_v23 }
 0x4aa   : > { %v1885_v27 = vpop.eup %1884  ;;  %v1066_v24 = vmul.f32 %v1883_v25, %v2255_v51  ;;  %1757 = vmatprep.subr.bf16.mxu0 %v1834_v47  ;;  %v1837_v51 = vld [vmem:[%s2355_s5 + $0x20] sm:$0xff]  }
 0x4ab   : > { %v1887_v29 = vpop.eup %1886  ;;  %v1065_v34 = vmul.f32 %v1885_v27, %v2230_v26  ;;  %v1259_v26 = vsel %vm1086_vm1, %v2251_v48, 0  ;;  %v1835_v48 = vld [vmem:[%s2355_s5 + $0x30] sm:$0xff]  }
 0x4ac   : > { %v1076_v31 = vpack.c.bf16 %v1067_v28, %v1066_v24  ;;  %v1063_v35 = vmul.f32 %v1887_v29, %v2235_v30  ;;  %v665_v30 = vpop.permute.xlu1 %664 }
 0x4ad   : > { %v1889_v32 = vpop.eup %1888  ;;  %v1075_v40 = vpack.c.bf16 %v1065_v34, %v1065_v34 }
 0x4ae   : > { %1745 = vmatprep.mubr.msk.bf16.mxu0 %vm939_vm3, %v1076_v31  ;;  %v1064_v37 = vmul.f32 %v1889_v32, %v2261_v53  ;;  %v1595_v32 = vld [vmem:[%s2356_s6] ss:$0 sm:$0xff] }
 0x4af   : > { %1746 = vmatmul.mubr.msk.bf16.vlgmr.msra.gmra.mxu0 %vm939_vm3, %v1077_v33 }
 0x4b0   : > { %v1891_v36 = vpop.eup %1890  ;;  %v1074_v38 = vpack.c.bf16 %v1064_v37, %v1063_v35  ;;  %1758 = vmatpush3.bf16.msra.mxu0 %v1834_v47 }
 0x4b1   : > { %v1893_v39 = vpop.eup %1892  ;;  %v1069_v41 = vmul.f32 %v1891_v36, %v2267_v56  ;;  %1759 = vmatprep.subr.bf16.mxu0 %v1835_v48  ;;  %v1839_v56 = vld [vmem:[%s2355_s5 + $0x10] sm:$0xff]  }
 0x4b2   : > { %v1895_v42 = vpop.eup %1894  ;;  %1737 = vmatprep.mubr.msk.bf16.mxu1 %vm939_vm3, %v1074_v38  ;;  %v1070_v43 = vmul.f32 %v1893_v39, %v2271_v58 }
 0x4b3   : > { %1738 = vmatmul.mubr.msk.bf16.vlgmr.msra.gmra.mxu1 %vm939_vm3, %v1075_v40  ;;  %v1071_v45 = vmul.f32 %v1895_v42, %v2263_v54 }
 0x4b4   : > { %1750 = vmatpush3.bf16.msra.mxu1 %v1259_v26  ;;  %v1078_v44 = vpack.c.bf16 %v1070_v43, %v1069_v41  ;;  %1760 = vmatpush3.bf16.msra.mxu0 %v1835_v48 }
 0x4b5   : > { %1751 = vmatprep.subr.bf16.mxu1 %v665_v30  ;;  %v1079_v46 = vpack.c.bf16 %v1071_v45, %v1071_v45  ;;  %1761 = vmatprep.subr.bf16.mxu0 %v1836_v49 }
 0x4b6   : > { %1753 = vmatprep.mubr.msk.bf16.mxu1 %vm939_vm3, %v1078_v44 }
 0x4b8   : > { %1752 = vmatpush3.bf16.msra.mxu1 %v665_v30  ;;  %1762 = vmatpush3.bf16.msra.mxu0 %v1836_v49 }
 0x4b9   : > { %1763 = vmatprep.subr.bf16.mxu0 %v1837_v51 }
 0x4bb   : > { %1754 = vmatmul.mubr.msk.bf16.vlgmr.msra.gmra.mxu1 %vm939_vm3, %v1079_v46 }
 0x4bc   : > { %1764 = vmatpush3.bf16.msra.mxu0 %v1837_v51 }
 0x4bd   : > { %1765 = vmatprep.subr.bf16.mxu0 %v1838_v55 }
 0x4c0   : > { %1766 = vmatpush3.bf16.msra.mxu0 %v1838_v55 }
 0x4c1   : > { %1767 = vmatprep.subr.bf16.mxu0 %v1839_v56 }
 0x4c4   : > { %1768 = vmatpush3.bf16.msra.mxu0 %v1839_v56 }
 0x4c5   : > { %1769 = vmatprep.subr.bf16.mxu0 %v1840_v60 }
 0x4c8   : > { %1770 = vmatpush3.bf16.msra.mxu0 %v1840_v60 }
 0x4c9   : > { %1771 = vmatprep.subr.bf16.mxu0 %v1841_v0 }
 0x4cc   : > { %1772 = vmatpush3.bf16.msra.mxu0 %v1841_v0 }
 0x512   : > { %v1731_v52 = vpop.f32.mrf.mxu0 }
 0x513   : > { %v1310_v22 = vpack.c.bf16 %v1731_v52, %v1731_v52 }
 0x514   : > { %v1124_v53 = vpop.f32.mrf.mxu0 }
 0x516   : > { %v1732_v54 = vpop.f32.mrf.mxu0 }
 0x518   : > { %v1127_v57 = vpop.f32.mrf.mxu0 }
 0x519   : > { %v1309_v21 = vpack.c.bf16 %v1127_v57, %v1124_v53 }
 0x56f   : > { %v1747_v58 = vpop.f32.mrf.mxu0 }
 0x570   : > { %v1314_v10 = vpack.c.bf16 %v1747_v58, %v1747_v58 }
 0x571   : > { %v1238_v61 = vpop.f32.mrf.mxu0 }
 0x573   : > { %v1739_v62 = vpop.f32.mrf.mxu1  ;;  %v1748_v63 = vpop.f32.mrf.mxu0 }
 0x574   : > { %v1312_v1 = vpack.c.bf16 %v1739_v62, %v1739_v62 }
 0x575   : > { %v1181_v7 = vpop.f32.mrf.mxu1  ;;  %v1241_v12 = vpop.f32.mrf.mxu0 }
 0x576   : > { %1321 = vrot.lane.b32.xlu1 %v1312_v1, %s1906_s22  ;;  %v1313_v15 = vpack.c.bf16 %v1241_v12, %v1238_v61 }
 0x577   : > { %v1740_v8 = vpop.f32.mrf.mxu1 }
 0x579   : > { %v1184_v6 = vpop.f32.mrf.mxu1 }
 0x57a   : > { %v1311_v11 = vpack.c.bf16 %v1184_v6, %v1181_v7  ;;  %1327 = vrot.lane.b32.xlu1 %v1314_v10, %s1907_s23 }
 0x57b   : > { %v1755_v13 = vpop.f32.mrf.mxu1 }
 0x57c   : > { %v1316_v59 = vpack.c.bf16 %v1755_v13, %v1755_v13  ;;  %1319 = vrot.lane.b32.xlu0 %v1311_v11, %s1906_s22 }
 0x57d   : > { %v1295_v14 = vpop.f32.mrf.mxu1 }
 0x57e   : > { %1333 = vrot.lane.b32.xlu1 %v1316_v59, %s1905_s21 }
 0x57f   : > { %v1756_v16 = vpop.f32.mrf.mxu1 }
 0x580   : > { %1325 = vrot.lane.b32.xlu0 %v1313_v15, %s1907_s23 }
 0x581   : > { %v1298_v17 = vpop.f32.mrf.mxu1 }
 0x582   : > { %v1315_v5 = vpack.c.bf16 %v1298_v17, %v1295_v14 }
 0x584   : > { %1331 = vrot.lane.b32.xlu0 %v1315_v5, %s1905_s21 }
 0x5e8   : > { %v1322_v50 = vpop.permute.xlu1 %1321 }
 0x5e9   : > { %v1340_v20 = vsel %vm669_vm0, %v1310_v22, %v1322_v50 }
 0x5ec   : > { %v1328_v18 = vpop.permute.xlu1 %1327 }
 0x5ed   : > { %v1345_v28 = vsel %vm1341_vm4, %v1340_v20, %v1328_v18 }
 0x5ee   : > { %v1320_v9 = vpop.permute.xlu0 %1319 }
 0x5ef   : > { %v1337_v23 = vsel %vm669_vm0, %v1309_v21, %v1320_v9 }
 0x5f0   : > { %v1334_v25 = vpop.permute.xlu1 %1333 }
 0x5f1   : > { %v1351_v31 = vsel %vm1346_vm5, %v1345_v28, %v1334_v25 }
 0x5f2   : > { %v1326_v19 = vpop.permute.xlu0 %1325 }
 0x5f3   : > { %v1343_v27 = vsel %vm1341_vm4, %v1337_v23, %v1326_v19 }
 0x5f6   : > { %v1332_v24 = vpop.permute.xlu0 %1331 }
 0x5f7   : > { %v1348_v29 = vsel %vm1346_vm5, %v1343_v27, %v1332_v24 }
 0x5f8   : > { %1773 = vmatprep.mubr.bf16.mxu0 %v1348_v29 }
 0x5f9   : > { %1774 = vmatmul.mubr.bf16.vlgmr.msra.gmra.mxu0 %v1351_v31 }
 0x6b9   : > { %v1775_v33 = vpop.f32.mrf.mxu0 }
 0x6ba   : > { %v1467_v34 = vadd.f32 %v1775_v33, %v1595_v32 }
 0x6bb   : > { %v1458_v35 = vpop.f32.mrf.mxu0 }
 0x6bc   : > { %v1474_v37 = vadd.f32 %v1467_v34, %v1966_v3  ;;  %v1459_v39 = vadd.f32 %v1595_v32, %v1458_v35 }
 0x6bd   : > { %v1776_v36 = vpop.f32.mrf.mxu0 }
 0x6be   : > { %v1611_v38 = vpack.c.bf16 %v1474_v37, %v1474_v37  ;;  %v1472_v42 = vadd.f32 %v1964_v2, %v1459_v39 }
 0x6bf   : > { %v1461_v40 = vpop.f32.mrf.mxu0 }
 0x6c0   : > { %1490 = vst [vmem:[%s278_s27 + $0x8] sm:$0xf] %v1611_v38  ;;  %v1462_v41 = vadd.f32 %v1595_v32, %v1461_v40 }
 0x6c2   : > { %v1473_v43 = vadd.f32 %v1970_v4, %v1462_v41 }
 0x6c4   : > { %v1619_v26 = vpack.c.bf16 %v1473_v43, %v1472_v42 }
 0x6c6   : > { %1620 = vst [vmem:[%s278_s27] sm:$0xff] %v1619_v26  }
 0x6c7 PF: > { %s17_s24 = sadd.s32 1, %s1902_s24  }
 0x6c8   : > { %p14_p4 = scmp.ge.s32.totalorder %s17_s24, 4  }
 0x6ca   :  { %16 = sbr.rel (!%p14_p4) target bundleno = 1 (0x1), region = 78 }

// kernel: mae_forward.23
= control target key start
LH: loop header
LB: loop body
LE: loop exit
PB: predicated region body
PF: predicated region fallthrough
CT: control target
= control target key end

     0   :  { %vm39_vm0 = vcmask 392192   ;;  %s256_s0 = inlined_call_operand.vmem [shape: f32[2,16,48], index: 0, kind: input, shape index: {}]   ;;  %s257_s1 = inlined_call_operand.vmem [shape: f32[2,16,48], index: 1, kind: input, shape index: {}]   ;;  %s258_s2 = inlined_call_operand.vmem [shape: f32[2,16], index: 2, kind: input, shape index: {}]   ;;  %s259_s3 = inlined_call_operand.vmem [shape: f32[1,2], index: 3, kind: output, shape index: {}]  }
   0x1   :  { %v25_v0 = vld [vmem:[%s256_s0 + $0x10] sm:$0xff]  ;;  %v23_v2 = vld [vmem:[%s256_s0] sm:$0xff]  ;;  %v26_v5 = vld [vmem:[%s256_s0 + $0x18] sm:$0xff] }
   0x2   :  { %v29_v1 = vld [vmem:[%s257_s1 + $0x10] sm:$0xff]  ;;  %v27_v4 = vld [vmem:[%s257_s1] sm:$0xff]  ;;  %v30_v6 = vld [vmem:[%s257_s1 + $0x18] sm:$0xff] }
   0x3   :  { %v33_v3 = vsub.f32 %v25_v0, %v29_v1  ;;  %v31_v7 = vsub.f32 %v23_v2, %v27_v4  ;;  %v34_v8 = vsub.f32 %v26_v5, %v30_v6  ;;  %v24_v9 = vld [vmem:[%s256_s0 + $0x8] sm:$0xff] }
   0x4   :  { %v28_v10 = vld [vmem:[%s257_s1 + $0x8] sm:$0xff] }
   0x5   :  { %v37_v11 = vmul.f32 %v33_v3, %v33_v3  ;;  %v32_v12 = vsub.f32 %v24_v9, %v28_v10 }
   0x6   :  { %8 = vsyncpa [#allocation3], 0  ;;  %v35_v13 = vmul.f32 %v31_v7, %v31_v7  ;;  %v38_v14 = vmul.f32 %v34_v8, %v34_v8  ;;  %v60_v20 = vlaneseq  ;;  %v57_v23 = vld [vmem:[%s258_s2] sm:$0x3]  ;;  %v198_v26 = vmov 0   ;;  %s165_s29 = sshll.u32 %s259_s3, 4  ;;  %s166_s29 = int_to_ptr.vmem [resolvable:$true] %s165_s29 }
   0x7   :  { %v46_v15 = vsel %vm39_vm0, %v37_v11, 0.0  ;;  %v36_v16 = vmul.f32 %v32_v12, %v32_v12  ;;  %183 = vset.pattern.permute.xlu1 %v198_v26  ;;  %182 = vset.pattern.permute.xlu0 %v198_v26  ;;  %vm131_vm1 = vcmask 123904   ;;  %vm117_vm2 = vcmask 130112   ;;  %s184_s5 = scalar_lea.vmem %s166_s29, 16  ;;  %p189_p1 = scmp.lt.s32.totalorder %s166_s29, %s166_s29 }
   0x8   :  { %47 = vadd.xlane.f32.xlu1 %v46_v15  ;;  %v40_v17 = vsel %vm39_vm0, %v35_v13, 0.0  ;;  %v49_v18 = vsel %vm39_vm0, %v38_v14, 0.0  ;;  %v61_v21 = vshrl.u32 %v60_v20, 7  ;;  %v146_v44 = vsel %vm131_vm1, %v57_v23, 0.0  ;;  %p185_p0 = scmp.ne.s32.totalorder %s166_s29, %s184_s5  ;;  %p190_p2 = scmp.lt.s32.totalorder %s184_s5, %s184_s5 }
   0x9   :  { %41 = vadd.xlane.f32.xlu0 %v40_v17  ;;  %v43_v19 = vsel %vm39_vm0, %v36_v16, 0.0  ;;  %v107_v45 = vand.u32 127, %v60_v20  ;;  %vm128_vm3 = vcmask 1041409  }
   0xa   :  { %v62_v22 = vsub.s32 0, %v61_v21  ;;  %v73_v25 = vsub.s32 1, %v61_v21  ;;  %p191_p3 = por %p190_p2, %p189_p1 }
   0xb   :  { %v112_v46 = vadd.s32 4294967288, %v107_v45  ;;  %v110_v49 = vsub.s32 %v107_v45, %v61_v21 }
   0xc   :  { %50 = vadd.xlane.f32.xlu1 %v49_v18  ;;  %v63_v24 = vrot.slane %v57_v23, %v62_v22  ;;  %v74_v27 = vrot.slane %v57_v23, %v73_v25  ;;  %p192_p4 = pnand %p191_p3, %p185_p0 }
   0xd   :  { %44 = vadd.xlane.f32.xlu0 %v43_v19  ;;  %v115_v48 = vsub.s32 %v112_v46, %v61_v21 }
  0x1d   :  { %69 = vbcast.lane.b32.xlu1 %v63_v24, 264 }
  0x21   :  { %76 = vbcast.lane.b32.xlu1 %v74_v27, 256 }
  0x23   :  { %65 = vbcast.lane.b32.xlu0 %v63_v24, 256 }
  0x25   :  { %80 = vbcast.lane.b32.xlu1 %v74_v27, 264 }
  0x91   :  { %v48_v28 = vpop.xlane.xlu1 %47 }
  0x92   :  { %v42_v29 = vpop.xlane.xlu0 %41  ;;  %v55_v38 = vmul.f32 0.020833334, %v48_v28 }
  0x93   :  { %v53_v33 = vmul.f32 0.020833334, %v42_v29 }
  0x95   :  { %v51_v30 = vpop.xlane.xlu1 %50 }
  0x96   :  { %v45_v31 = vpop.xlane.xlu0 %44  ;;  %v56_v41 = vmul.f32 0.020833334, %v51_v30 }
  0x97   :  { %v54_v32 = vmul.f32 0.020833334, %v45_v31 }
  0x99   :  { %v70_v34 = vpop.permute.xlu1 %69 }
  0x9a   :  { %v87_v35 = vmul.f32 %v70_v34, %v54_v32  ;;  %v66_v36 = vpop.permute.xlu0 %65 }
  0x9b   :  { %v86_v37 = vmul.f32 %v66_v36, %v53_v33 }
  0x9c   :  { %98 = vperm.xlu1 %183, %v87_v35  }
  0x9d   :  { %95 = vperm.xlu0 %182, %v86_v37   ;;  %v77_v39 = vpop.permute.xlu1 %76 }
  0x9e   :  { %v88_v40 = vmul.f32 %v77_v39, %v55_v38 }
  0xa0   :  { %101 = vperm.xlu1 %183, %v88_v40  }
  0xa1   :  { %v81_v42 = vpop.permute.xlu1 %80 }
  0xa2   :  { %v89_v43 = vmul.f32 %v81_v42, %v56_v41 }
  0xa4   :  { %104 = vperm.xlu0 %182, %v89_v43  }
  0xc3   :  { %147 = vadd.xlane.f32.xlu0 %v146_v44 }
 0x117   :  { %v99_v47 = vpop.permute.xlu1 %98 }
 0x118   :  { %v96_v50 = vpop.permute.xlu0 %95  ;;  %v116_v52 = vrot.slane %v99_v47, %v115_v48 }
 0x119   :  { %v111_v53 = vrot.slane %v96_v50, %v110_v49 }
 0x11b   :  { %v102_v51 = vpop.permute.xlu1 %101  ;;  %v118_v57 = vsel %vm117_vm2, %v116_v52, %v111_v53 }
 0x11c   :  { %v122_v55 = vrot.slane %v102_v51, %v110_v49 }
 0x11f   :  { %v105_v54 = vpop.permute.xlu0 %104 }
 0x120   :  { %v126_v56 = vrot.slane %v105_v54, %v115_v48 }
 0x122   :  { %v127_v58 = vsel %vm117_vm2, %v126_v56, %v122_v55 }
 0x123   :  { %v129_v59 = vsel %vm128_vm3, %v127_v58, %v118_v57 }
 0x124   :  { %v132_v60 = vsel %vm131_vm1, %v129_v59, 0.0 }
 0x125   :  { %133 = vadd.xlane.f32.xlu1 %v132_v60 }
 0x14c   :  { %v148_v61 = vpop.xlane.xlu0 %147 }
 0x14d   :  { %v149_v62 = vrot.slane %v148_v61, 4 }
 0x14f   :  { %v150_v63 = vadd.f32 %v149_v62, %v148_v61 }
 0x151   :  { %v151_v0 = vrot.slane %v150_v63, 2 }
 0x153   :  { %v152_v4 = vadd.f32 %v151_v0, %v150_v63 }
 0x155   :  { %v153_v7 = vrot.slane %v152_v4, 1 }
 0x157   :  { %v154_v10 = vadd.f32 %v153_v7, %v152_v4 }
 0x1ae   :  { %v134_v1 = vpop.xlane.xlu1 %133 }
 0x1af   :  { %v135_v2 = vrot.slane %v134_v1, 4 }
 0x1b1   :  { %v136_v3 = vadd.f32 %v135_v2, %v134_v1 }
 0x1b3   :  { %v137_v5 = vrot.slane %v136_v3, 2 }
 0x1b5   :  { %v138_v6 = vadd.f32 %v137_v5, %v136_v3 }
 0x1b7   :  { %v139_v8 = vrot.slane %v138_v6, 1 }
 0x1b9   :  { %v140_v9 = vadd.f32 %v139_v8, %v138_v6 }
 0x1bb   :  { %175 = vpush %v140_v9 }
 0x1bc   :  { %177 = vpush %v154_v10 }
 0x1ec   :  { %s176_s30 = spop %175 }
 0x1ed   :  { %s178_s4 = spop %177  ;;  %144 = sst [smem:[#allocation2]] %s176_s30 }
 0x1ee   :  { %158 = sst [smem:[#allocation2 + $0x1]] %s178_s4 }
 0x1ef   :  { %195 = shalt.err (!%p192_p4)
}
 0x1f0   :  { %s199_s6 = smov [#allocation2]  }
 0x1f1   :  { %168 = dma.smem_to_vmem %s199_s6, 16, %s166_s29, [#allocation3]  }
 0x1f2   :  { %196 = dma.done.wait [#allocation3], 16  }
 0x1f3   :  { %197 = vsyncadd [#allocation3], 4294967280 }
 0x1f4   :  { %172 = sfence }
 0x1f5   :  { %173 = vsyncpa [#allocation3], 1 }

</bundles_post_ra>
